<compile_context>
chip_gen: v6e
topology: v6e:2x2x1
jax: 0.10.0
libtpu: 0.0.40
codegen_flags: <defaults>
</compile_context>

<pallas_src>
import functools
import math

import jax
import jax.numpy as jnp
from jax.experimental import pallas as pl
from jax.experimental.pallas import tpu as pltpu

EPS = 1e-5
EMB = 256


# ---------------------------------------------------------------------------
# Kernels
# ---------------------------------------------------------------------------
def _pc_encoder_kernel(mm_dtype, pc_ref, w1t, w2t, w3t, w4t, w5t,
                       a1, a2, a3, a4, a5, out_ref):
    """One sample per grid step; activations are channel-major (C, N_pts)."""
    f32 = jnp.float32
    x = pc_ref[0]                                           # (Cin, N)

    def gn_full(h, aux):
        # GroupNorm(1, C) on one sample's (C, N) map: stats over all C*N
        # elements, per-channel affine. aux columns = [bias, gamma, beta].
        total = h.shape[0] * h.shape[1]
        mean = jnp.sum(jnp.sum(h, axis=1, keepdims=True),
                       axis=0, keepdims=True) * (1.0 / total)
        d = h - mean
        var = jnp.sum(jnp.sum(d * d, axis=1, keepdims=True),
                      axis=0, keepdims=True) * (1.0 / total)
        return d * jax.lax.rsqrt(var + EPS) * aux[:, 1:2] + aux[:, 2:3]

    def mm(wt_ref, h):
        w = wt_ref[...]                                     # (Cout, Cin), maybe bf16
        if mm_dtype is not None:                            # bf16 MXU, f32 accumulate
            h = h.astype(mm_dtype)
        return jnp.dot(w, h, preferred_element_type=f32)

    # conv1 (1x1): K == num_channels (tiny) -> VPU outer-product MACs, no MXU push.
    w1 = w1t[...]                                           # (64, Cin) f32
    h = w1[:, 0:1] * x[0:1, :]
    for c in range(1, x.shape[0]):
        h = h + w1[:, c:c + 1] * x[c:c + 1, :]
    h = jax.nn.relu(gn_full(h + a1[:, 0:1], a1))            # (64, N)

    h = jax.nn.relu(gn_full(mm(w2t, h) + a2[:, 0:1], a2))   # (64, N)
    h = jax.nn.relu(gn_full(mm(w3t, h) + a3[:, 0:1], a3))   # (64, N)
    h = jax.nn.relu(gn_full(mm(w4t, h) + a4[:, 0:1], a4))   # (128, N)
    h = jax.nn.relu(gn_full(mm(w5t, h) + a5[:, 0:1], a5))   # (256, N)

    out_ref[0] = jnp.max(h, axis=1, keepdims=True)          # (256, 1) lane reduce


def _query_occ_kernel(mm_dtype,
                      pcp_ref, q_ref,
                      w1qt, a1q, w2qt, a2q, w3qt, a3q,
                      w1obt, a1o, w2ot, a2o, w3ob,
                      occ_ref):
    """Query/occupancy MLP, channel-major (C, tb) per (sample, query-tile)."""
    f32 = jnp.float32
    relu = jax.nn.relu
    q = q_ref[0]                                            # (3, TB) lane-dense
    pcp = pcp_ref[0]                                        # (256, 1) per-sample pc @ W1o_top

    def mm(wt_ref, h):
        w = wt_ref[...]
        if mm_dtype is not None:                            # bf16 MXU, f32 accumulate
            h = h.astype(mm_dtype)
        return jnp.dot(w, h, preferred_element_type=f32)

    def gn_cols(h, aux):
        # GroupNorm(1, C) per query == per-column norm over C (two-pass f32).
        c = h.shape[0]
        mean = jnp.sum(h, axis=0, keepdims=True) * (1.0 / c)
        d = h - mean
        var = jnp.sum(d * d, axis=0, keepdims=True) * (1.0 / c)
        return d * jax.lax.rsqrt(var + EPS) * aux[:, 1:2] + aux[:, 2:3]

    # fc1_query: K=3 -> VPU outer-product MACs (a depth-3 MXU push is wasted).
    w1 = w1qt[...]                                          # (64, 3) f32
    h = (w1[:, 0:1] * q[0:1, :] + w1[:, 1:2] * q[1:2, :] + w1[:, 2:3] * q[2:3, :]
         + a1q[:, 0:1])
    h = relu(gn_cols(h, a1q))                               # (64, TB)

    h = relu(gn_cols(mm(w2qt, h) + a2q[:, 0:1], a2q))       # (128, TB)
    x_qr = relu(gn_cols(mm(w3qt, h) + a3q[:, 0:1], a3q))    # (256, TB)

    # fc1_occ on concat([pc, x_qr]) without the concat; the pc half is the
    # per-sample column pcp (precomputed once per sample in the wrapper).
    h = mm(w1obt, x_qr) + pcp + a1o[:, 0:1]
    h = relu(gn_cols(h, a1o))                               # (256, TB)
    h = relu(gn_cols(mm(w2ot, h) + a2o[:, 0:1], a2o))       # (128, TB)

    # fc3_occ: single output -> VPU multiply + sublane reduce, lane-dense store.
    wb = w3ob[...]                                          # (128, 2) f32
    logit = jnp.sum(h * wb[:, 0:1], axis=0, keepdims=True) + wb[0:1, 1:2]
    occ_ref[0] = jax.nn.sigmoid(logit).astype(occ_ref.dtype)   # (1, TB)


# ---------------------------------------------------------------------------
# Wrappers (pallas_call)
# ---------------------------------------------------------------------------
def pc_encode(pc, pp, *, mm_dtype=jnp.bfloat16):
    """pc: (B, Cin, N) channel-major -> (B, 256) embedding."""
    B, Cin, N = pc.shape

    def cast(w):
        return w.astype(mm_dtype) if mm_dtype is not None else w

    consts = [pp['w1t'], cast(pp['w2t']), cast(pp['w3t']), cast(pp['w4t']), cast(pp['w5t']),
              pp['a1'], pp['a2'], pp['a3'], pp['a4'], pp['a5']]
    in_specs = ([pl.BlockSpec((1, Cin, N), lambda b: (b, 0, 0))]
                + [pl.BlockSpec(a.shape, lambda b: (0, 0)) for a in consts])
    # NOTE: samples could be fused per grid step to amortize the ~0.35us step
    # tax for very small N; kept one-sample-per-step for simplicity/VMEM safety.
    out = pl.pallas_call(
        functools.partial(_pc_encoder_kernel, mm_dtype),
        out_shape=jax.ShapeDtypeStruct((B, EMB, 1), jnp.float32),
        grid=(B,),
        in_specs=in_specs,
        out_specs=pl.BlockSpec((1, EMB, 1), lambda b: (b, 0, 0)),
        compiler_params=pltpu.CompilerParams(
            dimension_semantics=("parallel",),
            vmem_limit_bytes=32 * 1024 * 1024,
        ),
    )(pc, *consts)
    return out.reshape(B, EMB)


def query_embed_occupancy(pc_proj, query_t, qp, *, block_rows=1024,
                          mm_dtype=jnp.bfloat16):
    """pc_proj: (B, 256, 1) per-sample fc1_occ pc-contribution (emb @ W1o_top),
    query_t: (B, 3, num_qrs) -> occupancy (B*num_qrs, 1)."""
    B, _, Q = query_t.shape
    tb = Q if Q <= block_rows else block_rows
    if tb != Q and tb % 128 != 0:
        raise ValueError("block_rows must be a multiple of 128 when tiling queries")
    n_tiles = pl.cdiv(Q, tb)

    def cast(w):
        return w.astype(mm_dtype) if mm_dtype is not None else w

    weights = [
        qp['w1qt'], qp['a1q'],
        cast(qp['w2qt']), qp['a2q'],
        cast(qp['w3qt']), qp['a3q'],
        cast(qp['w1obt']), qp['a1o'],
        cast(qp['w2ot']), qp['a2o'],
        qp['w3ob'],
    ]

    in_specs = ([pl.BlockSpec((1, EMB, 1), lambda b, i: (b, 0, 0)),   # resident per sample
                 pl.BlockSpec((1, 3, tb), lambda b, i: (b, 0, i))]    # lane-dense query tile
                + [pl.BlockSpec(w.shape, lambda b, i: (0, 0)) for w in weights])
    out_specs = pl.BlockSpec((1, 1, tb), lambda b, i: (b, 0, i))      # lane-dense output

    rows = B * Q
    flops = 2 * rows * (3 * 64 + 64 * 128 + 128 * 256 + 256 * 256 + 256 * 128 + 128)
    bytes_accessed = (query_t.size + pc_proj.size + rows) * 4 + sum(
        int(w.size) * w.dtype.itemsize for w in weights)
    cost = pl.CostEstimate(flops=int(flops), transcendentals=6 * rows,
                           bytes_accessed=int(bytes_accessed))

    out = pl.pallas_call(
        functools.partial(_query_occ_kernel, mm_dtype),
        out_shape=jax.ShapeDtypeStruct((B, 1, Q), jnp.float32),
        grid=(B, n_tiles),
        in_specs=in_specs,
        out_specs=out_specs,
        compiler_params=pltpu.CompilerParams(
            dimension_semantics=("parallel", "parallel"),
            vmem_limit_bytes=32 * 1024 * 1024,
        ),
        cost_estimate=cost,
    )(pc_proj, query_t, *weights)
    return out.reshape(B * Q, 1)


def stressnet_occupancy_forward(pc, query, params, *, block_rows=1024,
                                mm_dtype=jnp.bfloat16):
    """pc: (B, Cin, N), query: (B, num_qrs, 3) -> occupancy (B*num_qrs, 1)."""
    qp = params['qe']
    emb = pc_encode(pc, params['pc'], mm_dtype=mm_dtype)              # (B, 256)
    # pc half of fc1_occ is identical for every query of a sample: compute it
    # once per sample (tiny f32 XLA matmul) instead of streaming a replicated
    # (B*num_qrs, 256) embedding through the kernel.
    pc_proj = (emb @ qp['w1o_top'])[:, :, None]                       # (B, 256, 1)
    query_t = jnp.transpose(query, (0, 2, 1))                         # (B, 3, num_qrs)
    return query_embed_occupancy(pc_proj, query_t, qp,
                                 block_rows=block_rows, mm_dtype=mm_dtype)


# ---------------------------------------------------------------------------
# Parameters (PyTorch-default-like init) + packing for the kernels
# ---------------------------------------------------------------------------
def _uniform(key, shape, bound):
    return jax.random.uniform(key, shape, jnp.float32, -bound, bound)


def init_canonical_params(key, num_channels):
    k_pc, k_qe = jax.random.split(key)

    cp = {}
    dims = [(num_channels, 64), (64, 64), (64, 64), (64, 128), (128, EMB)]
    ks = jax.random.split(k_pc, len(dims))
    for idx, (k, (fi, fo)) in enumerate(zip(ks, dims), start=1):
        kw, kb = jax.random.split(k)
        bound = 1.0 / math.sqrt(fi)
        cp[f'w{idx}'] = _uniform(kw, (fi, fo), bound)
        cp[f'b{idx}'] = _uniform(kb, (fo,), bound)
    for tag, c in (('1', 64), ('2', 128), ('3', EMB)):
        cp['g' + tag] = jnp.ones((c,), jnp.float32)
        cp['be' + tag] = jnp.zeros((c,), jnp.float32)

    qp = {}
    layers = [('1q', 3, 64), ('2q', 64, 128), ('3q', 128, 256),
              ('1o', 512, 256), ('2o', 256, 128), ('3o', 128, 1)]
    ks = jax.random.split(k_qe, len(layers))
    for k, (tag, fi, fo) in zip(ks, layers):
        kw, kb = jax.random.split(k)
        bound = 1.0 / math.sqrt(fi)
        qp['w' + tag] = _uniform(kw, (fi, fo), bound)
        qp['b' + tag] = _uniform(kb, (fo,), bound)
        if tag != '3o':
            qp['g' + tag] = jnp.ones((fo,), jnp.float32)
            qp['be' + tag] = jnp.zeros((fo,), jnp.float32)
    return cp, qp


def pack_params(cp, qp):
    def aux(b, g, be):                       # per-channel columns [bias, gamma, beta]
        return jnp.stack([b, g, be], axis=1)

    pc = dict(
        w1t=cp['w1'].T,                      # (64, Cin) for the VPU layer
        w2t=cp['w2'].T, w3t=cp['w3'].T, w4t=cp['w4'].T, w5t=cp['w5'].T,
        a1=aux(cp['b1'], cp['g1'], cp['be1']),
        a2=aux(cp['b2'], cp['g1'], cp['be1']),
        a3=aux(cp['b3'], cp['g1'], cp['be1']),
        a4=aux(cp['b4'], cp['g2'], cp['be2']),
        a5=aux(cp['b5'], cp['g3'], cp['be3']),
    )
    w3o_col = qp['w3o'].reshape(128)
    b3o_col = jnp.zeros((128,), jnp.float32).at[0].set(qp['b3o'][0])
    qe = dict(
        w1qt=qp['w1q'].T,                    # (64, 3)   VPU layer
        a1q=aux(qp['b1q'], qp['g1q'], qp['be1q']),
        w2qt=qp['w2q'].T,                    # (128, 64)
        a2q=aux(qp['b2q'], qp['g2q'], qp['be2q']),
        w3qt=qp['w3q'].T,                    # (256, 128)
        a3q=aux(qp['b3q'], qp['g3q'], qp['be3q']),
        w1o_top=qp['w1o'][:EMB, :],          # (256, 256) used per-sample in the wrapper
        w1obt=qp['w1o'][EMB:, :].T,          # (256, 256)
        a1o=aux(qp['b1o'], qp['g1o'], qp['be1o']),
        w2ot=qp['w2o'].T,                    # (128, 256)
        a2o=aux(qp['b2o'], qp['g2o'], qp['be2o']),
        w3ob=jnp.stack([w3o_col, b3o_col], axis=1),   # (128, 2) VPU layer
    )
    return {'pc': pc, 'qe': qe}


# ---------------------------------------------------------------------------
# Pure-JAX reference mirroring the PyTorch forward
# ---------------------------------------------------------------------------
def reference_forward(pc, query, cp, qp):
    relu = jax.nn.relu
    x = jnp.transpose(pc, (0, 2, 1))                  # (B, N, Cin)

    def gn_map(h, g, b):                              # GN(1,C) on (B,N,C): stats over N*C
        m = jnp.mean(h, axis=(1, 2), keepdims=True)
        v = jnp.mean((h - m) ** 2, axis=(1, 2), keepdims=True)
        return (h - m) / jnp.sqrt(v + EPS) * g + b

    h = relu(gn_map(x @ cp['w1'] + cp['b1'], cp['g1'], cp['be1']))
    h = relu(gn_map(h @ cp['w2'] + cp['b2'], cp['g1'], cp['be1']))
    h = relu(gn_map(h @ cp['w3'] + cp['b3'], cp['g1'], cp['be1']))
    h = relu(gn_map(h @ cp['w4'] + cp['b4'], cp['g2'], cp['be2']))
    h = relu(gn_map(h @ cp['w5'] + cp['b5'], cp['g3'], cp['be3']))
    emb = jnp.max(h, axis=1)                          # (B, 256)

    B, Q, _ = query.shape
    pc_e = jnp.broadcast_to(emb[:, None, :], (B, Q, EMB)).reshape(-1, EMB)
    q = query.reshape(-1, 3)

    def gn_row(h, g, b):
        m = jnp.mean(h, axis=-1, keepdims=True)
        v = jnp.mean((h - m) ** 2, axis=-1, keepdims=True)
        return (h - m) / jnp.sqrt(v + EPS) * g + b

    xq = relu(gn_row(q @ qp['w1q'] + qp['b1q'], qp['g1q'], qp['be1q']))
    xq = relu(gn_row(xq @ qp['w2q'] + qp['b2q'], qp['g2q'], qp['be2q']))
    xq = relu(gn_row(xq @ qp['w3q'] + qp['b3q'], qp['g3q'], qp['be3q']))
    xc = jnp.concatenate([pc_e, xq], axis=-1)
    xo = relu(gn_row(xc @ qp['w1o'] + qp['b1o'], qp['g1o'], qp['be1o']))
    xo = relu(gn_row(xo @ qp['w2o'] + qp['b2o'], qp['g2o'], qp['be2o']))
    return jax.nn.sigmoid(xo @ qp['w3o'] + qp['b3o'])


if __name__ == "__main__":
    key = jax.random.PRNGKey(0)
    k_pc, k_q, k_param = jax.random.split(key, 3)

    B, C_IN, N_PTS, N_QRS = 2, 5, 64, 8
    pc = jax.random.normal(k_pc, (B, C_IN, N_PTS), jnp.float32)
    query = jax.random.normal(k_q, (B, N_QRS, 3), jnp.float32)

    canon_pc, canon_qe = init_canonical_params(k_param, num_channels=C_IN)
    params = pack_params(canon_pc, canon_qe)
    ref = reference_forward(pc, query, canon_pc, canon_qe)

    # f32 path: tight numerical check against the PyTorch-equivalent reference.
    occ = stressnet_occupancy_forward(pc, query, params, mm_dtype=None)
    jax.block_until_ready(occ)
    assert occ.shape == (B * N_QRS, 1)
    assert jnp.allclose(occ, ref, rtol=1e-4, atol=1e-4), float(jnp.max(jnp.abs(occ - ref)))

    # Default path: bf16 MXU operands, f32 accumulation + f32 GroupNorm math.
    occ_bf16 = stressnet_occupancy_forward(pc, query, params)
    jax.block_until_ready(occ_bf16)
    assert float(jnp.max(jnp.abs(occ_bf16 - ref))) < 1e-1

    print("KERNEL_OK")
</pallas_src>

<mosaic_0001>
module attributes {stable_mosaic.version = 11 : i64} {
  func.func @_pc_encoder_kernel(%arg0: i32, %arg1: memref<1x5x64xf32, #tpu.memory_space<vmem>>, %arg2: memref<64x5xf32, #tpu.memory_space<vmem>>, %arg3: memref<64x64xf32, #tpu.memory_space<vmem>>, %arg4: memref<64x64xf32, #tpu.memory_space<vmem>>, %arg5: memref<128x64xf32, #tpu.memory_space<vmem>>, %arg6: memref<256x128xf32, #tpu.memory_space<vmem>>, %arg7: memref<64x3xf32, #tpu.memory_space<vmem>>, %arg8: memref<64x3xf32, #tpu.memory_space<vmem>>, %arg9: memref<64x3xf32, #tpu.memory_space<vmem>>, %arg10: memref<128x3xf32, #tpu.memory_space<vmem>>, %arg11: memref<256x3xf32, #tpu.memory_space<vmem>>, %arg12: memref<1x256x1xf32, #tpu.memory_space<vmem>>) attributes {dimension_semantics = [#tpu.dimension_semantics<parallel>], iteration_bounds = array<i64: 2>, scalar_prefetch = 0 : i64, scratch_operands = 0 : i64, tpu.core_type = #tpu.core_type<tc>, window_params = [{transform_indices = @transform_0, window_bounds = array<i64: 1, 5, 64>}, {pipeline_mode = #tpu.pipeline_mode<synchronous>, transform_indices = @transform_1, window_bounds = array<i64: 64, 5>}, {pipeline_mode = #tpu.pipeline_mode<synchronous>, transform_indices = @transform_2, window_bounds = array<i64: 64, 64>}, {pipeline_mode = #tpu.pipeline_mode<synchronous>, transform_indices = @transform_3, window_bounds = array<i64: 64, 64>}, {pipeline_mode = #tpu.pipeline_mode<synchronous>, transform_indices = @transform_4, window_bounds = array<i64: 128, 64>}, {pipeline_mode = #tpu.pipeline_mode<synchronous>, transform_indices = @transform_5, window_bounds = array<i64: 256, 128>}, {pipeline_mode = #tpu.pipeline_mode<synchronous>, transform_indices = @transform_6, window_bounds = array<i64: 64, 3>}, {pipeline_mode = #tpu.pipeline_mode<synchronous>, transform_indices = @transform_7, window_bounds = array<i64: 64, 3>}, {pipeline_mode = #tpu.pipeline_mode<synchronous>, transform_indices = @transform_8, window_bounds = array<i64: 64, 3>}, {pipeline_mode = #tpu.pipeline_mode<synchronous>, transform_indices = @transform_9, window_bounds = array<i64: 128, 3>}, {pipeline_mode = #tpu.pipeline_mode<synchronous>, transform_indices = @transform_10, window_bounds = array<i64: 256, 3>}, {transform_indices = @transform_11, window_bounds = array<i64: 1, 256, 1>}]} {
    %c0 = arith.constant 0 : index
    %c0_0 = arith.constant 0 : index
    %c0_1 = arith.constant 0 : index
    %0 = vector.load %arg1[%c0, %c0_0, %c0_1] : memref<1x5x64xf32, #tpu.memory_space<vmem>>, vector<1x5x64xf32>
    %1 = vector.shape_cast %0 : vector<1x5x64xf32> to vector<5x64xf32>
    %c0_2 = arith.constant 0 : index
    %c0_3 = arith.constant 0 : index
    %2 = vector.load %arg2[%c0_2, %c0_3] : memref<64x5xf32, #tpu.memory_space<vmem>>, vector<64x5xf32>
    %3 = vector.extract_strided_slice %2 {offsets = [0, 0], sizes = [64, 1], strides = [1, 1]} : vector<64x5xf32> to vector<64x1xf32>
    %4 = vector.extract_strided_slice %1 {offsets = [0, 0], sizes = [1, 64], strides = [1, 1]} : vector<5x64xf32> to vector<1x64xf32>
    %5 = vector.broadcast %3 : vector<64x1xf32> to vector<64x64xf32>
    %6 = vector.broadcast %4 : vector<1x64xf32> to vector<64x64xf32>
    %7 = arith.mulf %5, %6 : vector<64x64xf32>
    %8 = vector.extract_strided_slice %2 {offsets = [0, 1], sizes = [64, 1], strides = [1, 1]} : vector<64x5xf32> to vector<64x1xf32>
    %9 = vector.extract_strided_slice %1 {offsets = [1, 0], sizes = [1, 64], strides = [1, 1]} : vector<5x64xf32> to vector<1x64xf32>
    %10 = vector.broadcast %8 : vector<64x1xf32> to vector<64x64xf32>
    %11 = vector.broadcast %9 : vector<1x64xf32> to vector<64x64xf32>
    %12 = arith.mulf %10, %11 : vector<64x64xf32>
    %13 = arith.addf %7, %12 : vector<64x64xf32>
    %14 = vector.extract_strided_slice %2 {offsets = [0, 2], sizes = [64, 1], strides = [1, 1]} : vector<64x5xf32> to vector<64x1xf32>
    %15 = vector.extract_strided_slice %1 {offsets = [2, 0], sizes = [1, 64], strides = [1, 1]} : vector<5x64xf32> to vector<1x64xf32>
    %16 = vector.broadcast %14 : vector<64x1xf32> to vector<64x64xf32>
    %17 = vector.broadcast %15 : vector<1x64xf32> to vector<64x64xf32>
    %18 = arith.mulf %16, %17 : vector<64x64xf32>
    %19 = arith.addf %13, %18 : vector<64x64xf32>
    %20 = vector.extract_strided_slice %2 {offsets = [0, 3], sizes = [64, 1], strides = [1, 1]} : vector<64x5xf32> to vector<64x1xf32>
    %21 = vector.extract_strided_slice %1 {offsets = [3, 0], sizes = [1, 64], strides = [1, 1]} : vector<5x64xf32> to vector<1x64xf32>
    %22 = vector.broadcast %20 : vector<64x1xf32> to vector<64x64xf32>
    %23 = vector.broadcast %21 : vector<1x64xf32> to vector<64x64xf32>
    %24 = arith.mulf %22, %23 : vector<64x64xf32>
    %25 = arith.addf %19, %24 : vector<64x64xf32>
    %26 = vector.extract_strided_slice %2 {offsets = [0, 4], sizes = [64, 1], strides = [1, 1]} : vector<64x5xf32> to vector<64x1xf32>
    %27 = vector.extract_strided_slice %1 {offsets = [4, 0], sizes = [1, 64], strides = [1, 1]} : vector<5x64xf32> to vector<1x64xf32>
    %28 = vector.broadcast %26 : vector<64x1xf32> to vector<64x64xf32>
    %29 = vector.broadcast %27 : vector<1x64xf32> to vector<64x64xf32>
    %30 = arith.mulf %28, %29 : vector<64x64xf32>
    %31 = arith.addf %25, %30 : vector<64x64xf32>
    %c0_4 = arith.constant 0 : index
    %c0_5 = arith.constant 0 : index
    %32 = vector.load %arg7[%c0_4, %c0_5] : memref<64x3xf32, #tpu.memory_space<vmem>>, vector<64x1xf32>
    %33 = vector.broadcast %32 : vector<64x1xf32> to vector<64x64xf32>
    %34 = arith.addf %31, %33 : vector<64x64xf32>
    %cst = arith.constant dense<0.000000e+00> : vector<64xf32>
    %35 = vector.multi_reduction <add>, %34, %cst [1] : vector<64x64xf32> to vector<64xf32>
    %36 = vector.shape_cast %35 : vector<64xf32> to vector<64x1xf32>
    %cst_6 = arith.constant dense<0.000000e+00> : vector<1xf32>
    %37 = vector.multi_reduction <add>, %36, %cst_6 [0] : vector<64x1xf32> to vector<1xf32>
    %38 = vector.shape_cast %37 : vector<1xf32> to vector<1x1xf32>
    %cst_7 = arith.constant 2.44140625E-4 : f32
    %39 = vector.broadcast %cst_7 : f32 to vector<1x1xf32>
    %40 = arith.mulf %38, %39 : vector<1x1xf32>
    %41 = vector.broadcast %40 : vector<1x1xf32> to vector<64x64xf32>
    %42 = arith.subf %34, %41 : vector<64x64xf32>
    %43 = arith.mulf %42, %42 : vector<64x64xf32>
    %cst_8 = arith.constant dense<0.000000e+00> : vector<64xf32>
    %44 = vector.multi_reduction <add>, %43, %cst_8 [1] : vector<64x64xf32> to vector<64xf32>
    %45 = vector.shape_cast %44 : vector<64xf32> to vector<64x1xf32>
    %cst_9 = arith.constant dense<0.000000e+00> : vector<1xf32>
    %46 = vector.multi_reduction <add>, %45, %cst_9 [0] : vector<64x1xf32> to vector<1xf32>
    %47 = vector.shape_cast %46 : vector<1xf32> to vector<1x1xf32>
    %cst_10 = arith.constant 2.44140625E-4 : f32
    %48 = vector.broadcast %cst_10 : f32 to vector<1x1xf32>
    %49 = arith.mulf %47, %48 : vector<1x1xf32>
    %cst_11 = arith.constant 9.99999974E-6 : f32
    %50 = vector.broadcast %cst_11 : f32 to vector<1x1xf32>
    %51 = arith.addf %49, %50 : vector<1x1xf32>
    %52 = math.rsqrt %51 : vector<1x1xf32>
    %53 = vector.broadcast %52 : vector<1x1xf32> to vector<64x64xf32>
    %54 = arith.mulf %42, %53 : vector<64x64xf32>
    %c0_12 = arith.constant 0 : index
    %c1 = arith.constant 1 : index
    %55 = vector.load %arg7[%c0_12, %c1] : memref<64x3xf32, #tpu.memory_space<vmem>>, vector<64x1xf32>
    %56 = vector.broadcast %55 : vector<64x1xf32> to vector<64x64xf32>
    %57 = arith.mulf %54, %56 : vector<64x64xf32>
    %c0_13 = arith.constant 0 : index
    %c2 = arith.constant 2 : index
    %58 = vector.load %arg7[%c0_13, %c2] : memref<64x3xf32, #tpu.memory_space<vmem>>, vector<64x1xf32>
    %59 = vector.broadcast %58 : vector<64x1xf32> to vector<64x64xf32>
    %60 = arith.addf %57, %59 : vector<64x64xf32>
    %cst_14 = arith.constant 0.000000e+00 : f32
    %61 = vector.broadcast %cst_14 : f32 to vector<64x64xf32>
    %62 = arith.maximumf %60, %61 : vector<64x64xf32>
    %c0_15 = arith.constant 0 : index
    %c0_16 = arith.constant 0 : index
    %63 = vector.load %arg3[%c0_15, %c0_16] : memref<64x64xf32, #tpu.memory_space<vmem>>, vector<64x64xf32>
    %cst_17 = arith.constant dense<0.000000e+00> : vector<64x64xf32>
    %64 = tpu.matmul %63, %62, %cst_17 {dimension_numbers = #tpu.dot_dimension_numbers<[1], [0], [0], [1], [0, 0, 1, 1], [], []>} : vector<64x64xf32>, vector<64x64xf32>, vector<64x64xf32> -> vector<64x64xf32>
    %c0_18 = arith.constant 0 : index
    %c0_19 = arith.constant 0 : index
    %65 = vector.load %arg8[%c0_18, %c0_19] : memref<64x3xf32, #tpu.memory_space<vmem>>, vector<64x1xf32>
    %66 = vector.broadcast %65 : vector<64x1xf32> to vector<64x64xf32>
    %67 = arith.addf %64, %66 : vector<64x64xf32>
    %cst_20 = arith.constant dense<0.000000e+00> : vector<64xf32>
    %68 = vector.multi_reduction <add>, %67, %cst_20 [1] : vector<64x64xf32> to vector<64xf32>
    %69 = vector.shape_cast %68 : vector<64xf32> to vector<64x1xf32>
    %cst_21 = arith.constant dense<0.000000e+00> : vector<1xf32>
    %70 = vector.multi_reduction <add>, %69, %cst_21 [0] : vector<64x1xf32> to vector<1xf32>
    %71 = vector.shape_cast %70 : vector<1xf32> to vector<1x1xf32>
    %cst_22 = arith.constant 2.44140625E-4 : f32
    %72 = vector.broadcast %cst_22 : f32 to vector<1x1xf32>
    %73 = arith.mulf %71, %72 : vector<1x1xf32>
    %74 = vector.broadcast %73 : vector<1x1xf32> to vector<64x64xf32>
    %75 = arith.subf %67, %74 : vector<64x64xf32>
    %76 = arith.mulf %75, %75 : vector<64x64xf32>
    %cst_23 = arith.constant dense<0.000000e+00> : vector<64xf32>
    %77 = vector.multi_reduction <add>, %76, %cst_23 [1] : vector<64x64xf32> to vector<64xf32>
    %78 = vector.shape_cast %77 : vector<64xf32> to vector<64x1xf32>
    %cst_24 = arith.constant dense<0.000000e+00> : vector<1xf32>
    %79 = vector.multi_reduction <add>, %78, %cst_24 [0] : vector<64x1xf32> to vector<1xf32>
    %80 = vector.shape_cast %79 : vector<1xf32> to vector<1x1xf32>
    %cst_25 = arith.constant 2.44140625E-4 : f32
    %81 = vector.broadcast %cst_25 : f32 to vector<1x1xf32>
    %82 = arith.mulf %80, %81 : vector<1x1xf32>
    %cst_26 = arith.constant 9.99999974E-6 : f32
    %83 = vector.broadcast %cst_26 : f32 to vector<1x1xf32>
    %84 = arith.addf %82, %83 : vector<1x1xf32>
    %85 = math.rsqrt %84 : vector<1x1xf32>
    %86 = vector.broadcast %85 : vector<1x1xf32> to vector<64x64xf32>
    %87 = arith.mulf %75, %86 : vector<64x64xf32>
    %c0_27 = arith.constant 0 : index
    %c1_28 = arith.constant 1 : index
    %88 = vector.load %arg8[%c0_27, %c1_28] : memref<64x3xf32, #tpu.memory_space<vmem>>, vector<64x1xf32>
    %89 = vector.broadcast %88 : vector<64x1xf32> to vector<64x64xf32>
    %90 = arith.mulf %87, %89 : vector<64x64xf32>
    %c0_29 = arith.constant 0 : index
    %c2_30 = arith.constant 2 : index
    %91 = vector.load %arg8[%c0_29, %c2_30] : memref<64x3xf32, #tpu.memory_space<vmem>>, vector<64x1xf32>
    %92 = vector.broadcast %91 : vector<64x1xf32> to vector<64x64xf32>
    %93 = arith.addf %90, %92 : vector<64x64xf32>
    %cst_31 = arith.constant 0.000000e+00 : f32
    %94 = vector.broadcast %cst_31 : f32 to vector<64x64xf32>
    %95 = arith.maximumf %93, %94 : vector<64x64xf32>
    %c0_32 = arith.constant 0 : index
    %c0_33 = arith.constant 0 : index
    %96 = vector.load %arg4[%c0_32, %c0_33] : memref<64x64xf32, #tpu.memory_space<vmem>>, vector<64x64xf32>
    %cst_34 = arith.constant dense<0.000000e+00> : vector<64x64xf32>
    %97 = tpu.matmul %96, %95, %cst_34 {dimension_numbers = #tpu.dot_dimension_numbers<[1], [0], [0], [1], [0, 0, 1, 1], [], []>} : vector<64x64xf32>, vector<64x64xf32>, vector<64x64xf32> -> vector<64x64xf32>
    %c0_35 = arith.constant 0 : index
    %c0_36 = arith.constant 0 : index
    %98 = vector.load %arg9[%c0_35, %c0_36] : memref<64x3xf32, #tpu.memory_space<vmem>>, vector<64x1xf32>
    %99 = vector.broadcast %98 : vector<64x1xf32> to vector<64x64xf32>
    %100 = arith.addf %97, %99 : vector<64x64xf32>
    %cst_37 = arith.constant dense<0.000000e+00> : vector<64xf32>
    %101 = vector.multi_reduction <add>, %100, %cst_37 [1] : vector<64x64xf32> to vector<64xf32>
    %102 = vector.shape_cast %101 : vector<64xf32> to vector<64x1xf32>
    %cst_38 = arith.constant dense<0.000000e+00> : vector<1xf32>
    %103 = vector.multi_reduction <add>, %102, %cst_38 [0] : vector<64x1xf32> to vector<1xf32>
    %104 = vector.shape_cast %103 : vector<1xf32> to vector<1x1xf32>
    %cst_39 = arith.constant 2.44140625E-4 : f32
    %105 = vector.broadcast %cst_39 : f32 to vector<1x1xf32>
    %106 = arith.mulf %104, %105 : vector<1x1xf32>
    %107 = vector.broadcast %106 : vector<1x1xf32> to vector<64x64xf32>
    %108 = arith.subf %100, %107 : vector<64x64xf32>
    %109 = arith.mulf %108, %108 : vector<64x64xf32>
    %cst_40 = arith.constant dense<0.000000e+00> : vector<64xf32>
    %110 = vector.multi_reduction <add>, %109, %cst_40 [1] : vector<64x64xf32> to vector<64xf32>
    %111 = vector.shape_cast %110 : vector<64xf32> to vector<64x1xf32>
    %cst_41 = arith.constant dense<0.000000e+00> : vector<1xf32>
    %112 = vector.multi_reduction <add>, %111, %cst_41 [0] : vector<64x1xf32> to vector<1xf32>
    %113 = vector.shape_cast %112 : vector<1xf32> to vector<1x1xf32>
    %cst_42 = arith.constant 2.44140625E-4 : f32
    %114 = vector.broadcast %cst_42 : f32 to vector<1x1xf32>
    %115 = arith.mulf %113, %114 : vector<1x1xf32>
    %cst_43 = arith.constant 9.99999974E-6 : f32
    %116 = vector.broadcast %cst_43 : f32 to vector<1x1xf32>
    %117 = arith.addf %115, %116 : vector<1x1xf32>
    %118 = math.rsqrt %117 : vector<1x1xf32>
    %119 = vector.broadcast %118 : vector<1x1xf32> to vector<64x64xf32>
    %120 = arith.mulf %108, %119 : vector<64x64xf32>
    %c0_44 = arith.constant 0 : index
    %c1_45 = arith.constant 1 : index
    %121 = vector.load %arg9[%c0_44, %c1_45] : memref<64x3xf32, #tpu.memory_space<vmem>>, vector<64x1xf32>
    %122 = vector.broadcast %121 : vector<64x1xf32> to vector<64x64xf32>
    %123 = arith.mulf %120, %122 : vector<64x64xf32>
    %c0_46 = arith.constant 0 : index
    %c2_47 = arith.constant 2 : index
    %124 = vector.load %arg9[%c0_46, %c2_47] : memref<64x3xf32, #tpu.memory_space<vmem>>, vector<64x1xf32>
    %125 = vector.broadcast %124 : vector<64x1xf32> to vector<64x64xf32>
    %126 = arith.addf %123, %125 : vector<64x64xf32>
    %cst_48 = arith.constant 0.000000e+00 : f32
    %127 = vector.broadcast %cst_48 : f32 to vector<64x64xf32>
    %128 = arith.maximumf %126, %127 : vector<64x64xf32>
    %c0_49 = arith.constant 0 : index
    %c0_50 = arith.constant 0 : index
    %129 = vector.load %arg5[%c0_49, %c0_50] : memref<128x64xf32, #tpu.memory_space<vmem>>, vector<128x64xf32>
    %cst_51 = arith.constant dense<0.000000e+00> : vector<128x64xf32>
    %130 = tpu.matmul %129, %128, %cst_51 {dimension_numbers = #tpu.dot_dimension_numbers<[1], [0], [0], [1], [0, 0, 1, 1], [], []>} : vector<128x64xf32>, vector<64x64xf32>, vector<128x64xf32> -> vector<128x64xf32>
    %c0_52 = arith.constant 0 : index
    %c0_53 = arith.constant 0 : index
    %131 = vector.load %arg10[%c0_52, %c0_53] : memref<128x3xf32, #tpu.memory_space<vmem>>, vector<128x1xf32>
    %132 = vector.broadcast %131 : vector<128x1xf32> to vector<128x64xf32>
    %133 = arith.addf %130, %132 : vector<128x64xf32>
    %cst_54 = arith.constant dense<0.000000e+00> : vector<128xf32>
    %134 = vector.multi_reduction <add>, %133, %cst_54 [1] : vector<128x64xf32> to vector<128xf32>
    %135 = vector.shape_cast %134 : vector<128xf32> to vector<128x1xf32>
    %cst_55 = arith.constant dense<0.000000e+00> : vector<1xf32>
    %136 = vector.multi_reduction <add>, %135, %cst_55 [0] : vector<128x1xf32> to vector<1xf32>
    %137 = vector.shape_cast %136 : vector<1xf32> to vector<1x1xf32>
    %cst_56 = arith.constant 1.22070313E-4 : f32
    %138 = vector.broadcast %cst_56 : f32 to vector<1x1xf32>
    %139 = arith.mulf %137, %138 : vector<1x1xf32>
    %140 = vector.broadcast %139 : vector<1x1xf32> to vector<128x64xf32>
    %141 = arith.subf %133, %140 : vector<128x64xf32>
    %142 = arith.mulf %141, %141 : vector<128x64xf32>
    %cst_57 = arith.constant dense<0.000000e+00> : vector<128xf32>
    %143 = vector.multi_reduction <add>, %142, %cst_57 [1] : vector<128x64xf32> to vector<128xf32>
    %144 = vector.shape_cast %143 : vector<128xf32> to vector<128x1xf32>
    %cst_58 = arith.constant dense<0.000000e+00> : vector<1xf32>
    %145 = vector.multi_reduction <add>, %144, %cst_58 [0] : vector<128x1xf32> to vector<1xf32>
    %146 = vector.shape_cast %145 : vector<1xf32> to vector<1x1xf32>
    %cst_59 = arith.constant 1.22070313E-4 : f32
    %147 = vector.broadcast %cst_59 : f32 to vector<1x1xf32>
    %148 = arith.mulf %146, %147 : vector<1x1xf32>
    %cst_60 = arith.constant 9.99999974E-6 : f32
    %149 = vector.broadcast %cst_60 : f32 to vector<1x1xf32>
    %150 = arith.addf %148, %149 : vector<1x1xf32>
    %151 = math.rsqrt %150 : vector<1x1xf32>
    %152 = vector.broadcast %151 : vector<1x1xf32> to vector<128x64xf32>
    %153 = arith.mulf %141, %152 : vector<128x64xf32>
    %c0_61 = arith.constant 0 : index
    %c1_62 = arith.constant 1 : index
    %154 = vector.load %arg10[%c0_61, %c1_62] : memref<128x3xf32, #tpu.memory_space<vmem>>, vector<128x1xf32>
    %155 = vector.broadcast %154 : vector<128x1xf32> to vector<128x64xf32>
    %156 = arith.mulf %153, %155 : vector<128x64xf32>
    %c0_63 = arith.constant 0 : index
    %c2_64 = arith.constant 2 : index
    %157 = vector.load %arg10[%c0_63, %c2_64] : memref<128x3xf32, #tpu.memory_space<vmem>>, vector<128x1xf32>
    %158 = vector.broadcast %157 : vector<128x1xf32> to vector<128x64xf32>
    %159 = arith.addf %156, %158 : vector<128x64xf32>
    %cst_65 = arith.constant 0.000000e+00 : f32
    %160 = vector.broadcast %cst_65 : f32 to vector<128x64xf32>
    %161 = arith.maximumf %159, %160 : vector<128x64xf32>
    %c0_66 = arith.constant 0 : index
    %c0_67 = arith.constant 0 : index
    %162 = vector.load %arg6[%c0_66, %c0_67] : memref<256x128xf32, #tpu.memory_space<vmem>>, vector<256x128xf32>
    %cst_68 = arith.constant dense<0.000000e+00> : vector<256x64xf32>
    %163 = tpu.matmul %162, %161, %cst_68 {dimension_numbers = #tpu.dot_dimension_numbers<[1], [0], [0], [1], [0, 0, 1, 1], [], []>} : vector<256x128xf32>, vector<128x64xf32>, vector<256x64xf32> -> vector<256x64xf32>
    %c0_69 = arith.constant 0 : index
    %c0_70 = arith.constant 0 : index
    %164 = vector.load %arg11[%c0_69, %c0_70] : memref<256x3xf32, #tpu.memory_space<vmem>>, vector<256x1xf32>
    %165 = vector.broadcast %164 : vector<256x1xf32> to vector<256x64xf32>
    %166 = arith.addf %163, %165 : vector<256x64xf32>
    %cst_71 = arith.constant dense<0.000000e+00> : vector<256xf32>
    %167 = vector.multi_reduction <add>, %166, %cst_71 [1] : vector<256x64xf32> to vector<256xf32>
    %168 = vector.shape_cast %167 : vector<256xf32> to vector<256x1xf32>
    %cst_72 = arith.constant dense<0.000000e+00> : vector<1xf32>
    %169 = vector.multi_reduction <add>, %168, %cst_72 [0] : vector<256x1xf32> to vector<1xf32>
    %170 = vector.shape_cast %169 : vector<1xf32> to vector<1x1xf32>
    %cst_73 = arith.constant 6.10351563E-5 : f32
    %171 = vector.broadcast %cst_73 : f32 to vector<1x1xf32>
    %172 = arith.mulf %170, %171 : vector<1x1xf32>
    %173 = vector.broadcast %172 : vector<1x1xf32> to vector<256x64xf32>
    %174 = arith.subf %166, %173 : vector<256x64xf32>
    %175 = arith.mulf %174, %174 : vector<256x64xf32>
    %cst_74 = arith.constant dense<0.000000e+00> : vector<256xf32>
    %176 = vector.multi_reduction <add>, %175, %cst_74 [1] : vector<256x64xf32> to vector<256xf32>
    %177 = vector.shape_cast %176 : vector<256xf32> to vector<256x1xf32>
    %cst_75 = arith.constant dense<0.000000e+00> : vector<1xf32>
    %178 = vector.multi_reduction <add>, %177, %cst_75 [0] : vector<256x1xf32> to vector<1xf32>
    %179 = vector.shape_cast %178 : vector<1xf32> to vector<1x1xf32>
    %cst_76 = arith.constant 6.10351563E-5 : f32
    %180 = vector.broadcast %cst_76 : f32 to vector<1x1xf32>
    %181 = arith.mulf %179, %180 : vector<1x1xf32>
    %cst_77 = arith.constant 9.99999974E-6 : f32
    %182 = vector.broadcast %cst_77 : f32 to vector<1x1xf32>
    %183 = arith.addf %181, %182 : vector<1x1xf32>
    %184 = math.rsqrt %183 : vector<1x1xf32>
    %185 = vector.broadcast %184 : vector<1x1xf32> to vector<256x64xf32>
    %186 = arith.mulf %174, %185 : vector<256x64xf32>
    %c0_78 = arith.constant 0 : index
    %c1_79 = arith.constant 1 : index
    %187 = vector.load %arg11[%c0_78, %c1_79] : memref<256x3xf32, #tpu.memory_space<vmem>>, vector<256x1xf32>
    %188 = vector.broadcast %187 : vector<256x1xf32> to vector<256x64xf32>
    %189 = arith.mulf %186, %188 : vector<256x64xf32>
    %c0_80 = arith.constant 0 : index
    %c2_81 = arith.constant 2 : index
    %190 = vector.load %arg11[%c0_80, %c2_81] : memref<256x3xf32, #tpu.memory_space<vmem>>, vector<256x1xf32>
    %191 = vector.broadcast %190 : vector<256x1xf32> to vector<256x64xf32>
    %192 = arith.addf %189, %191 : vector<256x64xf32>
    %cst_82 = arith.constant 0.000000e+00 : f32
    %193 = vector.broadcast %cst_82 : f32 to vector<256x64xf32>
    %194 = arith.maximumf %192, %193 : vector<256x64xf32>
    %cst_83 = arith.constant dense<0xFF800000> : vector<256xf32>
    %195 = vector.multi_reduction <maximumf>, %194, %cst_83 [1] : vector<256x64xf32> to vector<256xf32>
    %196 = vector.shape_cast %195 : vector<256xf32> to vector<256x1xf32>
    %c0_84 = arith.constant 0 : index
    %c0_85 = arith.constant 0 : index
    %c0_86 = arith.constant 0 : index
    %197 = vector.load %arg12[%c0_84, %c0_85, %c0_86] : memref<1x256x1xf32, #tpu.memory_space<vmem>>, vector<1x256x1xf32>
    %198 = vector.shape_cast %197 : vector<1x256x1xf32> to vector<256x1xf32>
    %199 = vector.shape_cast %196 : vector<256x1xf32> to vector<1x256x1xf32>
    tpu.vector_store %arg12[%c0_84, %c0_85, %c0_86], %199 {strides = array<i32>} : memref<1x256x1xf32, #tpu.memory_space<vmem>>, vector<1x256x1xf32>,
    return
  }
  func.func @transform_0(%arg0: i32) -> (i32, i32, i32) {
    %c0_i32 = arith.constant 0 : i32
    %c0_i32_0 = arith.constant 0 : i32
    %c0_i32_1 = arith.constant 0 : i32
    return %arg0, %c0_i32, %c0_i32_0 : i32, i32, i32
  }
  func.func @transform_1(%arg0: i32) -> (i32, i32) {
    %c0_i32 = arith.constant 0 : i32
    %c0_i32_0 = arith.constant 0 : i32
    %c0_i32_1 = arith.constant 0 : i32
    return %c0_i32, %c0_i32_0 : i32, i32
  }
  func.func @transform_2(%arg0: i32) -> (i32, i32) {
    %c0_i32 = arith.constant 0 : i32
    %c0_i32_0 = arith.constant 0 : i32
    %c0_i32_1 = arith.constant 0 : i32
    return %c0_i32, %c0_i32_0 : i32, i32
  }
  func.func @transform_3(%arg0: i32) -> (i32, i32) {
    %c0_i32 = arith.constant 0 : i32
    %c0_i32_0 = arith.constant 0 : i32
    %c0_i32_1 = arith.constant 0 : i32
    return %c0_i32, %c0_i32_0 : i32, i32
  }
  func.func @transform_4(%arg0: i32) -> (i32, i32) {
    %c0_i32 = arith.constant 0 : i32
    %c0_i32_0 = arith.constant 0 : i32
    %c0_i32_1 = arith.constant 0 : i32
    return %c0_i32, %c0_i32_0 : i32, i32
  }
  func.func @transform_5(%arg0: i32) -> (i32, i32) {
    %c0_i32 = arith.constant 0 : i32
    %c0_i32_0 = arith.constant 0 : i32
    %c0_i32_1 = arith.constant 0 : i32
    return %c0_i32, %c0_i32_0 : i32, i32
  }
  func.func @transform_6(%arg0: i32) -> (i32, i32) {
    %c0_i32 = arith.constant 0 : i32
    %c0_i32_0 = arith.constant 0 : i32
    %c0_i32_1 = arith.constant 0 : i32
    return %c0_i32, %c0_i32_0 : i32, i32
  }
  func.func @transform_7(%arg0: i32) -> (i32, i32) {
    %c0_i32 = arith.constant 0 : i32
    %c0_i32_0 = arith.constant 0 : i32
    %c0_i32_1 = arith.constant 0 : i32
    return %c0_i32, %c0_i32_0 : i32, i32
  }
  func.func @transform_8(%arg0: i32) -> (i32, i32) {
    %c0_i32 = arith.constant 0 : i32
    %c0_i32_0 = arith.constant 0 : i32
    %c0_i32_1 = arith.constant 0 : i32
    return %c0_i32, %c0_i32_0 : i32, i32
  }
  func.func @transform_9(%arg0: i32) -> (i32, i32) {
    %c0_i32 = arith.constant 0 : i32
    %c0_i32_0 = arith.constant 0 : i32
    %c0_i32_1 = arith.constant 0 : i32
    return %c0_i32, %c0_i32_0 : i32, i32
  }
  func.func @transform_10(%arg0: i32) -> (i32, i32) {
    %c0_i32 = arith.constant 0 : i32
    %c0_i32_0 = arith.constant 0 : i32
    %c0_i32_1 = arith.constant 0 : i32
    return %c0_i32, %c0_i32_0 : i32, i32
  }
  func.func @transform_11(%arg0: i32) -> (i32, i32, i32) {
    %c0_i32 = arith.constant 0 : i32
    %c0_i32_0 = arith.constant 0 : i32
    %c0_i32_1 = arith.constant 0 : i32
    return %arg0, %c0_i32, %c0_i32_0 : i32, i32, i32
  }
}

</mosaic_0001>

<bundles_post_ra>
// kernel: tpu_custom_call.1
= control target key start
LH: loop header
LB: loop body
LE: loop exit
PB: predicated region body
PF: predicated region fallthrough
CT: control target
= control target key end

     0   :  { %s4226_s17 = smov 0   ;;  %s6484_s0 = inlined_call_operand.vmem [shape: f32[2,5,64], index: 0, kind: input, shape index: {}]   ;;  %s6485_s1 = inlined_call_operand.vmem [shape: f32[64,5], index: 1, kind: input, shape index: {}]   ;;  %s6486_s2 = inlined_call_operand.vmem [shape: f32[64,64], index: 2, kind: input, shape index: {}]   ;;  %s6487_s3 = inlined_call_operand.vmem [shape: f32[64,64], index: 3, kind: input, shape index: {}]   ;;  %s6488_s4 = inlined_call_operand.vmem [shape: f32[128,64], index: 4, kind: input, shape index: {}]   ;;  %s6489_s5 = inlined_call_operand.vmem [shape: f32[256,128], index: 5, kind: input, shape index: {}]   ;;  %s6490_s6 = inlined_call_operand.vmem [shape: f32[64,3], index: 6, kind: input, shape index: {}]   ;;  %s6491_s7 = inlined_call_operand.vmem [shape: f32[64,3], index: 7, kind: input, shape index: {}]   ;;  %s6492_s8 = inlined_call_operand.vmem [shape: f32[64,3], index: 8, kind: input, shape index: {}]   ;;  %s6493_s9 = inlined_call_operand.vmem [shape: f32[128,3], index: 9, kind: input, shape index: {}]   ;;  %s6494_s10 = inlined_call_operand.vmem [shape: f32[256,3], index: 10, kind: input, shape index: {}]   ;;  %s6495_s11 = inlined_call_operand.vmem [shape: f32[2,256,1], index: 11, kind: output, shape index: {}]  }
   0x1 LB: > { %s3672_s18 = sadd.s32 4294967295, %s4159_s17   ;;  %p3676_p0 = scmp.ge.s32.totalorder %s4159_s17, 1  ;;  %s4159_s17 = sphi %s4226_s17, %s21_s17  }
   0x2   : > { %p336_p1 = scmp.lt.s32.totalorder %s4159_s17, 3 }
   0x4   : > { %p337_p2 = pnand %p3676_p0, %p336_p1 }
   0x6   : > { %340 = sbr.rel (%p337_p2) target bundleno = 3531 (0xdcb), region = 64 }
   0xb   : > { %v4237_v0 = vld [vmem:[%s6485_s1 + $0x18] sm:$0xff]  ;;  %v385_v1 = vld [vmem:[%s6485_s1] sm:$0xff]  ;;  %v6499_v2 = vmov 1   ;;  %v386_v3 = vld [vmem:[%s6485_s1 + $0x8] sm:$0xff]  ;;  %v4162_v4 = vmov 3   ;;  %v6496_v7 = vmov 2   ;;  %v433_v36 = vlaneseq }
   0xc   : > { %4043 = vset.pattern.permute.xlu0 %v6499_v2  ;;  %4040 = vset.pattern.permute.xlu1 %v6499_v2  ;;  %v387_v5 = vld [vmem:[%s6485_s1 + $0x10] sm:$0xff]  ;;  %v4255_v6 = vld [vmem:[%s6485_s1 + $0x20] sm:$0xff]  ;;  %v4164_v8 = vmov 0   ;;  %v4278_v10 = vld [vmem:[%s6490_s6 + $0x8] sm:$0xff]  ;;  %v4165_v11 = vmov 4   ;;  %p375_p3 = scmp.lt.s32.totalorder %s3672_s18, 1 }
   0xd   : > { %458 = vperm.xlu0 %4043, %v4237_v0   ;;  %446 = vperm.xlu1 %4040, %v385_v1   ;;  %v391_v9 = vld [vmem:[%s6485_s1 + $0x30] sm:$0xff]  ;;  %v390_v13 = vld [vmem:[%s6485_s1 + $0x28] sm:$0xff]  ;;  %v392_v14 = vld [vmem:[%s6485_s1 + $0x38] sm:$0xff]  ;;  %v434_v39 = vshrl.u32 %v433_v36, 7  ;;  %vm709_vm0 = vcmask 523264   ;;  %vm3584_vm1 = vcmask 7168  }
   0xe   : > { %v4284_v12 = vld [vmem:[%s6490_s6 + $0x10] sm:$0xff]  ;;  %v4311_v16 = vld [vmem:[%s6490_s6] sm:$0xff]  ;;  %v4323_v17 = vld [vmem:[%s6490_s6 + $0x18] sm:$0xff]  ;;  %s6636_s18 = smov (!%p375_p3, %s3672_s18), 1 }
   0xf   : > { %v4300_v15 = vld [vmem:[%s6490_s6 + $0x30] sm:$0xff]  ;;  %v4335_v22 = vld [vmem:[%s6490_s6 + $0x20] sm:$0xff]  ;;  %v4344_v25 = vld [vmem:[%s6490_s6 + $0x28] sm:$0xff]  ;;  %s3677_s15 = sshll.u32 %s6636_s18, 3  ;;  %v435_v41 = vsub.s32 0, %v434_v39  ;;  %v479_v43 = vsub.s32 1, %v434_v39 }
  0x10   : > { %v4352_v28 = vld [vmem:[%s6490_s6 + $0x38] sm:$0xff]  ;;  %s378_s20 = scalar_lea.vmem %s6484_s0, %s3677_s15  ;;  %v531_v45 = vsub.s32 2, %v434_v39  ;;  %v583_v52 = vsub.s32 3, %v434_v39  ;;  %v635_v59 = vsub.s32 4, %v434_v39  ;;  %s3714_s26 = sshll.u32 %s6636_s18, 8 }
  0x11   : > { %4046 = vset.pattern.permute.xlu0 %v4162_v4  ;;  %450 = vperm.xlu1 %4040, %v386_v3   ;;  %v384_v44 = vld [vmem:[%s378_s20] sm:$0x1f]  ;;  %s6415_s29 = scalar_lea.vmem %s6495_s11, %s3714_s26 }
  0x12   : > { %554 = vperm.xlu0 %4046, %v386_v3   ;;  %v4380_v46 = vrot.slane %v384_v44, %v435_v41  ;;  %v4384_v49 = vrot.slane %v384_v44, %v479_v43  ;;  %v4388_v53 = vrot.slane %v384_v44, %v531_v45  ;;  %v4390_v57 = vrot.slane %v384_v44, %v583_v52 }
  0x15   : > { %454 = vperm.xlu1 %4040, %v387_v5  }
  0x16   : > { %566 = vperm.xlu0 %4046, %v4255_v6  }
  0x19   : > { %4041 = vset.pattern.permute.xlu1 %v6496_v7 }
  0x1a   : > { %4057 = vset.pattern.permute.xlu0 %v6496_v7  ;;  %502 = vperm.xlu1 %4041, %v386_v3  }
  0x1b   : > { %498 = vperm.xlu0 %4057, %v385_v1  }
  0x1e   : > { %4042 = vset.pattern.permute.xlu1 %v4164_v8 }
  0x1f   : > { %510 = vperm.xlu0 %4057, %v4237_v0   ;;  %410 = vperm.xlu1 %4042, %v4237_v0  }
  0x23   : > { %514 = vperm.xlu0 %4057, %v4255_v6   ;;  %4044 = vset.pattern.permute.xlu1 %v6496_v7 }
  0x24   : > { %506 = vperm.xlu1 %4044, %v387_v5  }
  0x27   : > { %522 = vperm.xlu0 %4057, %v391_v9  }
  0x28   : > { %4045 = vset.pattern.permute.xlu1 %v4162_v4 }
  0x29   : > { %550 = vperm.xlu1 %4045, %v385_v1  }
  0x2b   : > { %4061 = vset.pattern.permute.xlu0 %v4164_v8 }
  0x2c   : > { %395 = vperm.xlu0 %4061, %v385_v1  }
  0x2d   : > { %4047 = vset.pattern.permute.xlu1 %v4164_v8 }
  0x2e   : > { %415 = vperm.xlu1 %4047, %v4255_v6  }
  0x30   : > { %400 = vperm.xlu0 %4061, %v386_v3  }
  0x32   : > { %4048 = vset.pattern.permute.xlu1 %v6499_v2 }
  0x33   : > { %462 = vperm.xlu1 %4048, %v4255_v6  }
  0x34   : > { %405 = vperm.xlu0 %4061, %v387_v5  }
  0x37   : > { %4049 = vset.pattern.permute.xlu1 %v4162_v4 }
  0x38   : > { %425 = vperm.xlu0 %4061, %v391_v9   ;;  %558 = vperm.xlu1 %4049, %v387_v5  }
  0x3c   : > { %668 = vperm.xlu0 %4061, %v4278_v10   ;;  %4050 = vset.pattern.permute.xlu1 %v4165_v11 }
  0x3d   : > { %602 = vperm.xlu1 %4050, %v385_v1  }
  0x40   : > { %673 = vperm.xlu0 %4061, %v4284_v12  }
  0x41   : > { %4051 = vset.pattern.permute.xlu1 %v4164_v8 }
  0x42   : > { %420 = vperm.xlu1 %4051, %v390_v13  }
  0x44   : > { %4064 = vset.pattern.permute.xlu0 %v4165_v11 }
  0x45   : > { %606 = vperm.xlu0 %4064, %v386_v3  }
  0x46   : > { %4052 = vset.pattern.permute.xlu1 %v6499_v2 }
  0x47   : > { %466 = vperm.xlu1 %4052, %v390_v13  }
  0x49   : > { %622 = vperm.xlu0 %4064, %v390_v13  }
  0x4b   : > { %4053 = vset.pattern.permute.xlu1 %v4162_v4 }
  0x4c   : > { %562 = vperm.xlu1 %4053, %v4237_v0  }
  0x4d   : > { %626 = vperm.xlu0 %4064, %v391_v9  }
  0x50   : > { %4054 = vset.pattern.permute.xlu1 %v4165_v11 }
  0x51   : > { %610 = vperm.xlu1 %4054, %v387_v5   ;;  %630 = vperm.xlu0 %4064, %v392_v14  }
  0x55   : > { %4055 = vset.pattern.permute.xlu1 %v6499_v2  ;;  %4070 = vset.pattern.permute.xlu0 %v4164_v8 }
  0x56   : > { %470 = vperm.xlu1 %4055, %v391_v9   ;;  %693 = vperm.xlu0 %4070, %v4300_v15  }
  0x5a   : > { %4056 = vset.pattern.permute.xlu1 %v6496_v7  ;;  %4071 = vset.pattern.permute.xlu0 %v6499_v2 }
  0x5b   : > { %518 = vperm.xlu1 %4056, %v390_v13  }
  0x5f   : > { %4058 = vset.pattern.permute.xlu1 %v4165_v11 }
  0x60   : > { %614 = vperm.xlu1 %4058, %v4237_v0   ;;  %v4396_v0 = vrot.slane %v384_v44, %v635_v59 }
  0x64   : > { %4059 = vset.pattern.permute.xlu1 %v4164_v8 }
  0x65   : > { %663 = vperm.xlu1 %4059, %v4311_v16  }
  0x69   : > { %430 = vperm.xlu1 %4059, %v392_v14  }
  0x6d   : > { %4060 = vset.pattern.permute.xlu1 %v6499_v2 }
  0x6e   : > { %474 = vperm.xlu1 %4060, %v392_v14  }
  0x72   : > { %4062 = vset.pattern.permute.xlu1 %v4162_v4 }
  0x73   : > { %570 = vperm.xlu1 %4062, %v390_v13  }
  0x77   : > { %4063 = vset.pattern.permute.xlu1 %v4165_v11 }
  0x78   : > { %618 = vperm.xlu1 %4063, %v4255_v6  }
  0x7c   : > { %4065 = vset.pattern.permute.xlu1 %v6496_v7 }
  0x7d   : > { %526 = vperm.xlu1 %4065, %v392_v14  }
  0x81   : > { %4066 = vset.pattern.permute.xlu1 %v4162_v4 }
  0x82   : > { %574 = vperm.xlu1 %4066, %v391_v9  }
  0x86   : > { %4067 = vset.pattern.permute.xlu1 %v4164_v8 }
  0x87   : > { %678 = vperm.xlu1 %4067, %v4323_v17  }
  0x88   : > { %v4327_v18 = vpop.permute.xlu1 %446  ;;  %v4329_v19 = vpop.permute.xlu0 %458 }
  0x8b   : > { %4068 = vset.pattern.permute.xlu1 %v4162_v4 }
  0x8c   : > { %578 = vperm.xlu1 %4068, %v392_v14   ;;  %v451_v20 = vpop.permute.xlu1 %450 }
  0x8d   : > { %v555_v21 = vpop.permute.xlu0 %554  ;;  %v482_v51 = vmul.f32 %v4384_v49, %v451_v20 }
  0x8e   : > { %v586_v61 = vmul.f32 %v4390_v57, %v555_v21 }
  0x90   : > { %4069 = vset.pattern.permute.xlu1 %v4164_v8  ;;  %v455_v23 = vpop.permute.xlu1 %454 }
  0x91   : > { %683 = vperm.xlu1 %4069, %v4335_v22   ;;  %v4339_v24 = vpop.permute.xlu0 %566  ;;  %v483_v9 = vmul.f32 %v4384_v49, %v455_v23 }
  0x95   : > { %688 = vperm.xlu1 %4069, %v4344_v25   ;;  %v503_v26 = vpop.permute.xlu1 %502 }
  0x96   : > { %v4347_v27 = vpop.permute.xlu0 %498  ;;  %v534_v58 = vmul.f32 %v4388_v53, %v503_v26 }
  0x99   : > { %698 = vperm.xlu1 %4069, %v4352_v28  }
  0x9a   : > { %v4355_v29 = vpop.permute.xlu1 %410  ;;  %v4357_v30 = vpop.permute.xlu0 %510 }
  0x9d   : > { %4072 = vset.pattern.permute.xlu1 %v6499_v2 }
  0x9e   : > { %v4360_v31 = vpop.permute.xlu0 %514 }
  0x9f   : > { %v507_v32 = vpop.permute.xlu1 %506 }
  0xa0   : > { %v535_v20 = vmul.f32 %v4388_v53, %v507_v32  ;;  %v481_v32 = vmul.f32 %v4384_v49, %v4327_v18 }
  0xa2   : > { %v4362_v33 = vpop.permute.xlu0 %522 }
  0xa4   : > { %v4366_v34 = vpop.permute.xlu1 %550 }
  0xa7   : > { %v396_v35 = vpop.permute.xlu0 %395 }
  0xa8   : > { %v437_v43 = vmul.f32 %v4380_v46, %v396_v35 }
  0xa9   : > { %v4372_v37 = vpop.permute.xlu1 %415 }
  0xab   : > { %v401_v38 = vpop.permute.xlu0 %400 }
  0xac   : > { %v438_v50 = vmul.f32 %v4380_v46, %v401_v38 }
  0xae   : > { %v4375_v40 = vpop.permute.xlu1 %462  ;;  %v490_v56 = vadd.f32 %v482_v51, %v438_v50  ;;  %v489_v51 = vadd.f32 %v481_v32, %v437_v43 }
  0xaf   : > { %v406_v42 = vpop.permute.xlu0 %405 }
  0xb0   : > { %v542_v62 = vadd.f32 %v534_v58, %v490_v56  ;;  %v439_v3 = vmul.f32 %v4380_v46, %v406_v42  ;;  %v585_v56 = vmul.f32 %v4390_v57, %v4366_v34  ;;  %v440_v34 = vmul.f32 %v4380_v46, %v4355_v29 }
  0xb2   : > { %v594_v4 = vadd.f32 %v586_v61, %v542_v62  ;;  %v491_v13 = vadd.f32 %v483_v9, %v439_v3  ;;  %v536_v9 = vmul.f32 %v4388_v53, %v4357_v30 }
  0xb3   : > { %v559_v47 = vpop.permute.xlu1 %558  ;;  %v4382_v48 = vpop.permute.xlu0 %425 }
  0xb4   : > { %v543_v36 = vadd.f32 %v535_v20, %v491_v13  ;;  %v587_v38 = vmul.f32 %v4390_v57, %v559_v47  ;;  %v533_v47 = vmul.f32 %v4388_v53, %v4347_v27 }
  0xb6   : > { %v595_v41 = vadd.f32 %v587_v38, %v543_v36  ;;  %v485_v36 = vmul.f32 %v4384_v49, %v4375_v40  ;;  %v443_v38 = vmul.f32 %v4380_v46, %v4382_v48 }
  0xb7   : > { %v669_v54 = vpop.permute.xlu0 %668 }
  0xb8   : > { %v603_v55 = vpop.permute.xlu1 %602 }
  0xb9   : > { %v637_v35 = vmul.f32 %v4396_v0, %v603_v55 }
  0xbb   : > { %v674_v60 = vpop.permute.xlu0 %673 }
  0xbd   : > { %v4394_v63 = vpop.permute.xlu1 %420 }
  0xc0   : > { %v607_v1 = vpop.permute.xlu0 %606 }
  0xc1   : > { %v638_v5 = vmul.f32 %v4396_v0, %v607_v1 }
  0xc2   : > { %v467_v6 = vpop.permute.xlu1 %466 }
  0xc3   : > { %v646_v11 = vadd.f32 %v638_v5, %v594_v4  ;;  %v484_v5 = vmul.f32 %v4384_v49, %v4329_v19  ;;  %v486_v48 = vmul.f32 %v4384_v49, %v467_v6 }
  0xc5   : > { %v4401_v14 = vadd.f32 %v669_v54, %v646_v11  ;;  %v541_v54 = vadd.f32 %v533_v47, %v489_v51  ;;  %v492_v55 = vadd.f32 %v484_v5, %v440_v34 }
  0xc7   : > { %v563_v21 = vpop.permute.xlu1 %562  ;;  %v713_v26 = vsel %vm709_vm0, %v4401_v14, 0.0  ;;  %v593_v59 = vadd.f32 %v585_v56, %v541_v54  ;;  %v544_v20 = vadd.f32 %v536_v9, %v492_v55 }
  0xc8   : > { %714 = vadd.xlane.f32.xlu0 %v713_v26  ;;  %v588_v13 = vmul.f32 %v4390_v57, %v563_v21  ;;  %v623_v26 = vpop.permute.xlu0 %622  ;;  %v537_v21 = vmul.f32 %v4388_v53, %v4360_v31  ;;  %v442_v31 = vmul.f32 %v4380_v46, %v4394_v63 }
  0xc9   : > { %v642_v9 = vmul.f32 %v4396_v0, %v623_v26 }
  0xca   : > { %v596_v30 = vadd.f32 %v588_v13, %v544_v20 }
  0xcc   : > { %v611_v39 = vpop.permute.xlu1 %610 }
  0xcd   : > { %v639_v42 = vmul.f32 %v4396_v0, %v611_v39 }
  0xcf   : > { %v647_v23 = vadd.f32 %v639_v42, %v595_v41  ;;  %v441_v41 = vmul.f32 %v4380_v46, %v4372_v37  ;;  %v627_v42 = vpop.permute.xlu0 %626  ;;  %v589_v37 = vmul.f32 %v4390_v57, %v4339_v24 }
  0xd0   : > { %v643_v24 = vmul.f32 %v4396_v0, %v627_v42 }
  0xd1   : > { %v471_v44 = vpop.permute.xlu1 %470  ;;  %v4409_v45 = vadd.f32 %v674_v60, %v647_v23  ;;  %v645_v60 = vadd.f32 %v637_v35, %v593_v59  ;;  %v539_v23 = vmul.f32 %v4388_v53, %v4362_v33  ;;  %v493_v40 = vadd.f32 %v485_v36, %v441_v41 }
  0xd2   : > { %v487_v19 = vmul.f32 %v4384_v49, %v471_v44  ;;  %v494_v35 = vadd.f32 %v486_v48, %v442_v31 }
  0xd3   : > { %v716_v50 = vsel %vm709_vm0, %v4409_v45, 0.0  ;;  %v545_v51 = vadd.f32 %v537_v21, %v493_v40 }
  0xd4   : > { %717 = vadd.xlane.f32.xlu0 %v716_v50  ;;  %v495_v43 = vadd.f32 %v487_v19, %v443_v38 }
  0xd5   : > { %v597_v34 = vadd.f32 %v589_v37, %v545_v51 }
  0xd6   : > { %v519_v52 = vpop.permute.xlu1 %518  ;;  %v547_v33 = vadd.f32 %v539_v23, %v495_v43 }
  0xd7   : > { %v538_v54 = vmul.f32 %v4388_v53, %v519_v52 }
  0xd9   : > { %v546_v52 = vadd.f32 %v538_v54, %v494_v35 }
  0xdb   : > { %v615_v58 = vpop.permute.xlu1 %614 }
  0xdc   : > { %v640_v39 = vmul.f32 %v4396_v0, %v615_v58  ;;  %v631_v58 = vpop.permute.xlu0 %630 }
  0xde   : > { %v648_v32 = vadd.f32 %v640_v39, %v596_v30 }
  0xe0   : > { %v664_v61 = vpop.permute.xlu1 %663  ;;  %v694_v20 = vpop.permute.xlu0 %693 }
  0xe1   : > { %v4420_v18 = vadd.f32 %v664_v61, %v645_v60 }
  0xe3   : > { %v710_v62 = vsel %vm709_vm0, %v4420_v18, 0.0 }
  0xe4   : > { %v431_v1 = vpop.permute.xlu1 %430  ;;  %711 = vadd.xlane.f32.xlu1 %v710_v62 }
  0xe5   : > { %v444_v62 = vmul.f32 %v4380_v46, %v431_v1 }
  0xe9   : > { %v475_v27 = vpop.permute.xlu1 %474 }
  0xea   : > { %v488_v6 = vmul.f32 %v4384_v49, %v475_v27 }
  0xec   : > { %v496_v55 = vadd.f32 %v488_v6, %v444_v62 }
  0xee   : > { %v571_v3 = vpop.permute.xlu1 %570 }
  0xef   : > { %v590_v59 = vmul.f32 %v4390_v57, %v571_v3 }
  0xf1   : > { %v598_v49 = vadd.f32 %v590_v59, %v546_v52 }
  0xf3   : > { %v619_v4 = vpop.permute.xlu1 %618 }
  0xf4   : > { %v641_v60 = vmul.f32 %v4396_v0, %v619_v4 }
  0xf6   : > { %v649_v3 = vadd.f32 %v641_v60, %v597_v34 }
  0xf8   : > { %v527_v11 = vpop.permute.xlu1 %526 }
  0xf9   : > { %v540_v5 = vmul.f32 %v4388_v53, %v527_v11  ;;  %v644_v53 = vmul.f32 %v4396_v0, %v631_v58 }
  0xfb   : > { %v548_v36 = vadd.f32 %v540_v5, %v496_v55 }
  0xfd   : > { %v575_v29 = vpop.permute.xlu1 %574 }
  0xfe   : > { %v591_v50 = vmul.f32 %v4390_v57, %v575_v29  ;;  %v650_v29 = vadd.f32 %v642_v9, %v598_v49 }
 0x100   : > { %v599_v61 = vadd.f32 %v591_v50, %v547_v33 }
 0x102   : > { %v679_v44 = vpop.permute.xlu1 %678  ;;  %v651_v27 = vadd.f32 %v643_v24, %v599_v61 }
 0x103   : > { %v4445_v47 = vadd.f32 %v679_v44, %v648_v32 }
 0x104   : > { %v707_v19 = vadd.f32 %v694_v20, %v651_v27 }
 0x105   : > { %v719_v56 = vsel %vm709_vm0, %v4445_v47, 0.0 }
 0x106   : > { %720 = vadd.xlane.f32.xlu1 %v719_v56  ;;  %v728_v41 = vsel %vm709_vm0, %v707_v19, 0.0 }
 0x107   : > { %v579_v63 = vpop.permute.xlu1 %578 }
 0x108   : > { %v592_v13 = vmul.f32 %v4390_v57, %v579_v63 }
 0x10a   : > { %v600_v39 = vadd.f32 %v592_v13, %v548_v36 }
 0x10c   : > { %v684_v4 = vpop.permute.xlu1 %683  ;;  %v652_v26 = vadd.f32 %v644_v53, %v600_v39  ;;  %v4583_v53 = vld [vmem:[%s6491_s7 + $0x20] sm:$0xff] }
 0x10d   : > { %v705_v38 = vadd.f32 %v684_v4, %v649_v3 }
 0x10f   : > { %v722_v46 = vsel %vm709_vm0, %v705_v38, 0.0 }
 0x110   : > { %v689_v1 = vpop.permute.xlu1 %688  ;;  %723 = vadd.xlane.f32.xlu0 %v722_v46 }
 0x111   : > { %v706_v11 = vadd.f32 %v689_v1, %v650_v29  ;;  %v4577_v1 = vld [vmem:[%s6491_s7 + $0x38] sm:$0xff] }
 0x113   : > { %v725_v57 = vsel %vm709_vm0, %v706_v11, 0.0 }
 0x114   : > { %v699_v30 = vpop.permute.xlu1 %698  ;;  %729 = vadd.xlane.f32.xlu0 %v728_v41  ;;  %726 = vadd.xlane.f32.xlu1 %v725_v57 }
 0x115   : > { %v4466_v21 = vadd.f32 %v699_v30, %v652_v26  ;;  %v4590_v26 = vld [vmem:[%s6491_s7 + $0x30] sm:$0xff] }
 0x117   : > { %v731_v42 = vsel %vm709_vm0, %v4466_v21, 0.0 }
 0x118   : > { %732 = vadd.xlane.f32.xlu1 %v731_v42 }
 0x151   : > { %v715_v23 = vpop.xlane.xlu0 %714 }
 0x15d   : > { %v718_v32 = vpop.xlane.xlu0 %717 }
 0x16d   : > { %v712_v40 = vpop.xlane.xlu1 %711 }
 0x16e   : > { %v734_v43 = vadd.f32 %v715_v23, %v712_v40 }
 0x170   : > { %v735_v48 = vadd.f32 %v734_v43, %v718_v32 }
 0x18f   : > { %v721_v0 = vpop.xlane.xlu1 %720 }
 0x190   : > { %v736_v50 = vadd.f32 %v735_v48, %v721_v0 }
 0x199   : > { %v724_v44 = vpop.xlane.xlu0 %723 }
 0x19a   : > { %v737_v37 = vadd.f32 %v736_v50, %v724_v44 }
 0x19d   : > { %v727_v31 = vpop.xlane.xlu1 %726  ;;  %v730_v54 = vpop.xlane.xlu0 %729 }
 0x19e   : > { %v738_v51 = vadd.f32 %v737_v37, %v727_v31 }
 0x1a0   : > { %v739_v33 = vadd.f32 %v738_v51, %v730_v54 }
 0x1a1   : > { %v733_v56 = vpop.xlane.xlu1 %732 }
 0x1a2   : > { %v740_v35 = vadd.f32 %v739_v33, %v733_v56 }
 0x1a4   : > { %v741_v6 = vrot.slane %v740_v35, 4 }
 0x1a6   : > { %v742_v58 = vadd.f32 %v741_v6, %v740_v35 }
 0x1a8   : > { %v743_v59 = vrot.slane %v742_v58, 2 }
 0x1aa   : > { %v744_v60 = vadd.f32 %v743_v59, %v742_v58 }
 0x1ac   : > { %v745_v24 = vrot.slane %v744_v60, 1 }
 0x1ae   : > { %v746_v61 = vadd.f32 %v745_v24, %v744_v60 }
 0x1b0   : > { %v747_v63 = vmul.f32 0.00024414063, %v746_v61 }
 0x1b2   : > { %v4471_v62 = vsub.f32 %v4401_v14, %v747_v63  ;;  %v4474_v52 = vsub.f32 %v4420_v18, %v747_v63  ;;  %v4477_v5 = vsub.f32 %v4445_v47, %v747_v63  ;;  %v4480_v34 = vsub.f32 %v4409_v45, %v747_v63 }
 0x1b3   : > { %v4486_v49 = vsub.f32 %v706_v11, %v747_v63  ;;  %v4488_v27 = vsub.f32 %v705_v38, %v747_v63  ;;  %v4496_v13 = vsub.f32 %v707_v19, %v747_v63 }
 0x1b4   : > { %v757_v55 = vmul.f32 %v4471_v62, %v4471_v62  ;;  %v756_v9 = vmul.f32 %v4474_v52, %v4474_v52  ;;  %v759_v47 = vmul.f32 %v4477_v5, %v4477_v5  ;;  %v758_v45 = vmul.f32 %v4480_v34, %v4480_v34 }
 0x1b5   : > { %v761_v4 = vmul.f32 %v4486_v49, %v4486_v49  ;;  %v760_v36 = vmul.f32 %v4488_v27, %v4488_v27  ;;  %v762_v19 = vmul.f32 %v4496_v13, %v4496_v13 }
 0x1b6   : > { %v767_v14 = vsel %vm709_vm0, %v757_v55, 0.0  ;;  %v764_v18 = vsel %vm709_vm0, %v756_v9, 0.0  ;;  %v773_v3 = vsel %vm709_vm0, %v759_v47, 0.0  ;;  %v770_v20 = vsel %vm709_vm0, %v758_v45, 0.0 }
 0x1b7   : > { %768 = vadd.xlane.f32.xlu1 %v767_v14  ;;  %765 = vadd.xlane.f32.xlu0 %v764_v18  ;;  %v779_v38 = vsel %vm709_vm0, %v761_v4, 0.0  ;;  %v776_v39 = vsel %vm709_vm0, %v760_v36, 0.0  ;;  %v782_v29 = vsel %vm709_vm0, %v762_v19, 0.0 }
 0x1bb   : > { %774 = vadd.xlane.f32.xlu1 %v773_v3  ;;  %771 = vadd.xlane.f32.xlu0 %v770_v20 }
 0x1bf   : > { %780 = vadd.xlane.f32.xlu1 %v779_v38  ;;  %777 = vadd.xlane.f32.xlu0 %v776_v39 }
 0x1c3   : > { %783 = vadd.xlane.f32.xlu0 %v782_v29 }
 0x1d0   : > { %837 = vperm.xlu1 %4072, %v4300_v15  }
 0x1d4   : > { %4073 = vset.pattern.permute.xlu1 %v6496_v7 }
 0x1d5   : > { %881 = vperm.xlu1 %4073, %v4352_v28  }
 0x1d9   : > { %4074 = vset.pattern.permute.xlu1 %v6499_v2  ;;  %841 = vperm.xlu0 %4071, %v4352_v28   ;;  %v4527_v28 = vsub.f32 %v4466_v21, %v747_v63 }
 0x1da   : > { %833 = vperm.xlu1 %4074, %v4344_v25  }
 0x1dd   : > { %821 = vperm.xlu0 %4071, %v4284_v12  }
 0x1de   : > { %4075 = vset.pattern.permute.xlu1 %v6496_v7 }
 0x1df   : > { %877 = vperm.xlu1 %4075, %v4300_v15   ;;  %v763_v15 = vmul.f32 %v4527_v28, %v4527_v28 }
 0x1e1   : > { %817 = vperm.xlu0 %4071, %v4278_v10   ;;  %v785_v46 = vsel %vm709_vm0, %v763_v15, 0.0 }
 0x1e3   : > { %4076 = vset.pattern.permute.xlu1 %v6499_v2 }
 0x1e4   : > { %829 = vperm.xlu1 %4076, %v4335_v22  }
 0x1e5   : > { %813 = vperm.xlu0 %4071, %v4311_v16  }
 0x1e8   : > { %4077 = vset.pattern.permute.xlu1 %v6496_v7 }
 0x1e9   : > { %4080 = vset.pattern.permute.xlu0 %v6496_v7 }
 0x1ea   : > { %853 = vperm.xlu0 %4080, %v4311_v16   ;;  %v900_v16 = vld [vmem:[%s6486_s2] sm:$0xff] }
 0x1eb   : > { %3835 = vmatprep.mubr.msk.f32.mxu0 %vm709_vm0, %v900_v16 }
 0x1ee   : > { %4082 = vset.pattern.permute.xlu0 %v4164_v8 }
 0x208   : > { %786 = vadd.xlane.f32.xlu1 %v785_v46 }
 0x219   : > { %873 = vperm.xlu1 %4077, %v4344_v25   ;;  %v4548_v25 = vld [vmem:[%s6491_s7] sm:$0xff] }
 0x21d   : > { %4078 = vset.pattern.permute.xlu1 %v6499_v2 }
 0x21e   : > { %825 = vperm.xlu1 %4078, %v4323_v17  }
 0x222   : > { %4079 = vset.pattern.permute.xlu1 %v6496_v7 }
 0x223   : > { %869 = vperm.xlu1 %4079, %v4335_v22   ;;  %v4571_v22 = vld [vmem:[%s6491_s7 + $0x18] sm:$0xff] }
 0x227   : > { %865 = vperm.xlu1 %4079, %v4323_v17   ;;  %v4565_v17 = vld [vmem:[%s6491_s7 + $0x28] sm:$0xff] }
 0x22b   : > { %861 = vperm.xlu1 %4079, %v4284_v12   ;;  %v4554_v12 = vld [vmem:[%s6491_s7 + $0x10] sm:$0xff] }
 0x22c   : > { %928 = vperm.xlu0 %4082, %v4554_v12  }
 0x22f   : > { %857 = vperm.xlu1 %4079, %v4278_v10   ;;  %v4559_v10 = vld [vmem:[%s6491_s7 + $0x8] sm:$0xff] }
 0x230   : > { %943 = vperm.xlu0 %4082, %v4565_v17  }
 0x233   : > { %4081 = vset.pattern.permute.xlu1 %v4164_v8 }
 0x234   : > { %918 = vperm.xlu1 %4081, %v4548_v25   ;;  %953 = vperm.xlu0 %4082, %v4577_v1  }
 0x238   : > { %923 = vperm.xlu1 %4081, %v4559_v10   ;;  %4083 = vset.pattern.permute.xlu0 %v6499_v2 }
 0x23c   : > { %933 = vperm.xlu1 %4081, %v4571_v22  }
 0x240   : > { %v769_v11 = vpop.xlane.xlu1 %768  ;;  %938 = vperm.xlu1 %4081, %v4583_v53   ;;  %v766_v21 = vpop.xlane.xlu0 %765 }
 0x241   : > { %v788_v40 = vadd.f32 %v769_v11, %v766_v21 }
 0x244   : > { %948 = vperm.xlu1 %4081, %v4590_v26   ;;  %v775_v41 = vpop.xlane.xlu1 %774  ;;  %v772_v23 = vpop.xlane.xlu0 %771 }
 0x245   : > { %v789_v43 = vadd.f32 %v788_v40, %v772_v23 }
 0x247   : > { %v790_v0 = vadd.f32 %v789_v43, %v775_v41 }
 0x248   : > { %4084 = vset.pattern.permute.xlu1 %v6499_v2  ;;  %v781_v57 = vpop.xlane.xlu1 %780  ;;  %v778_v48 = vpop.xlane.xlu0 %777 }
 0x249   : > { %v791_v50 = vadd.f32 %v790_v0, %v778_v48 }
 0x24b   : > { %v792_v37 = vadd.f32 %v791_v50, %v781_v57 }
 0x24c   : > { %v838_v30 = vpop.permute.xlu1 %837  ;;  %v784_v31 = vpop.xlane.xlu0 %783 }
 0x24d   : > { %v793_v54 = vadd.f32 %v792_v37, %v784_v31 }
 0x250   : > { %v882_v42 = vpop.permute.xlu1 %881 }
 0x254   : > { %v842_v14 = vpop.permute.xlu0 %841 }
 0x255   : > { %v834_v32 = vpop.permute.xlu1 %833 }
 0x258   : > { %v822_v47 = vpop.permute.xlu0 %821 }
 0x25a   : > { %v878_v44 = vpop.permute.xlu1 %877 }
 0x25c   : > { %v818_v38 = vpop.permute.xlu0 %817 }
 0x25f   : > { %v830_v51 = vpop.permute.xlu1 %829 }
 0x291   : > { %v787_v33 = vpop.xlane.xlu1 %786 }
 0x292   : > { %v794_v56 = vadd.f32 %v793_v54, %v787_v33 }
 0x294   : > { %v795_v35 = vrot.slane %v794_v56, 4 }
 0x295   : > { %v874_v61 = vpop.permute.xlu1 %873 }
 0x296   : > { %v796_v6 = vadd.f32 %v795_v35, %v794_v56  ;;  %v901_v56 = vld [vmem:[%s6486_s2 + $0x8] sm:$0xff]  ;;  %v902_v35 = vld [vmem:[%s6486_s2 + $0x10] sm:$0xff] }
 0x298   : > { %v797_v58 = vrot.slane %v796_v6, 2 }
 0x299   : > { %v826_v9 = vpop.permute.xlu1 %825 }
 0x29a   : > { %v798_v59 = vadd.f32 %v797_v58, %v796_v6  ;;  %v903_v6 = vld [vmem:[%s6486_s2 + $0x18] sm:$0xff]  ;;  %v904_v58 = vld [vmem:[%s6486_s2 + $0x20] sm:$0xff] }
 0x29c   : > { %v799_v60 = vrot.slane %v798_v59, 1 }
 0x29e   : > { %v800_v24 = vadd.f32 %v799_v60, %v798_v59  ;;  %v870_v18 = vpop.permute.xlu1 %869  ;;  %v905_v59 = vld [vmem:[%s6486_s2 + $0x28] sm:$0xff]  ;;  %v906_v60 = vld [vmem:[%s6486_s2 + $0x30] sm:$0xff] }
 0x2a0   : > { %v801_v63 = vmul.f32 0.00024414063, %v800_v24  ;;  %v907_v24 = vld [vmem:[%s6486_s2 + $0x38] sm:$0xff] }
 0x2a2   : > { %v802_v55 = vadd.f32 1e-05, %v801_v63  ;;  %v866_v3 = vpop.permute.xlu1 %865 }
 0x2a4   : > { %4124 = vrsqrt.f32 %v802_v55 }
 0x2a6   : > { %v862_v57 = vpop.permute.xlu1 %861 }
 0x2b1   : > { %v4125_v45 = vpop.eup %4124 }
 0x2b2   : > { %v809_v20 = vmul.f32 %v4125_v45, %v4486_v49  ;;  %v811_v4 = vmul.f32 %v4125_v45, %v4527_v28  ;;  %v808_v36 = vmul.f32 %v4125_v45, %v4488_v27  ;;  %v810_v39 = vmul.f32 %v4125_v45, %v4496_v13  ;;  %v814_v27 = vpop.permute.xlu0 %813 }
 0x2b3   : > { %v807_v29 = vmul.f32 %v4125_v45, %v4477_v5  ;;  %v806_v11 = vmul.f32 %v4125_v45, %v4480_v34  ;;  %v805_v28 = vmul.f32 %v4125_v45, %v4471_v62  ;;  %v804_v13 = vmul.f32 %v4125_v45, %v4474_v52  ;;  %v858_v34 = vpop.permute.xlu1 %857 }
 0x2b4   : > { %v849_v19 = vmul.f32 %v834_v32, %v809_v20  ;;  %v851_v15 = vmul.f32 %v842_v14, %v811_v4  ;;  %v850_v46 = vmul.f32 %v838_v30, %v810_v39  ;;  %v848_v16 = vmul.f32 %v830_v51, %v808_v36 }
 0x2b5   : > { %v847_v49 = vmul.f32 %v826_v9, %v807_v29  ;;  %v846_v0 = vmul.f32 %v822_v47, %v806_v11  ;;  %v845_v48 = vmul.f32 %v818_v38, %v805_v28  ;;  %v844_v50 = vmul.f32 %v814_v27, %v804_v13 }
 0x2b6   : > { %v891_v41 = vadd.f32 %v882_v42, %v851_v15  ;;  %v890_v21 = vadd.f32 %v878_v44, %v850_v46  ;;  %v889_v23 = vadd.f32 %v874_v61, %v849_v19  ;;  %v888_v43 = vadd.f32 %v870_v18, %v848_v16  ;;  %v854_v62 = vpop.permute.xlu0 %853 }
 0x2b7   : > { %v887_v32 = vadd.f32 %v866_v3, %v847_v49  ;;  %v886_v44 = vadd.f32 %v862_v57, %v846_v0  ;;  %v885_v31 = vadd.f32 %v858_v34, %v845_v48  ;;  %v884_v51 = vadd.f32 %v854_v62, %v844_v50  ;;  %v919_v61 = vpop.permute.xlu1 %918 }
 0x2b8   : > { %v899_v40 = vmax.f32 %v891_v41, 0.0  ;;  %v898_v5 = vmax.f32 %v890_v21, 0.0  ;;  %v897_v30 = vmax.f32 %v889_v23, 0.0  ;;  %v896_v42 = vmax.f32 %v888_v43, 0.0 }
 0x2b9   : > { %v895_v37 = vmax.f32 %v887_v32, 0.0  ;;  %v894_v52 = vmax.f32 %v886_v44, 0.0  ;;  %v893_v54 = vmax.f32 %v885_v31, 0.0  ;;  %v892_v33 = vmax.f32 %v884_v51, 0.0 }
 0x2ba   : > { %3819 = vmatprep.subr.mxu0 %v899_v40  ;;  %v929_v55 = vpop.permute.xlu0 %928 }
 0x2bb   : > { %3820 = vmatpush3.msra.mxu0 %v899_v40  ;;  %v924_v63 = vpop.permute.xlu1 %923 }
 0x2bc   : > { %3821 = vmatprep.subr.mxu0 %v898_v5 }
 0x2bd   : > { %3822 = vmatpush3.msra.mxu0 %v898_v5 }
 0x2be   : > { %3823 = vmatprep.subr.mxu0 %v897_v30  ;;  %v944_v38 = vpop.permute.xlu0 %943 }
 0x2bf   : > { %3824 = vmatpush3.msra.mxu0 %v897_v30  ;;  %v934_v18 = vpop.permute.xlu1 %933 }
 0x2c0   : > { %3825 = vmatprep.subr.mxu0 %v896_v42 }
 0x2c1   : > { %3826 = vmatpush3.msra.mxu0 %v896_v42 }
 0x2c2   : > { %3827 = vmatprep.subr.mxu0 %v895_v37  ;;  %v954_v21 = vpop.permute.xlu0 %953 }
 0x2c3   : > { %3828 = vmatpush3.msra.mxu0 %v895_v37  ;;  %v939_v29 = vpop.permute.xlu1 %938 }
 0x2c4   : > { %3829 = vmatprep.subr.mxu0 %v894_v52 }
 0x2c5   : > { %3830 = vmatpush3.msra.mxu0 %v894_v52 }
 0x2c6   : > { %3831 = vmatprep.subr.mxu0 %v893_v54 }
 0x2c7   : > { %3832 = vmatpush3.msra.mxu0 %v893_v54  ;;  %v949_v27 = vpop.permute.xlu1 %948 }
 0x2c8   : > { %3833 = vmatprep.subr.mxu0 %v892_v33 }
 0x2c9   : > { %3834 = vmatpush3.msra.mxu0 %v892_v33 }
 0x2ca   : > { %3836 = vmatmul.mubr.msk.f32.vlgmr.msra.gmra.mxu0 %vm709_vm0, %v901_v56 }
 0x2cb   : > { %3838 = vmatprep.mubr.msk.f32.mxu0 %vm709_vm0, %v902_v35 }
 0x2ce   : > { %3839 = vmatmul.mubr.msk.f32.gmra.mxu0 %vm709_vm0, %v903_v6 }
 0x2cf   : > { %3841 = vmatprep.mubr.msk.f32.mxu0 %vm709_vm0, %v904_v58 }
 0x2d2   : > { %3842 = vmatmul.mubr.msk.f32.gmra.mxu0 %vm709_vm0, %v905_v59 }
 0x2d3   : > { %3844 = vmatprep.mubr.msk.f32.mxu0 %vm709_vm0, %v906_v60 }
 0x2d6   : > { %3845 = vmatmul.mubr.msk.f32.gmra.mxu0 %vm709_vm0, %v907_v24 }
 0x38a   : > { %v3837_v9 = vpop.f32.mrf.mxu0 }
 0x38b   : > { %v1052_v14 = vadd.f32 %v3837_v9, %v924_v63 }
 0x38c   : > { %v1046_v47 = vpop.f32.mrf.mxu0 }
 0x38d   : > { %v1047_v45 = vadd.f32 %v1046_v47, %v919_v61  ;;  %v1088_v3 = vsel %vm709_vm0, %v1052_v14, 0.0 }
 0x38e   : > { %1089 = vadd.xlane.f32.xlu0 %v1088_v3  ;;  %v3840_v20 = vpop.f32.mrf.mxu0 }
 0x38f   : > { %v1062_v4 = vadd.f32 %v3840_v20, %v934_v18  ;;  %v1085_v36 = vsel %vm709_vm0, %v1047_v45, 0.0 }
 0x390   : > { %v1056_v39 = vpop.f32.mrf.mxu0  ;;  %1086 = vadd.xlane.f32.xlu1 %v1085_v36 }
 0x391   : > { %v1057_v19 = vadd.f32 %v1056_v39, %v929_v55  ;;  %v1094_v16 = vsel %vm709_vm0, %v1062_v4, 0.0 }
 0x392   : > { %v3843_v15 = vpop.f32.mrf.mxu0 }
 0x393   : > { %v1072_v46 = vadd.f32 %v3843_v15, %v944_v38  ;;  %v1091_v11 = vsel %vm709_vm0, %v1057_v19, 0.0 }
 0x394   : > { %v1066_v41 = vpop.f32.mrf.mxu0  ;;  %1095 = vadd.xlane.f32.xlu1 %v1094_v16  ;;  %1092 = vadd.xlane.f32.xlu0 %v1091_v11 }
 0x395   : > { %v1067_v57 = vadd.f32 %v1066_v41, %v939_v29  ;;  %v1100_v40 = vsel %vm709_vm0, %v1072_v46, 0.0 }
 0x396   : > { %v3846_v23 = vpop.f32.mrf.mxu0 }
 0x397   : > { %v4635_v49 = vadd.f32 %v3846_v23, %v954_v21  ;;  %v1097_v28 = vsel %vm709_vm0, %v1067_v57, 0.0  ;;  %v4749_v23 = vld [vmem:[%s6492_s8 + $0x30] sm:$0xff] }
 0x398   : > { %v1076_v43 = vpop.f32.mrf.mxu0  ;;  %1098 = vadd.xlane.f32.xlu0 %v1097_v28  ;;  %1101 = vadd.xlane.f32.xlu1 %v1100_v40  ;;  %v4762_v40 = vld [vmem:[%s6492_s8 + $0x38] sm:$0xff] }
 0x399   : > { %v1077_v0 = vadd.f32 %v1076_v43, %v949_v27  ;;  %v1106_v5 = vsel %vm709_vm0, %v4635_v49, 0.0 }
 0x39b   : > { %v1103_v13 = vsel %vm709_vm0, %v1077_v0, 0.0 }
 0x39c   : > { %1104 = vadd.xlane.f32.xlu0 %v1103_v13  ;;  %1107 = vadd.xlane.f32.xlu1 %v1106_v5 }
 0x417   : > { %v1090_v30 = vpop.xlane.xlu0 %1089 }
 0x419   : > { %v1087_v32 = vpop.xlane.xlu1 %1086 }
 0x41a   : > { %v1109_v48 = vadd.f32 %v1090_v30, %v1087_v32 }
 0x41d   : > { %v1096_v34 = vpop.xlane.xlu1 %1095  ;;  %v1093_v42 = vpop.xlane.xlu0 %1092 }
 0x41e   : > { %v1110_v44 = vadd.f32 %v1109_v48, %v1093_v42 }
 0x420   : > { %v1111_v50 = vadd.f32 %v1110_v44, %v1096_v34 }
 0x421   : > { %v1102_v62 = vpop.xlane.xlu1 %1101  ;;  %v1099_v37 = vpop.xlane.xlu0 %1098 }
 0x422   : > { %v1112_v31 = vadd.f32 %v1111_v50, %v1099_v37 }
 0x424   : > { %v1113_v52 = vadd.f32 %v1112_v31, %v1102_v62 }
 0x425   : > { %v1105_v51 = vpop.xlane.xlu0 %1104  ;;  %v1108_v33 = vpop.xlane.xlu1 %1107 }
 0x426   : > { %v1114_v54 = vadd.f32 %v1113_v52, %v1105_v51 }
 0x428   : > { %v1115_v56 = vadd.f32 %v1114_v54, %v1108_v33 }
 0x42a   : > { %v1116_v35 = vrot.slane %v1115_v56, 4 }
 0x42c   : > { %v1117_v6 = vadd.f32 %v1116_v35, %v1115_v56 }
 0x42e   : > { %v1118_v58 = vrot.slane %v1117_v6, 2 }
 0x430   : > { %v1119_v59 = vadd.f32 %v1118_v58, %v1117_v6 }
 0x432   : > { %v1120_v60 = vrot.slane %v1119_v59, 1 }
 0x434   : > { %v1121_v24 = vadd.f32 %v1120_v60, %v1119_v59 }
 0x436   : > { %v1122_v61 = vmul.f32 0.00024414063, %v1121_v24 }
 0x438   : > { %v4642_v63 = vsub.f32 %v1052_v14, %v1122_v61  ;;  %v4644_v55 = vsub.f32 %v1047_v45, %v1122_v61  ;;  %v4646_v9 = vsub.f32 %v1062_v4, %v1122_v61  ;;  %v4648_v18 = vsub.f32 %v1057_v19, %v1122_v61 }
 0x439   : > { %v4654_v20 = vsub.f32 %v1072_v46, %v1122_v61  ;;  %v4656_v36 = vsub.f32 %v1067_v57, %v1122_v61  ;;  %v4664_v39 = vsub.f32 %v1077_v0, %v1122_v61 }
 0x43a   : > { %v1132_v47 = vmul.f32 %v4642_v63, %v4642_v63  ;;  %v1131_v3 = vmul.f32 %v4644_v55, %v4644_v55  ;;  %v1134_v45 = vmul.f32 %v4646_v9, %v4646_v9  ;;  %v1133_v4 = vmul.f32 %v4648_v18, %v4648_v18 }
 0x43b   : > { %v1136_v15 = vmul.f32 %v4654_v20, %v4654_v20  ;;  %v1135_v46 = vmul.f32 %v4656_v36, %v4656_v36  ;;  %v1137_v41 = vmul.f32 %v4664_v39, %v4664_v39 }
 0x43c   : > { %v1142_v38 = vsel %vm709_vm0, %v1132_v47, 0.0  ;;  %v1139_v14 = vsel %vm709_vm0, %v1131_v3, 0.0  ;;  %v1148_v19 = vsel %vm709_vm0, %v1134_v45, 0.0  ;;  %v1145_v29 = vsel %vm709_vm0, %v1133_v4, 0.0 }
 0x43d   : > { %1143 = vadd.xlane.f32.xlu1 %v1142_v38  ;;  %1140 = vadd.xlane.f32.xlu0 %v1139_v14  ;;  %v1154_v16 = vsel %vm709_vm0, %v1136_v15, 0.0  ;;  %v1151_v11 = vsel %vm709_vm0, %v1135_v46, 0.0  ;;  %v1157_v57 = vsel %vm709_vm0, %v1137_v41, 0.0 }
 0x441   : > { %1149 = vadd.xlane.f32.xlu1 %v1148_v19  ;;  %1146 = vadd.xlane.f32.xlu0 %v1145_v29 }
 0x445   : > { %1155 = vadd.xlane.f32.xlu1 %v1154_v16  ;;  %1152 = vadd.xlane.f32.xlu0 %v1151_v11 }
 0x449   : > { %1158 = vadd.xlane.f32.xlu0 %v1157_v57 }
 0x456   : > { %1212 = vperm.xlu1 %4084, %v4590_v26  }
 0x45a   : > { %4085 = vset.pattern.permute.xlu1 %v6496_v7 }
 0x45b   : > { %1256 = vperm.xlu1 %4085, %v4577_v1  }
 0x45f   : > { %4086 = vset.pattern.permute.xlu1 %v6499_v2  ;;  %1216 = vperm.xlu0 %4083, %v4577_v1   ;;  %v4696_v1 = vsub.f32 %v4635_v49, %v1122_v61  ;;  %v4755_v49 = vld [vmem:[%s6492_s8 + $0x28] sm:$0xff] }
 0x460   : > { %1208 = vperm.xlu1 %4086, %v4565_v17  }
 0x463   : > { %4091 = vset.pattern.permute.xlu0 %v6496_v7 }
 0x464   : > { %4087 = vset.pattern.permute.xlu1 %v6496_v7  ;;  %1244 = vperm.xlu0 %4091, %v4583_v53  }
 0x465   : > { %1252 = vperm.xlu1 %4087, %v4590_v26   ;;  %v1138_v26 = vmul.f32 %v4696_v1, %v4696_v1 }
 0x467   : > { %v1160_v21 = vsel %vm709_vm0, %v1138_v26, 0.0 }
 0x468   : > { %4093 = vset.pattern.permute.xlu0 %v6499_v2 }
 0x469   : > { %4088 = vset.pattern.permute.xlu1 %v6499_v2  ;;  %1192 = vperm.xlu0 %4093, %v4559_v10  }
 0x46a   : > { %1204 = vperm.xlu1 %4088, %v4583_v53   ;;  %v4743_v53 = vld [vmem:[%s6492_s8 + $0x18] sm:$0xff] }
 0x46d   : > { %4095 = vset.pattern.permute.xlu0 %v6496_v7 }
 0x46e   : > { %4089 = vset.pattern.permute.xlu1 %v6496_v7  ;;  %1232 = vperm.xlu0 %4095, %v4559_v10   ;;  %v1275_v10 = vld [vmem:[%s6487_s3] sm:$0xff] }
 0x46f   : > { %3863 = vmatprep.mubr.msk.f32.mxu1 %vm709_vm0, %v1275_v10 }
 0x472   : > { %4098 = vset.pattern.permute.xlu0 %v4164_v8 }
 0x48e   : > { %1161 = vadd.xlane.f32.xlu1 %v1160_v21 }
 0x49f   : > { %1248 = vperm.xlu1 %4089, %v4565_v17   ;;  %v4726_v17 = vld [vmem:[%s6492_s8 + $0x8] sm:$0xff] }
 0x4a0   : > { %1298 = vperm.xlu0 %4098, %v4726_v17  }
 0x4a3   : > { %4090 = vset.pattern.permute.xlu1 %v6499_v2 }
 0x4a4   : > { %1200 = vperm.xlu1 %4090, %v4571_v22  }
 0x4a8   : > { %1196 = vperm.xlu1 %4090, %v4554_v12  }
 0x4ac   : > { %4092 = vset.pattern.permute.xlu1 %v6496_v7 }
 0x4ad   : > { %1240 = vperm.xlu1 %4092, %v4571_v22   ;;  %v4737_v22 = vld [vmem:[%s6492_s8 + $0x20] sm:$0xff] }
 0x4ae   : > { %1313 = vperm.xlu0 %4098, %v4737_v22  }
 0x4b1   : > { %1236 = vperm.xlu1 %4092, %v4554_v12   ;;  %v4720_v12 = vld [vmem:[%s6492_s8] sm:$0xff] }
 0x4b2   : > { %1323 = vperm.xlu0 %4098, %v4749_v23  }
 0x4b5   : > { %4094 = vset.pattern.permute.xlu1 %v6499_v2 }
 0x4b6   : > { %1188 = vperm.xlu1 %4094, %v4548_v25   ;;  %4100 = vset.pattern.permute.xlu0 %v6499_v2 }
 0x4ba   : > { %4096 = vset.pattern.permute.xlu1 %v6496_v7 }
 0x4bb   : > { %1228 = vperm.xlu1 %4096, %v4548_v25   ;;  %v4731_v25 = vld [vmem:[%s6492_s8 + $0x10] sm:$0xff] }
 0x4bf   : > { %4097 = vset.pattern.permute.xlu1 %v4164_v8 }
 0x4c0   : > { %1293 = vperm.xlu1 %4097, %v4720_v12  }
 0x4c4   : > { %1303 = vperm.xlu1 %4097, %v4731_v25  }
 0x4c6   : > { %v1144_v28 = vpop.xlane.xlu1 %1143  ;;  %v1141_v13 = vpop.xlane.xlu0 %1140 }
 0x4c7   : > { %v1163_v32 = vadd.f32 %v1144_v28, %v1141_v13 }
 0x4c8   : > { %1308 = vperm.xlu1 %4097, %v4743_v53  }
 0x4ca   : > { %v1150_v27 = vpop.xlane.xlu1 %1149  ;;  %v1147_v30 = vpop.xlane.xlu0 %1146 }
 0x4cb   : > { %v1164_v48 = vadd.f32 %v1163_v32, %v1147_v30 }
 0x4cc   : > { %1318 = vperm.xlu1 %4097, %v4755_v49  }
 0x4cd   : > { %v1165_v42 = vadd.f32 %v1164_v48, %v1150_v27 }
 0x4ce   : > { %v1156_v43 = vpop.xlane.xlu1 %1155  ;;  %v1153_v44 = vpop.xlane.xlu0 %1152 }
 0x4cf   : > { %v1166_v62 = vadd.f32 %v1165_v42, %v1153_v44 }
 0x4d0   : > { %1328 = vperm.xlu1 %4097, %v4762_v40  }
 0x4d1   : > { %v1167_v37 = vadd.f32 %v1166_v62, %v1156_v43 }
 0x4d2   : > { %v1213_v0 = vpop.permute.xlu1 %1212  ;;  %v1159_v31 = vpop.xlane.xlu0 %1158 }
 0x4d3   : > { %v1168_v51 = vadd.f32 %v1167_v37, %v1159_v31 }
 0x4d4   : > { %4099 = vset.pattern.permute.xlu1 %v6499_v2 }
 0x4d6   : > { %v1257_v5 = vpop.permute.xlu1 %1256 }
 0x4da   : > { %v1217_v14 = vpop.permute.xlu0 %1216 }
 0x4db   : > { %v1209_v34 = vpop.permute.xlu1 %1208 }
 0x4df   : > { %v1245_v19 = vpop.permute.xlu0 %1244 }
 0x4e0   : > { %v1253_v50 = vpop.permute.xlu1 %1252 }
 0x4e4   : > { %v1193_v43 = vpop.permute.xlu0 %1192 }
 0x4e5   : > { %v1205_v52 = vpop.permute.xlu1 %1204 }
 0x517   : > { %v1162_v54 = vpop.xlane.xlu1 %1161 }
 0x518   : > { %v1169_v33 = vadd.f32 %v1168_v51, %v1162_v54 }
 0x51a   : > { %v1170_v56 = vrot.slane %v1169_v33, 4 }
 0x51b   : > { %v1249_v59 = vpop.permute.xlu1 %1248 }
 0x51c   : > { %v1171_v35 = vadd.f32 %v1170_v56, %v1169_v33  ;;  %v1276_v33 = vld [vmem:[%s6487_s3 + $0x8] sm:$0xff]  ;;  %v1277_v56 = vld [vmem:[%s6487_s3 + $0x10] sm:$0xff] }
 0x51e   : > { %v1172_v6 = vrot.slane %v1171_v35, 2 }
 0x51f   : > { %v1201_v47 = vpop.permute.xlu1 %1200 }
 0x520   : > { %v1173_v58 = vadd.f32 %v1172_v6, %v1171_v35  ;;  %v1278_v35 = vld [vmem:[%s6487_s3 + $0x18] sm:$0xff]  ;;  %v1279_v6 = vld [vmem:[%s6487_s3 + $0x20] sm:$0xff] }
 0x522   : > { %v1174_v60 = vrot.slane %v1173_v58, 1 }
 0x523   : > { %v1197_v38 = vpop.permute.xlu1 %1196 }
 0x524   : > { %v1175_v24 = vadd.f32 %v1174_v60, %v1173_v58  ;;  %v1280_v58 = vld [vmem:[%s6487_s3 + $0x28] sm:$0xff]  ;;  %v1282_v60 = vld [vmem:[%s6487_s3 + $0x38] sm:$0xff] }
 0x526   : > { %v1176_v61 = vmul.f32 0.00024414063, %v1175_v24 }
 0x528   : > { %v1177_v3 = vadd.f32 1e-05, %v1176_v61  ;;  %v1241_v45 = vpop.permute.xlu1 %1240 }
 0x52a   : > { %4126 = vrsqrt.f32 %v1177_v3 }
 0x52c   : > { %v1237_v46 = vpop.permute.xlu1 %1236 }
 0x531   : > { %v1189_v48 = vpop.permute.xlu1 %1188 }
 0x537   : > { %v4127_v4 = vpop.eup %4126 }
 0x538   : > { %v1184_v29 = vmul.f32 %v4127_v4, %v4654_v20  ;;  %v1186_v15 = vmul.f32 %v4127_v4, %v4696_v1  ;;  %v1183_v16 = vmul.f32 %v4127_v4, %v4656_v36  ;;  %v1185_v11 = vmul.f32 %v4127_v4, %v4664_v39 }
 0x539   : > { %v1182_v57 = vmul.f32 %v4127_v4, %v4646_v9  ;;  %v1181_v10 = vmul.f32 %v4127_v4, %v4648_v18  ;;  %v1180_v1 = vmul.f32 %v4127_v4, %v4642_v63  ;;  %v1179_v39 = vmul.f32 %v4127_v4, %v4644_v55  ;;  %v1229_v63 = vpop.permute.xlu1 %1228 }
 0x53a   : > { %v1224_v41 = vmul.f32 %v1209_v34, %v1184_v29  ;;  %v1226_v26 = vmul.f32 %v1217_v14, %v1186_v15  ;;  %v1225_v21 = vmul.f32 %v1213_v0, %v1185_v11  ;;  %v1223_v28 = vmul.f32 %v1205_v52, %v1183_v16 }
 0x53b   : > { %v1222_v20 = vmul.f32 %v1201_v47, %v1182_v57  ;;  %v1221_v36 = vmul.f32 %v1197_v38, %v1181_v10  ;;  %v1220_v18 = vmul.f32 %v1193_v43, %v1180_v1  ;;  %v1219_v62 = vmul.f32 %v1189_v48, %v1179_v39 }
 0x53c   : > { %v1266_v27 = vadd.f32 %v1257_v5, %v1226_v26  ;;  %v1265_v13 = vadd.f32 %v1253_v50, %v1225_v21  ;;  %v1264_v30 = vadd.f32 %v1249_v59, %v1224_v41  ;;  %v1263_v42 = vadd.f32 %v1245_v19, %v1223_v28  ;;  %v1233_v5 = vpop.permute.xlu0 %1232  ;;  %v1281_v59 = vld [vmem:[%s6487_s3 + $0x30] sm:$0xff] }
 0x53d   : > { %v1262_v34 = vadd.f32 %v1241_v45, %v1222_v20  ;;  %v1261_v44 = vadd.f32 %v1237_v46, %v1221_v36  ;;  %v1260_v31 = vadd.f32 %v1233_v5, %v1220_v18  ;;  %v1259_v52 = vadd.f32 %v1229_v63, %v1219_v62  ;;  %v1294_v24 = vpop.permute.xlu1 %1293 }
 0x53e   : > { %v1274_v32 = vmax.f32 %v1266_v27, 0.0  ;;  %v1273_v9 = vmax.f32 %v1265_v13, 0.0  ;;  %v1272_v0 = vmax.f32 %v1264_v30, 0.0  ;;  %v1271_v50 = vmax.f32 %v1263_v42, 0.0 }
 0x53f   : > { %v1270_v37 = vmax.f32 %v1262_v34, 0.0  ;;  %v1269_v55 = vmax.f32 %v1261_v44, 0.0  ;;  %v1268_v51 = vmax.f32 %v1260_v31, 0.0  ;;  %v1267_v54 = vmax.f32 %v1259_v52, 0.0 }
 0x540   : > { %3847 = vmatprep.subr.mxu1 %v1274_v32  ;;  %v1299_v47 = vpop.permute.xlu0 %1298 }
 0x541   : > { %3848 = vmatpush3.msra.mxu1 %v1274_v32  ;;  %v1304_v61 = vpop.permute.xlu1 %1303 }
 0x542   : > { %3849 = vmatprep.subr.mxu1 %v1273_v9 }
 0x543   : > { %3850 = vmatpush3.msra.mxu1 %v1273_v9 }
 0x544   : > { %3851 = vmatprep.subr.mxu1 %v1272_v0  ;;  %v1314_v11 = vpop.permute.xlu0 %1313 }
 0x545   : > { %3852 = vmatpush3.msra.mxu1 %v1272_v0  ;;  %v1309_v19 = vpop.permute.xlu1 %1308 }
 0x546   : > { %3853 = vmatprep.subr.mxu1 %v1271_v50 }
 0x547   : > { %3854 = vmatpush3.msra.mxu1 %v1271_v50 }
 0x548   : > { %3855 = vmatprep.subr.mxu1 %v1270_v37  ;;  %v1324_v20 = vpop.permute.xlu0 %1323 }
 0x549   : > { %3856 = vmatpush3.msra.mxu1 %v1270_v37  ;;  %v1319_v21 = vpop.permute.xlu1 %1318 }
 0x54a   : > { %3857 = vmatprep.subr.mxu1 %v1269_v55 }
 0x54b   : > { %3858 = vmatpush3.msra.mxu1 %v1269_v55 }
 0x54c   : > { %3859 = vmatprep.subr.mxu1 %v1268_v51 }
 0x54d   : > { %3860 = vmatpush3.msra.mxu1 %v1268_v51  ;;  %v1329_v48 = vpop.permute.xlu1 %1328 }
 0x54e   : > { %3861 = vmatprep.subr.mxu1 %v1267_v54 }
 0x54f   : > { %3862 = vmatpush3.msra.mxu1 %v1267_v54 }
 0x550   : > { %3864 = vmatmul.mubr.msk.f32.vlgmr.msra.gmra.mxu1 %vm709_vm0, %v1276_v33 }
 0x551   : > { %3866 = vmatprep.mubr.msk.f32.mxu1 %vm709_vm0, %v1277_v56 }
 0x554   : > { %3867 = vmatmul.mubr.msk.f32.gmra.mxu1 %vm709_vm0, %v1278_v35 }
 0x555   : > { %3869 = vmatprep.mubr.msk.f32.mxu1 %vm709_vm0, %v1279_v6 }
 0x558   : > { %3870 = vmatmul.mubr.msk.f32.gmra.mxu1 %vm709_vm0, %v1280_v58 }
 0x559   : > { %3872 = vmatprep.mubr.msk.f32.mxu1 %vm709_vm0, %v1281_v59 }
 0x55c   : > { %3873 = vmatmul.mubr.msk.f32.gmra.mxu1 %vm709_vm0, %v1282_v60 }
 0x610   : > { %v3865_v3 = vpop.f32.mrf.mxu1 }
 0x611   : > { %v1427_v38 = vadd.f32 %v3865_v3, %v1299_v47 }
 0x612   : > { %v1421_v14 = vpop.f32.mrf.mxu1 }
 0x613   : > { %v1422_v45 = vadd.f32 %v1421_v14, %v1294_v24  ;;  %v1463_v4 = vsel %vm709_vm0, %v1427_v38, 0.0 }
 0x614   : > { %v3868_v29 = vpop.f32.mrf.mxu1  ;;  %1464 = vadd.xlane.f32.xlu1 %v1463_v4 }
 0x615   : > { %v1460_v15 = vsel %vm709_vm0, %v1422_v45, 0.0  ;;  %v1437_v57 = vadd.f32 %v3868_v29, %v1309_v19 }
 0x616   : > { %v1431_v46 = vpop.f32.mrf.mxu1  ;;  %1461 = vadd.xlane.f32.xlu0 %v1460_v15 }
 0x617   : > { %v1432_v16 = vadd.f32 %v1431_v46, %v1304_v61  ;;  %v1469_v13 = vsel %vm709_vm0, %v1437_v57, 0.0 }
 0x618   : > { %v3871_v41 = vpop.f32.mrf.mxu1 }
 0x619   : > { %v1466_v26 = vsel %vm709_vm0, %v1432_v16, 0.0  ;;  %v1447_v43 = vadd.f32 %v3871_v41, %v1319_v21 }
 0x61a   : > { %v1441_v10 = vpop.f32.mrf.mxu1  ;;  %1467 = vadd.xlane.f32.xlu0 %v1466_v26 }
 0x61b   : > { %v1442_v28 = vadd.f32 %v1441_v10, %v1314_v11  ;;  %v1475_v42 = vsel %vm709_vm0, %v1447_v43, 0.0 }
 0x61c   : > { %v3874_v27 = vpop.f32.mrf.mxu1 }
 0x61d   : > { %v1472_v30 = vsel %vm709_vm0, %v1442_v28, 0.0  ;;  %v1457_v36 = vadd.f32 %v3874_v27, %v1329_v48  ;;  %v4940_v48 = vld [vmem:[%s6493_s9 + $0x48] sm:$0xff] }
 0x61e   : > { %v1451_v1 = vpop.f32.mrf.mxu1  ;;  %1470 = vadd.xlane.f32.xlu0 %v1469_v13  ;;  %1473 = vadd.xlane.f32.xlu1 %v1472_v30 }
 0x61f   : > { %v1452_v32 = vadd.f32 %v1451_v1, %v1324_v20  ;;  %v1481_v9 = vsel %vm709_vm0, %v1457_v36, 0.0  ;;  %v4928_v1 = vld [vmem:[%s6493_s9 + $0x38] sm:$0xff] }
 0x621   : > { %v1478_v39 = vsel %vm709_vm0, %v1452_v32, 0.0 }
 0x622   : > { %1476 = vadd.xlane.f32.xlu0 %v1475_v42  ;;  %1479 = vadd.xlane.f32.xlu1 %v1478_v39  ;;  %v4952_v42 = vld [vmem:[%s6493_s9 + $0x58] sm:$0xff] }
 0x626   : > { %1482 = vadd.xlane.f32.xlu0 %v1481_v9 }
 0x69d   : > { %v1465_v34 = vpop.xlane.xlu1 %1464 }
 0x69f   : > { %v1462_v0 = vpop.xlane.xlu0 %1461 }
 0x6a0   : > { %v1484_v5 = vadd.f32 %v1465_v34, %v1462_v0  ;;  %v4959_v0 = vld [vmem:[%s6493_s9 + $0x60] sm:$0xff]  ;;  %v4964_v34 = vld [vmem:[%s6493_s9 + $0x68] sm:$0xff] }
 0x6a3   : > { %v1468_v18 = vpop.xlane.xlu0 %1467 }
 0x6a4   : > { %v1485_v44 = vadd.f32 %v1484_v5, %v1468_v18 }
 0x6a7   : > { %v1474_v50 = vpop.xlane.xlu1 %1473  ;;  %v1471_v62 = vpop.xlane.xlu0 %1470 }
 0x6a8   : > { %v1486_v63 = vadd.f32 %v1485_v44, %v1471_v62  ;;  %v4971_v62 = vld [vmem:[%s6493_s9 + $0x70] sm:$0xff] }
 0x6aa   : > { %v1487_v37 = vadd.f32 %v1486_v63, %v1474_v50  ;;  %v4976_v63 = vld [vmem:[%s6493_s9 + $0x78] sm:$0xff] }
 0x6ab   : > { %v1477_v31 = vpop.xlane.xlu0 %1476  ;;  %v1480_v52 = vpop.xlane.xlu1 %1479 }
 0x6ac   : > { %v1488_v55 = vadd.f32 %v1487_v37, %v1477_v31 }
 0x6ae   : > { %v1489_v51 = vadd.f32 %v1488_v55, %v1480_v52 }
 0x6af   : > { %v1483_v54 = vpop.xlane.xlu0 %1482 }
 0x6b0   : > { %v1490_v33 = vadd.f32 %v1489_v51, %v1483_v54 }
 0x6b2   : > { %v1491_v56 = vrot.slane %v1490_v33, 4 }
 0x6b4   : > { %v1492_v35 = vadd.f32 %v1491_v56, %v1490_v33 }
 0x6b6   : > { %v1493_v6 = vrot.slane %v1492_v35, 2 }
 0x6b8   : > { %v1494_v58 = vadd.f32 %v1493_v6, %v1492_v35 }
 0x6ba   : > { %v1495_v59 = vrot.slane %v1494_v58, 1 }
 0x6bc   : > { %v1496_v60 = vadd.f32 %v1495_v59, %v1494_v58 }
 0x6be   : > { %v1497_v24 = vmul.f32 0.00024414063, %v1496_v60 }
 0x6c0   : > { %v4811_v61 = vsub.f32 %v1427_v38, %v1497_v24  ;;  %v4813_v47 = vsub.f32 %v1422_v45, %v1497_v24  ;;  %v4815_v3 = vsub.f32 %v1437_v57, %v1497_v24  ;;  %v4817_v14 = vsub.f32 %v1432_v16, %v1497_v24 }
 0x6c1   : > { %v4823_v29 = vsub.f32 %v1447_v43, %v1497_v24  ;;  %v4825_v15 = vsub.f32 %v1442_v28, %v1497_v24  ;;  %v4833_v11 = vsub.f32 %v1457_v36, %v1497_v24  ;;  %v4835_v41 = vsub.f32 %v1452_v32, %v1497_v24  ;;  %v4935_v32 = vld [vmem:[%s6493_s9 + $0x40] sm:$0xff]  ;;  %v4947_v36 = vld [vmem:[%s6493_s9 + $0x50] sm:$0xff] }
 0x6c2   : > { %v1507_v4 = vmul.f32 %v4811_v61, %v4811_v61  ;;  %v1506_v19 = vmul.f32 %v4813_v47, %v4813_v47  ;;  %v1509_v45 = vmul.f32 %v4815_v3, %v4815_v3  ;;  %v1508_v16 = vmul.f32 %v4817_v14, %v4817_v14 }
 0x6c3   : > { %v1511_v21 = vmul.f32 %v4823_v29, %v4823_v29  ;;  %v1510_v10 = vmul.f32 %v4825_v15, %v4825_v15  ;;  %v1513_v43 = vmul.f32 %v4833_v11, %v4833_v11  ;;  %v1512_v13 = vmul.f32 %v4835_v41, %v4835_v41 }
 0x6c4   : > { %v1517_v46 = vsel %vm709_vm0, %v1507_v4, 0.0  ;;  %v1514_v38 = vsel %vm709_vm0, %v1506_v19, 0.0  ;;  %v1523_v57 = vsel %vm709_vm0, %v1509_v45, 0.0  ;;  %v1520_v26 = vsel %vm709_vm0, %v1508_v16, 0.0 }
 0x6c5   : > { %1518 = vadd.xlane.f32.xlu0 %v1517_v46  ;;  %1515 = vadd.xlane.f32.xlu1 %v1514_v38  ;;  %v1529_v28 = vsel %vm709_vm0, %v1511_v21, 0.0  ;;  %v1526_v27 = vsel %vm709_vm0, %v1510_v10, 0.0  ;;  %v1535_v30 = vsel %vm709_vm0, %v1513_v43, 0.0  ;;  %v1532_v20 = vsel %vm709_vm0, %v1512_v13, 0.0 }
 0x6c9   : > { %1524 = vadd.xlane.f32.xlu0 %v1523_v57  ;;  %1521 = vadd.xlane.f32.xlu1 %v1520_v26 }
 0x6cd   : > { %1530 = vadd.xlane.f32.xlu0 %v1529_v28  ;;  %1527 = vadd.xlane.f32.xlu1 %v1526_v27 }
 0x6d1   : > { %1536 = vadd.xlane.f32.xlu0 %v1535_v30  ;;  %1533 = vadd.xlane.f32.xlu1 %v1532_v20 }
 0x6e2   : > { %1591 = vperm.xlu1 %4099, %v4762_v40  }
 0x6e6   : > { %4101 = vset.pattern.permute.xlu1 %v6496_v7 }
 0x6e7   : > { %1631 = vperm.xlu1 %4101, %v4762_v40   ;;  %1587 = vperm.xlu0 %4100, %v4749_v23   ;;  %v4923_v40 = vld [vmem:[%s6493_s9 + $0x30] sm:$0xff] }
 0x6eb   : > { %4102 = vset.pattern.permute.xlu1 %v6499_v2  ;;  %4109 = vset.pattern.permute.xlu0 %v6496_v7 }
 0x6ec   : > { %1583 = vperm.xlu1 %4102, %v4755_v49   ;;  %1615 = vperm.xlu0 %4109, %v4743_v53  }
 0x6f0   : > { %4103 = vset.pattern.permute.xlu1 %v6496_v7  ;;  %4111 = vset.pattern.permute.xlu0 %v6499_v2 }
 0x6f1   : > { %1627 = vperm.xlu1 %4103, %v4749_v23   ;;  %1563 = vperm.xlu0 %4111, %v4720_v12   ;;  %v4911_v23 = vld [vmem:[%s6493_s9 + $0x20] sm:$0xff] }
 0x6f5   : > { %4104 = vset.pattern.permute.xlu1 %v6499_v2  ;;  %4112 = vset.pattern.permute.xlu0 %v4164_v8 }
 0x6f6   : > { %1579 = vperm.xlu1 %4104, %v4737_v22  }
 0x6fa   : > { %4105 = vset.pattern.permute.xlu1 %v6496_v7 }
 0x6fb   : > { %1623 = vperm.xlu1 %4105, %v4755_v49   ;;  %v4916_v49 = vld [vmem:[%s6493_s9 + $0x28] sm:$0xff] }
 0x6ff   : > { %4106 = vset.pattern.permute.xlu1 %v6499_v2 }
 0x700   : > { %1575 = vperm.xlu1 %4106, %v4743_v53   ;;  %v1650_v53 = vld [vmem:[%s6488_s4] sm:$0xff] }
 0x701   : > { %3891 = vmatprep.mubr.msk.f32.mxu0 %vm709_vm0, %v1650_v53 }
 0x704   : > { %4107 = vset.pattern.permute.xlu1 %v6496_v7 }
 0x705   : > { %1619 = vperm.xlu1 %4107, %v4737_v22   ;;  %v4887_v22 = vld [vmem:[%s6493_s9 + $0x8] sm:$0xff] }
 0x709   : > { %4108 = vset.pattern.permute.xlu1 %v6499_v2 }
 0x70a   : > { %1571 = vperm.xlu1 %4108, %v4731_v25  }
 0x70e   : > { %1567 = vperm.xlu1 %4108, %v4726_v17  }
 0x712   : > { %4110 = vset.pattern.permute.xlu1 %v6496_v7 }
 0x713   : > { %1611 = vperm.xlu1 %4110, %v4731_v25   ;;  %v4892_v25 = vld [vmem:[%s6493_s9] sm:$0xff] }
 0x714   : > { %1684 = vperm.xlu0 %4112, %v4892_v25  }
 0x717   : > { %1607 = vperm.xlu1 %4110, %v4726_v17   ;;  %v4904_v17 = vld [vmem:[%s6493_s9 + $0x18] sm:$0xff] }
 0x718   : > { %1699 = vperm.xlu0 %4112, %v4904_v17  }
 0x71b   : > { %1603 = vperm.xlu1 %4110, %v4720_v12   ;;  %v4899_v12 = vld [vmem:[%s6493_s9 + $0x10] sm:$0xff] }
 0x71c   : > { %1709 = vperm.xlu0 %4112, %v4916_v49  }
 0x71f   : > { %4113 = vset.pattern.permute.xlu1 %v4164_v8 }
 0x720   : > { %1689 = vperm.xlu1 %4113, %v4887_v22   ;;  %1719 = vperm.xlu0 %4112, %v4928_v1  }
 0x724   : > { %1694 = vperm.xlu1 %4113, %v4899_v12   ;;  %1729 = vperm.xlu0 %4112, %v4940_v48  }
 0x728   : > { %1704 = vperm.xlu1 %4113, %v4911_v23   ;;  %1739 = vperm.xlu0 %4112, %v4952_v42  }
 0x72c   : > { %1714 = vperm.xlu1 %4113, %v4923_v40   ;;  %1749 = vperm.xlu0 %4112, %v4964_v34  }
 0x730   : > { %1724 = vperm.xlu1 %4113, %v4935_v32   ;;  %1759 = vperm.xlu0 %4112, %v4976_v63  }
 0x734   : > { %1734 = vperm.xlu1 %4113, %v4947_v36   ;;  %4114 = vset.pattern.permute.xlu0 %v6499_v2 }
 0x738   : > { %1744 = vperm.xlu1 %4113, %v4959_v0  }
 0x73c   : > { %1754 = vperm.xlu1 %4113, %v4971_v62  }
 0x740   : > { %4115 = vset.pattern.permute.xlu1 %v6499_v2 }
 0x74e   : > { %v1519_v39 = vpop.xlane.xlu0 %1518  ;;  %v1516_v9 = vpop.xlane.xlu1 %1515 }
 0x74f   : > { %v1538_v18 = vadd.f32 %v1519_v39, %v1516_v9 }
 0x752   : > { %v1525_v5 = vpop.xlane.xlu0 %1524  ;;  %v1522_v44 = vpop.xlane.xlu1 %1521 }
 0x753   : > { %v1539_v50 = vadd.f32 %v1538_v18, %v1522_v44 }
 0x755   : > { %v1540_v37 = vadd.f32 %v1539_v50, %v1525_v5 }
 0x756   : > { %v1531_v31 = vpop.xlane.xlu0 %1530  ;;  %v1528_v55 = vpop.xlane.xlu1 %1527 }
 0x757   : > { %v1541_v52 = vadd.f32 %v1540_v37, %v1528_v55 }
 0x759   : > { %v1542_v51 = vadd.f32 %v1541_v52, %v1531_v31 }
 0x75a   : > { %v1534_v54 = vpop.xlane.xlu1 %1533  ;;  %v1537_v56 = vpop.xlane.xlu0 %1536 }
 0x75b   : > { %v1543_v33 = vadd.f32 %v1542_v51, %v1534_v54 }
 0x75d   : > { %v1544_v35 = vadd.f32 %v1543_v33, %v1537_v56 }
 0x75e   : > { %v1592_v6 = vpop.permute.xlu1 %1591 }
 0x75f   : > { %v1545_v58 = vrot.slane %v1544_v35, 4 }
 0x761   : > { %v1546_v59 = vadd.f32 %v1545_v58, %v1544_v35 }
 0x762   : > { %v1632_v60 = vpop.permute.xlu1 %1631  ;;  %v1588_v20 = vpop.permute.xlu0 %1587 }
 0x763   : > { %v1547_v24 = vrot.slane %v1546_v59, 2 }
 0x765   : > { %v1548_v4 = vadd.f32 %v1547_v24, %v1546_v59 }
 0x767   : > { %v1549_v19 = vrot.slane %v1548_v4, 1  ;;  %v1584_v46 = vpop.permute.xlu1 %1583 }
 0x769   : > { %v1550_v38 = vadd.f32 %v1549_v19, %v1548_v4 }
 0x76b   : > { %v1551_v45 = vmul.f32 0.00024414063, %v1550_v38 }
 0x76c   : > { %v1628_v16 = vpop.permute.xlu1 %1627 }
 0x76d   : > { %v1552_v57 = vadd.f32 1e-05, %v1551_v45 }
 0x76f   : > { %4128 = vrsqrt.f32 %v1552_v57 }
 0x771   : > { %v1580_v26 = vpop.permute.xlu1 %1579 }
 0x776   : > { %v1624_v21 = vpop.permute.xlu1 %1623 }
 0x77b   : > { %v1576_v10 = vpop.permute.xlu1 %1575 }
 0x77c   : > { %v4129_v28 = vpop.eup %4128 }
 0x77d   : > { %v1561_v27 = vmul.f32 %v4129_v28, %v4833_v11  ;;  %v1559_v43 = vmul.f32 %v4129_v28, %v4823_v29  ;;  %v1558_v13 = vmul.f32 %v4129_v28, %v4825_v15  ;;  %v1560_v30 = vmul.f32 %v4129_v28, %v4835_v41  ;;  %v1616_v15 = vpop.permute.xlu0 %1615 }
 0x77e   : > { %v1557_v18 = vmul.f32 %v4129_v28, %v4815_v3  ;;  %v1556_v56 = vmul.f32 %v4129_v28, %v4817_v14  ;;  %v1555_v59 = vmul.f32 %v4129_v28, %v4811_v61  ;;  %v1554_v24 = vmul.f32 %v4129_v28, %v4813_v47  ;;  %v1651_v61 = vld [vmem:[%s6488_s4 + $0x8] sm:$0xff]  ;;  %v1652_v47 = vld [vmem:[%s6488_s4 + $0x10] sm:$0xff]  ;;  %v1654_v28 = vld [vmem:[%s6488_s4 + $0x20] sm:$0xff] }
 0x77f   : > { %v1601_v53 = vmul.f32 %v1592_v6, %v1561_v27  ;;  %v1599_v39 = vmul.f32 %v1584_v46, %v1559_v43  ;;  %v1600_v9 = vmul.f32 %v1588_v20, %v1560_v30  ;;  %v1598_v50 = vmul.f32 %v1580_v26, %v1558_v13  ;;  %v1655_v27 = vld [vmem:[%s6488_s4 + $0x28] sm:$0xff]  ;;  %v1656_v43 = vld [vmem:[%s6488_s4 + $0x30] sm:$0xff]  ;;  %v1657_v13 = vld [vmem:[%s6488_s4 + $0x38] sm:$0xff] }
 0x780   : > { %v1620_v5 = vpop.permute.xlu1 %1619  ;;  %v1597_v52 = vmul.f32 %v1576_v10, %v1557_v18  ;;  %v1653_v10 = vld [vmem:[%s6488_s4 + $0x18] sm:$0xff]  ;;  %v1658_v30 = vld [vmem:[%s6488_s4 + $0x40] sm:$0xff]  ;;  %v1659_v20 = vld [vmem:[%s6488_s4 + $0x48] sm:$0xff] }
 0x781   : > { %v1641_v44 = vadd.f32 %v1632_v60, %v1601_v53  ;;  %v1640_v37 = vadd.f32 %v1628_v16, %v1600_v9  ;;  %v1639_v55 = vadd.f32 %v1624_v21, %v1599_v39  ;;  %v1638_v11 = vadd.f32 %v1620_v5, %v1598_v50  ;;  %v1564_v46 = vpop.permute.xlu0 %1563  ;;  %v1660_v53 = vld [vmem:[%s6488_s4 + $0x50] sm:$0xff]  ;;  %v1661_v39 = vld [vmem:[%s6488_s4 + $0x58] sm:$0xff]  ;;  %v1662_v9 = vld [vmem:[%s6488_s4 + $0x60] sm:$0xff] }
 0x782   : > { %v1637_v54 = vadd.f32 %v1616_v15, %v1597_v52  ;;  %v1594_v14 = vmul.f32 %v1564_v46, %v1554_v24  ;;  %v1663_v18 = vld [vmem:[%s6488_s4 + $0x68] sm:$0xff]  ;;  %v1664_v5 = vld [vmem:[%s6488_s4 + $0x70] sm:$0xff] }
 0x783   : > { %v1649_v31 = vmax.f32 %v1641_v44, 0.0  ;;  %v1648_v51 = vmax.f32 %v1640_v37, 0.0  ;;  %v1647_v41 = vmax.f32 %v1639_v55, 0.0  ;;  %v1646_v33 = vmax.f32 %v1638_v11, 0.0  ;;  %v1665_v44 = vld [vmem:[%s6488_s4 + $0x78] sm:$0xff] }
 0x784   : > { %v1645_v35 = vmax.f32 %v1637_v54, 0.0 }
 0x785   : > { %3875 = vmatprep.subr.mxu0 %v1649_v31  ;;  %v1572_v29 = vpop.permute.xlu1 %1571 }
 0x786   : > { %3876 = vmatpush3.msra.mxu0 %v1649_v31  ;;  %v1596_v6 = vmul.f32 %v1572_v29, %v1556_v56 }
 0x787   : > { %3877 = vmatprep.subr.mxu0 %v1648_v51 }
 0x788   : > { %3878 = vmatpush3.msra.mxu0 %v1648_v51 }
 0x789   : > { %3879 = vmatprep.subr.mxu0 %v1647_v41  ;;  %v1568_v3 = vpop.permute.xlu1 %1567 }
 0x78a   : > { %3880 = vmatpush3.msra.mxu0 %v1647_v41  ;;  %v1595_v4 = vmul.f32 %v1568_v3, %v1555_v59 }
 0x78b   : > { %3881 = vmatprep.subr.mxu0 %v1646_v33 }
 0x78c   : > { %3882 = vmatpush3.msra.mxu0 %v1646_v33 }
 0x78d   : > { %3883 = vmatprep.subr.mxu0 %v1645_v35 }
 0x78e   : > { %3884 = vmatpush3.msra.mxu0 %v1645_v35  ;;  %v1612_v58 = vpop.permute.xlu1 %1611 }
 0x78f   : > { %v1636_v60 = vadd.f32 %v1612_v58, %v1596_v6  ;;  %v1685_v50 = vpop.permute.xlu0 %1684 }
 0x791   : > { %v1644_v19 = vmax.f32 %v1636_v60, 0.0 }
 0x792   : > { %v1608_v38 = vpop.permute.xlu1 %1607 }
 0x793   : > { %v1635_v45 = vadd.f32 %v1608_v38, %v1595_v4  ;;  %3885 = vmatprep.subr.mxu0 %v1644_v19  ;;  %v1700_v31 = vpop.permute.xlu0 %1699 }
 0x794   : > { %3886 = vmatpush3.msra.mxu0 %v1644_v19 }
 0x795   : > { %v1643_v16 = vmax.f32 %v1635_v45, 0.0 }
 0x796   : > { %v1604_v57 = vpop.permute.xlu1 %1603 }
 0x797   : > { %v1634_v26 = vadd.f32 %v1604_v57, %v1594_v14  ;;  %3887 = vmatprep.subr.mxu0 %v1643_v16  ;;  %v1710_v52 = vpop.permute.xlu0 %1709 }
 0x798   : > { %3888 = vmatpush3.msra.mxu0 %v1643_v16 }
 0x799   : > { %v1642_v21 = vmax.f32 %v1634_v26, 0.0 }
 0x79b   : > { %3889 = vmatprep.subr.mxu0 %v1642_v21  ;;  %v1690_v37 = vpop.permute.xlu1 %1689  ;;  %v1720_v33 = vpop.permute.xlu0 %1719 }
 0x79c   : > { %3890 = vmatpush3.msra.mxu0 %v1642_v21 }
 0x79d   : > { %3892 = vmatmul.mubr.msk.f32.vlgmr.msra.gmra.mxu0 %vm709_vm0, %v1651_v61 }
 0x79e   : > { %3894 = vmatprep.mubr.msk.f32.mxu0 %vm709_vm0, %v1652_v47 }
 0x79f   : > { %v1695_v55 = vpop.permute.xlu1 %1694  ;;  %v1730_v46 = vpop.permute.xlu0 %1729 }
 0x7a1   : > { %3895 = vmatmul.mubr.msk.f32.gmra.mxu0 %vm709_vm0, %v1653_v10 }
 0x7a2   : > { %3897 = vmatprep.mubr.msk.f32.mxu0 %vm709_vm0, %v1654_v28 }
 0x7a3   : > { %v1705_v11 = vpop.permute.xlu1 %1704  ;;  %v1740_v10 = vpop.permute.xlu0 %1739 }
 0x7a5   : > { %3898 = vmatmul.mubr.msk.f32.gmra.mxu0 %vm709_vm0, %v1655_v27 }
 0x7a6   : > { %3900 = vmatprep.mubr.msk.f32.mxu0 %vm709_vm0, %v1656_v43 }
 0x7a7   : > { %v1715_v6 = vpop.permute.xlu1 %1714 }
 0x7a9   : > { %3901 = vmatmul.mubr.msk.f32.gmra.mxu0 %vm709_vm0, %v1657_v13 }
 0x7aa   : > { %3903 = vmatprep.mubr.msk.f32.mxu0 %vm709_vm0, %v1658_v30 }
 0x7ab   : > { %v1725_v14 = vpop.permute.xlu1 %1724 }
 0x7ad   : > { %3904 = vmatmul.mubr.msk.f32.gmra.mxu0 %vm709_vm0, %v1659_v20 }
 0x7ae   : > { %3906 = vmatprep.mubr.msk.f32.mxu0 %vm709_vm0, %v1660_v53 }
 0x7af   : > { %v1735_v30 = vpop.permute.xlu1 %1734 }
 0x7b1   : > { %3907 = vmatmul.mubr.msk.f32.gmra.mxu0 %vm709_vm0, %v1661_v39 }
 0x7b2   : > { %3909 = vmatprep.mubr.msk.f32.mxu0 %vm709_vm0, %v1662_v9 }
 0x7b5   : > { %3910 = vmatmul.mubr.msk.f32.gmra.mxu0 %vm709_vm0, %v1663_v18 }
 0x7b6   : > { %3912 = vmatprep.mubr.msk.f32.mxu0 %vm709_vm0, %v1664_v5 }
 0x7b9   : > { %3913 = vmatmul.mubr.msk.f32.gmra.mxu0 %vm709_vm0, %v1665_v44  ;;  %v1750_v44 = vpop.permute.xlu0 %1749 }
 0x85d   : > { %v3893_v29 = vpop.f32.mrf.mxu0 }
 0x85e   : > { %v5050_v51 = vadd.f32 %v3893_v29, %v1690_v37 }
 0x85f   : > { %v1876_v15 = vpop.f32.mrf.mxu0 }
 0x860   : > { %v5052_v41 = vadd.f32 %v1876_v15, %v1685_v50  ;;  %v1958_v54 = vsel %vm709_vm0, %v5050_v51, 0.0 }
 0x861   : > { %v3896_v3 = vpop.f32.mrf.mxu0  ;;  %1959 = vadd.xlane.f32.xlu0 %v1958_v54 }
 0x862   : > { %v5056_v56 = vadd.f32 %v3896_v3, %v1700_v31  ;;  %v1955_v35 = vsel %vm709_vm0, %v5052_v41, 0.0  ;;  %v1745_v31 = vpop.permute.xlu1 %1744 }
 0x863   : > { %v1886_v58 = vpop.f32.mrf.mxu0  ;;  %1956 = vadd.xlane.f32.xlu1 %v1955_v35 }
 0x864   : > { %v5060_v59 = vadd.f32 %v1886_v58, %v1695_v55  ;;  %v1964_v4 = vsel %vm709_vm0, %v5056_v56, 0.0 }
 0x865   : > { %v3899_v60 = vpop.f32.mrf.mxu0 }
 0x866   : > { %v5062_v24 = vadd.f32 %v3899_v60, %v1710_v52  ;;  %v1961_v19 = vsel %vm709_vm0, %v5060_v59, 0.0  ;;  %v1755_v60 = vpop.permute.xlu1 %1754 }
 0x867   : > { %v1896_v38 = vpop.f32.mrf.mxu0  ;;  %1965 = vadd.xlane.f32.xlu1 %v1964_v4  ;;  %1962 = vadd.xlane.f32.xlu0 %v1961_v19 }
 0x868   : > { %v5068_v45 = vadd.f32 %v1896_v38, %v1705_v11  ;;  %v1970_v26 = vsel %vm709_vm0, %v5062_v24, 0.0 }
 0x869   : > { %v3902_v16 = vpop.f32.mrf.mxu0 }
 0x86a   : > { %v5070_v57 = vadd.f32 %v3902_v16, %v1720_v33  ;;  %v1967_v21 = vsel %vm709_vm0, %v5068_v45, 0.0  ;;  %v1760_v33 = vpop.permute.xlu0 %1759 }
 0x86b   : > { %v1906_v61 = vpop.f32.mrf.mxu0  ;;  %1971 = vadd.xlane.f32.xlu1 %v1970_v26  ;;  %1968 = vadd.xlane.f32.xlu0 %v1967_v21 }
 0x86c   : > { %v5076_v47 = vadd.f32 %v1906_v61, %v1715_v6  ;;  %v1976_v43 = vsel %vm709_vm0, %v5070_v57, 0.0 }
 0x86d   : > { %v3905_v28 = vpop.f32.mrf.mxu0 }
 0x86e   : > { %v5078_v27 = vadd.f32 %v3905_v28, %v1730_v46  ;;  %v1973_v13 = vsel %vm709_vm0, %v5076_v47, 0.0 }
 0x86f   : > { %v1916_v20 = vpop.f32.mrf.mxu0  ;;  %1977 = vadd.xlane.f32.xlu1 %v1976_v43  ;;  %1974 = vadd.xlane.f32.xlu0 %v1973_v13 }
 0x870   : > { %v5084_v53 = vadd.f32 %v1916_v20, %v1725_v14  ;;  %v1982_v18 = vsel %vm709_vm0, %v5078_v27, 0.0 }
 0x871   : > { %v3908_v39 = vpop.f32.mrf.mxu0 }
 0x872   : > { %v5086_v9 = vadd.f32 %v3908_v39, %v1740_v10  ;;  %v1979_v5 = vsel %vm709_vm0, %v5084_v53, 0.0 }
 0x873   : > { %v1926_v50 = vpop.f32.mrf.mxu0  ;;  %1983 = vadd.xlane.f32.xlu1 %v1982_v18  ;;  %1980 = vadd.xlane.f32.xlu0 %v1979_v5 }
 0x874   : > { %v5092_v37 = vadd.f32 %v1926_v50, %v1735_v30  ;;  %v1988_v11 = vsel %vm709_vm0, %v5086_v9, 0.0 }
 0x875   : > { %v3911_v55 = vpop.f32.mrf.mxu0 }
 0x876   : > { %v5094_v52 = vadd.f32 %v3911_v55, %v1750_v44  ;;  %v1985_v29 = vsel %vm709_vm0, %v5092_v37, 0.0 }
 0x877   : > { %v1936_v15 = vpop.f32.mrf.mxu0  ;;  %1989 = vadd.xlane.f32.xlu1 %v1988_v11  ;;  %1986 = vadd.xlane.f32.xlu0 %v1985_v29 }
 0x878   : > { %v5100_v54 = vadd.f32 %v1936_v15, %v1745_v31  ;;  %v1994_v6 = vsel %vm709_vm0, %v5094_v52, 0.0 }
 0x879   : > { %v3914_v3 = vpop.f32.mrf.mxu0 }
 0x87a   : > { %v5102_v35 = vadd.f32 %v3914_v3, %v1760_v33  ;;  %v1991_v58 = vsel %vm709_vm0, %v5100_v54, 0.0 }
 0x87b   : > { %v1946_v4 = vpop.f32.mrf.mxu0  ;;  %1995 = vadd.xlane.f32.xlu1 %v1994_v6  ;;  %1992 = vadd.xlane.f32.xlu0 %v1991_v58 }
 0x87c   : > { %v5108_v19 = vadd.f32 %v1946_v4, %v1755_v60  ;;  %v2000_v46 = vsel %vm709_vm0, %v5102_v35, 0.0 }
 0x87e   : > { %v1997_v38 = vsel %vm709_vm0, %v5108_v19, 0.0 }
 0x87f   : > { %2001 = vadd.xlane.f32.xlu1 %v2000_v46  ;;  %1998 = vadd.xlane.f32.xlu0 %v1997_v38 }
 0x890   : > { %2150 = vperm.xlu1 %4115, %v4887_v22  }
 0x894   : > { %2154 = vperm.xlu1 %4115, %v4899_v12  }
 0x895   : > { %2146 = vperm.xlu0 %4114, %v4892_v25  }
 0x898   : > { %2158 = vperm.xlu1 %4115, %v4904_v17  }
 0x899   : > { %2178 = vperm.xlu0 %4114, %v4935_v32  }
 0x89c   : > { %2162 = vperm.xlu1 %4115, %v4911_v23  }
 0x8a0   : > { %2166 = vperm.xlu1 %4115, %v4916_v49  }
 0x8a4   : > { %2170 = vperm.xlu1 %4115, %v4923_v40  }
 0x8a8   : > { %2174 = vperm.xlu1 %4115, %v4928_v1  }
 0x8ac   : > { %2182 = vperm.xlu1 %4115, %v4940_v48  }
 0x8ea   : > { %v1960_v14 = vpop.xlane.xlu0 %1959 }
 0x8ec   : > { %v1957_v16 = vpop.xlane.xlu1 %1956 }
 0x8ed   : > { %v2003_v26 = vadd.f32 %v1960_v14, %v1957_v16 }
 0x8f0   : > { %v1963_v21 = vpop.xlane.xlu0 %1962  ;;  %v1966_v61 = vpop.xlane.xlu1 %1965 }
 0x8f1   : > { %v2004_v10 = vadd.f32 %v2003_v26, %v1963_v21 }
 0x8f3   : > { %v2005_v28 = vadd.f32 %v2004_v10, %v1966_v61 }
 0x8f4   : > { %v1969_v43 = vpop.xlane.xlu0 %1968  ;;  %v1972_v13 = vpop.xlane.xlu1 %1971 }
 0x8f5   : > { %v2006_v30 = vadd.f32 %v2005_v28, %v1969_v43 }
 0x8f7   : > { %v2007_v20 = vadd.f32 %v2006_v30, %v1972_v13 }
 0x8f8   : > { %v1975_v39 = vpop.xlane.xlu0 %1974  ;;  %v1978_v18 = vpop.xlane.xlu1 %1977 }
 0x8f9   : > { %v2008_v5 = vadd.f32 %v2007_v20, %v1975_v39 }
 0x8fb   : > { %v2009_v44 = vadd.f32 %v2008_v5, %v1978_v18 }
 0x8fc   : > { %v1981_v50 = vpop.xlane.xlu0 %1980  ;;  %v1984_v31 = vpop.xlane.xlu1 %1983 }
 0x8fd   : > { %v2010_v55 = vadd.f32 %v2009_v44, %v1981_v50 }
 0x8ff   : > { %v2011_v11 = vadd.f32 %v2010_v55, %v1984_v31 }
 0x900   : > { %v1987_v29 = vpop.xlane.xlu0 %1986  ;;  %v1990_v15 = vpop.xlane.xlu1 %1989 }
 0x901   : > { %v2012_v33 = vadd.f32 %v2011_v11, %v1987_v29 }
 0x903   : > { %v2013_v3 = vadd.f32 %v2012_v33, %v1990_v15 }
 0x904   : > { %v1993_v6 = vpop.xlane.xlu0 %1992  ;;  %v1996_v58 = vpop.xlane.xlu1 %1995 }
 0x905   : > { %v2014_v60 = vadd.f32 %v2013_v3, %v1993_v6 }
 0x907   : > { %v2015_v4 = vadd.f32 %v2014_v60, %v1996_v58 }
 0x908   : > { %v1999_v46 = vpop.xlane.xlu0 %1998  ;;  %v2002_v14 = vpop.xlane.xlu1 %2001 }
 0x909   : > { %v2016_v38 = vadd.f32 %v2015_v4, %v1999_v46 }
 0x90b   : > { %v2017_v16 = vadd.f32 %v2016_v38, %v2002_v14 }
 0x90d   : > { %v2018_v26 = vrot.slane %v2017_v16, 4 }
 0x90f   : > { %v2019_v21 = vadd.f32 %v2018_v26, %v2017_v16 }
 0x911   : > { %v2020_v61 = vrot.slane %v2019_v21, 2 }
 0x913   : > { %v2021_v10 = vadd.f32 %v2020_v61, %v2019_v21 }
 0x915   : > { %v2022_v28 = vrot.slane %v2021_v10, 1 }
 0x917   : > { %v2023_v43 = vadd.f32 %v2022_v28, %v2021_v10 }
 0x919   : > { %v5124_v13 = vmul.f32 0.00012207031, %v2023_v43 }
 0x91b   : > { %v5128_v30 = vsub.f32 %v5050_v51, %v5124_v13  ;;  %v5132_v20 = vsub.f32 %v5052_v41, %v5124_v13  ;;  %v5136_v39 = vsub.f32 %v5056_v56, %v5124_v13  ;;  %v5140_v18 = vsub.f32 %v5060_v59, %v5124_v13 }
 0x91c   : > { %v5148_v51 = vsub.f32 %v5062_v24, %v5124_v13  ;;  %v5152_v41 = vsub.f32 %v5068_v45, %v5124_v13  ;;  %v5162_v24 = vsub.f32 %v5070_v57, %v5124_v13  ;;  %v5166_v45 = vsub.f32 %v5076_v47, %v5124_v13 }
 0x91d   : > { %v2042_v5 = vmul.f32 %v5128_v30, %v5128_v30  ;;  %v2041_v44 = vmul.f32 %v5132_v20, %v5132_v20  ;;  %v2044_v59 = vmul.f32 %v5136_v39, %v5136_v39  ;;  %v2043_v31 = vmul.f32 %v5140_v18, %v5140_v18 }
 0x91e   : > { %v2046_v29 = vmul.f32 %v5148_v51, %v5148_v51  ;;  %v2045_v15 = vmul.f32 %v5152_v41, %v5152_v41  ;;  %v2048_v57 = vmul.f32 %v5162_v24, %v5162_v24  ;;  %v2047_v33 = vmul.f32 %v5166_v45, %v5166_v45 }
 0x91f   : > { %v2060_v56 = vsel %vm709_vm0, %v2042_v5, 0.0  ;;  %v2057_v50 = vsel %vm709_vm0, %v2041_v44, 0.0  ;;  %v2066_v55 = vsel %vm709_vm0, %v2044_v59, 0.0  ;;  %v2063_v11 = vsel %vm709_vm0, %v2043_v31, 0.0  ;;  %v5334_v31 = vld [vmem:[%s6494_s10 + $0x20] sm:$0xff] }
 0x920   : > { %2061 = vadd.xlane.f32.xlu1 %v2060_v56  ;;  %2058 = vadd.xlane.f32.xlu0 %v2057_v50  ;;  %v2072_v47 = vsel %vm709_vm0, %v2046_v29, 0.0  ;;  %v2069_v3 = vsel %vm709_vm0, %v2045_v15, 0.0  ;;  %v5182_v6 = vsub.f32 %v5078_v27, %v5124_v13  ;;  %v5186_v58 = vsub.f32 %v5084_v53, %v5124_v13  ;;  %6515 = vst [vmem:[#allocation4_spill] sm:$0xff] %v5334_v31  ;;  %v2321_v29 = vld [vmem:[%s6489_s5] sm:$0xff] }
 0x921   : > { %v2078_v60 = vsel %vm709_vm0, %v2048_v57, 0.0  ;;  %v2075_v4 = vsel %vm709_vm0, %v2047_v33, 0.0  ;;  %v5196_v27 = vsub.f32 %v5086_v9, %v5124_v13  ;;  %v5200_v53 = vsub.f32 %v5092_v37, %v5124_v13  ;;  %v2333_v15 = vld [vmem:[%s6489_s5 + $0x60] sm:$0xff]  ;;  %v5352_v57 = vld [vmem:[%s6494_s10 + $0x30] sm:$0xff]  ;;  %3947 = vmatprep.mubr.f32.mxu0 %v2321_v29 }
 0x922   : > { %v2050_v46 = vmul.f32 %v5182_v6, %v5182_v6  ;;  %v2049_v38 = vmul.f32 %v5186_v58, %v5186_v58  ;;  %v5204_v14 = vsub.f32 %v5094_v52, %v5124_v13  ;;  %v5208_v16 = vsub.f32 %v5100_v54, %v5124_v13  ;;  %3965 = vmatprep.mubr.f32.mxu1 %v2333_v15  ;;  %v5424_v15 = vld [vmem:[%s6494_s10 + $0xc8] sm:$0xff] }
 0x923   : > { %v2052_v9 = vmul.f32 %v5196_v27, %v5196_v27  ;;  %v2051_v37 = vmul.f32 %v5200_v53, %v5200_v53  ;;  %v5218_v52 = vsub.f32 %v5108_v19, %v5124_v13  ;;  %v5240_v56 = vsub.f32 %v5102_v35, %v5124_v13  ;;  %v5329_v13 = vld [vmem:[%s6494_s10 + $0x58] sm:$0xff]  ;;  %6516 = vst [vmem:[#allocation5_spill] sm:$0xff] %v5424_v15 }
 0x924   : > { %2067 = vadd.xlane.f32.xlu1 %v2066_v55  ;;  %2064 = vadd.xlane.f32.xlu0 %v2063_v11  ;;  %v2084_v26 = vsel %vm709_vm0, %v2050_v46, 0.0  ;;  %v2081_v21 = vsel %vm709_vm0, %v2049_v38, 0.0  ;;  %v2054_v10 = vmul.f32 %v5204_v14, %v5204_v14  ;;  %v2053_v28 = vmul.f32 %v5208_v16, %v5208_v16  ;;  %v5341_v11 = vld [vmem:[%s6494_s10 + $0x68] sm:$0xff]  ;;  %v5371_v38 = vld [vmem:[%s6494_s10 + $0x50] sm:$0xff] }
 0x925   : > { %v2090_v61 = vsel %vm709_vm0, %v2052_v9, 0.0  ;;  %v2087_v54 = vsel %vm709_vm0, %v2051_v37, 0.0  ;;  %v2055_v19 = vmul.f32 %v5218_v52, %v5218_v52  ;;  %v2056_v50 = vmul.f32 %v5240_v56, %v5240_v56  ;;  %v5383_v37 = vld [vmem:[%s6494_s10 + $0x60] sm:$0xff] }
 0x926   : > { %v2096_v43 = vsel %vm709_vm0, %v2054_v10, 0.0  ;;  %v2093_v5 = vsel %vm709_vm0, %v2053_v28, 0.0  ;;  %v5395_v28 = vld [vmem:[%s6494_s10 + $0x70] sm:$0xff] }
 0x927   : > { %v2099_v44 = vsel %vm709_vm0, %v2055_v19, 0.0  ;;  %v2102_v59 = vsel %vm709_vm0, %v2056_v50, 0.0 }
 0x928   : > { %2073 = vadd.xlane.f32.xlu1 %v2072_v47  ;;  %2070 = vadd.xlane.f32.xlu0 %v2069_v3  ;;  %v5359_v3 = vld [vmem:[%s6494_s10 + $0x40] sm:$0xff] }
 0x92c   : > { %2079 = vadd.xlane.f32.xlu1 %v2078_v60  ;;  %2076 = vadd.xlane.f32.xlu0 %v2075_v4  ;;  %v5364_v4 = vld [vmem:[%s6494_s10 + $0x78] sm:$0xff] }
 0x930   : > { %2085 = vadd.xlane.f32.xlu1 %v2084_v26  ;;  %2082 = vadd.xlane.f32.xlu0 %v2081_v21  ;;  %v5376_v21 = vld [vmem:[%s6494_s10 + $0x88] sm:$0xff] }
 0x934   : > { %2091 = vadd.xlane.f32.xlu1 %v2090_v61  ;;  %2088 = vadd.xlane.f32.xlu0 %v2087_v54  ;;  %v5388_v54 = vld [vmem:[%s6494_s10 + $0x98] sm:$0xff] }
 0x938   : > { %2097 = vadd.xlane.f32.xlu1 %v2096_v43  ;;  %2094 = vadd.xlane.f32.xlu0 %v2093_v5  ;;  %v5400_v5 = vld [vmem:[%s6494_s10 + $0xa8] sm:$0xff] }
 0x93c   : > { %2100 = vadd.xlane.f32.xlu0 %v2099_v44  ;;  %v5407_v44 = vld [vmem:[%s6494_s10 + $0x80] sm:$0xff] }
 0x949   : > { %2190 = vperm.xlu1 %4115, %v4952_v42  }
 0x952   : > { %2186 = vperm.xlu0 %4114, %v4947_v36  }
 0x956   : > { %2194 = vperm.xlu0 %4114, %v4959_v0  }
 0x95a   : > { %2202 = vperm.xlu0 %4114, %v4971_v62  }
 0x95e   : > { %4116 = vset.pattern.permute.xlu0 %v6496_v7 }
 0x95f   : > { %2286 = vperm.xlu0 %4116, %v4976_v63  }
 0x963   : > { %2274 = vperm.xlu0 %4116, %v4959_v0  }
 0x967   : > { %2266 = vperm.xlu0 %4116, %v4947_v36   ;;  %v5305_v36 = vld [vmem:[%s6494_s10 + $0x38] sm:$0xff] }
 0x96b   : > { %2258 = vperm.xlu0 %4116, %v4935_v32   ;;  %v5274_v32 = vld [vmem:[%s6494_s10] sm:$0xff] }
 0x96c   : > { %6513 = vst [vmem:[#allocation2_spill] sm:$0xff] %v5274_v32 }
 0x96d   : > { %2103 = vadd.xlane.f32.xlu1 %v2102_v59  ;;  %v5412_v59 = vld [vmem:[%s6494_s10 + $0xb8] sm:$0xff] }
 0x96f   : > { %2250 = vperm.xlu0 %4116, %v4923_v40   ;;  %v5258_v40 = vpop.permute.xlu1 %2150 }
 0x973   : > { %2242 = vperm.xlu0 %4116, %v4911_v23  }
 0x977   : > { %2234 = vperm.xlu0 %4116, %v4899_v12  }
 0x97b   : > { %2226 = vperm.xlu0 %4116, %v4892_v25   ;;  %v5262_v25 = vpop.permute.xlu1 %2154 }
 0x97e   : > { %2198 = vperm.xlu1 %4115, %v4964_v34  }
 0x97f   : > { %4119 = vset.pattern.permute.xlu0 %v4164_v8  ;;  %v5265_v12 = vpop.permute.xlu1 %2158 }
 0x982   : > { %2206 = vperm.xlu1 %4115, %v4976_v63  }
 0x983   : > { %v5269_v23 = vpop.permute.xlu1 %2162 }
 0x986   : > { %4117 = vset.pattern.permute.xlu1 %v6496_v7 }
 0x987   : > { %2282 = vperm.xlu1 %4117, %v4971_v62   ;;  %v5320_v62 = vld [vmem:[%s6494_s10 + $0x8] sm:$0xff] }
 0x988   : > { %2392 = vperm.xlu0 %4119, %v5320_v62  }
 0x98b   : > { %2278 = vperm.xlu1 %4117, %v4964_v34   ;;  %v5315_v34 = vld [vmem:[%s6494_s10 + $0x48] sm:$0xff] }
 0x98c   : > { %2407 = vperm.xlu0 %4119, %v5334_v31  }
 0x98f   : > { %2270 = vperm.xlu1 %4117, %v4952_v42  }
 0x990   : > { %2417 = vperm.xlu0 %4119, %v5352_v57  }
 0x993   : > { %2262 = vperm.xlu1 %4117, %v4940_v48   ;;  %v5293_v48 = vpop.permute.xlu0 %2146 }
 0x994   : > { %2427 = vperm.xlu0 %4119, %v5359_v3  }
 0x997   : > { %2254 = vperm.xlu1 %4117, %v4928_v1   ;;  %v5283_v1 = vpop.permute.xlu1 %2166  ;;  %v5309_v0 = vpop.permute.xlu0 %2178 }
 0x998   : > { %2437 = vperm.xlu0 %4119, %v5371_v38  }
 0x99b   : > { %2246 = vperm.xlu1 %4117, %v4916_v49   ;;  %v5281_v49 = vld [vmem:[%s6494_s10 + $0x10] sm:$0xff] }
 0x99c   : > { %6514 = vst [vmem:[#allocation3_spill] sm:$0xff] %v5281_v49  ;;  %2447 = vperm.xlu0 %4119, %v5383_v37  }
 0x99f   : > { %2238 = vperm.xlu1 %4117, %v4904_v17   ;;  %v5291_v17 = vpop.permute.xlu1 %2170 }
 0x9a0   : > { %2457 = vperm.xlu0 %4119, %v5395_v28  }
 0x9a3   : > { %2230 = vperm.xlu1 %4117, %v4887_v22   ;;  %v5289_v22 = vld [vmem:[%s6494_s10 + $0x18] sm:$0xff]  ;;  %v5307_v42 = vpop.permute.xlu1 %2174 }
 0x9a4   : > { %2467 = vperm.xlu0 %4119, %v5407_v44  }
 0x9a7   : > { %4118 = vset.pattern.permute.xlu1 %v4164_v8  ;;  %v5299_v8 = vld [vmem:[%s6494_s10 + $0x28] sm:$0xff]  ;;  %v5323_v63 = vpop.permute.xlu1 %2182 }
 0x9a8   : > { %2387 = vperm.xlu1 %4118, %v5274_v32  }
 0x9a9   : > { %v2059_v35 = vpop.xlane.xlu0 %2058 }
 0x9ab   : > { %v2062_v55 = vpop.xlane.xlu1 %2061 }
 0x9ac   : > { %2397 = vperm.xlu1 %4118, %v5281_v49   ;;  %v2105_v47 = vadd.f32 %v2062_v55, %v2059_v35  ;;  %v5419_v55 = vld [vmem:[%s6494_s10 + $0x90] sm:$0xff] }
 0x9ad   : > { %v2065_v33 = vpop.xlane.xlu0 %2064  ;;  %2477 = vperm.xlu0 %4119, %v5419_v55  }
 0x9ae   : > { %v2106_v60 = vadd.f32 %v2105_v47, %v2065_v33  ;;  %v5431_v47 = vld [vmem:[%s6494_s10 + $0xa0] sm:$0xff] }
 0x9af   : > { %v2068_v46 = vpop.xlane.xlu1 %2067 }
 0x9b0   : > { %2402 = vperm.xlu1 %4118, %v5289_v22   ;;  %v2107_v26 = vadd.f32 %v2106_v60, %v2068_v46  ;;  %v5436_v46 = vld [vmem:[%s6494_s10 + $0xd8] sm:$0xff] }
 0x9b1   : > { %v2071_v9 = vpop.xlane.xlu0 %2070  ;;  %6517 = vst [vmem:[#allocation6_spill] sm:$0xff] %v5436_v46  ;;  %2487 = vperm.xlu0 %4119, %v5431_v47  }
 0x9b2   : > { %v2108_v61 = vadd.f32 %v2107_v26, %v2071_v9  ;;  %v5443_v9 = vld [vmem:[%s6494_s10 + $0xb0] sm:$0xff] }
 0x9b3   : > { %v2074_v10 = vpop.xlane.xlu1 %2073 }
 0x9b4   : > { %2412 = vperm.xlu1 %4118, %v5299_v8   ;;  %v2109_v43 = vadd.f32 %v2108_v61, %v2074_v10  ;;  %v5448_v10 = vld [vmem:[%s6494_s10 + $0xe8] sm:$0xff] }
 0x9b5   : > { %v2077_v19 = vpop.xlane.xlu0 %2076  ;;  %6518 = vst [vmem:[#allocation7_spill] sm:$0xff] %v5448_v10  ;;  %2497 = vperm.xlu0 %4119, %v5443_v9  }
 0x9b6   : > { %v2110_v50 = vadd.f32 %v2109_v43, %v2077_v19  ;;  %v5455_v19 = vld [vmem:[%s6494_s10 + $0xc0] sm:$0xff] }
 0x9b7   : > { %v2080_v35 = vpop.xlane.xlu1 %2079 }
 0x9b8   : > { %2422 = vperm.xlu1 %4118, %v5305_v36   ;;  %v2111_v29 = vadd.f32 %v2110_v50, %v2080_v35  ;;  %v5460_v35 = vld [vmem:[%s6494_s10 + $0xf8] sm:$0xff] }
 0x9b9   : > { %v2083_v33 = vpop.xlane.xlu0 %2082  ;;  %6519 = vst [vmem:[#allocation8_spill] sm:$0xff] %v5460_v35  ;;  %2507 = vperm.xlu0 %4119, %v5455_v19  }
 0x9ba   : > { %v2112_v60 = vadd.f32 %v2111_v29, %v2083_v33  ;;  %v5467_v33 = vld [vmem:[%s6494_s10 + $0xd0] sm:$0xff] }
 0x9bb   : > { %v2086_v26 = vpop.xlane.xlu1 %2085 }
 0x9bc   : > { %2432 = vperm.xlu1 %4118, %v5315_v34   ;;  %v2113_v61 = vadd.f32 %v2112_v60, %v2086_v26 }
 0x9bd   : > { %v2089_v43 = vpop.xlane.xlu0 %2088  ;;  %2517 = vperm.xlu0 %4119, %v5467_v33  }
 0x9be   : > { %v2114_v50 = vadd.f32 %v2113_v61, %v2089_v43  ;;  %v5474_v43 = vld [vmem:[%s6494_s10 + $0xe0] sm:$0xff] }
 0x9bf   : > { %v2092_v29 = vpop.xlane.xlu1 %2091 }
 0x9c0   : > { %2442 = vperm.xlu1 %4118, %v5329_v13   ;;  %v2115_v60 = vadd.f32 %v2114_v50, %v2092_v29  ;;  %v5481_v50 = vld [vmem:[%s6494_s10 + $0xf0] sm:$0xff] }
 0x9c1   : > { %v2095_v26 = vpop.xlane.xlu0 %2094  ;;  %2527 = vperm.xlu0 %4119, %v5474_v43  }
 0x9c2   : > { %v2116_v7 = vadd.f32 %v2115_v60, %v2095_v26 }
 0x9c3   : > { %v2098_v61 = vpop.xlane.xlu1 %2097 }
 0x9c4   : > { %2452 = vperm.xlu1 %4118, %v5341_v11   ;;  %v2117_v29 = vadd.f32 %v2116_v7, %v2098_v61 }
 0x9c5   : > { %2537 = vperm.xlu0 %4119, %v5481_v50  }
 0x9c8   : > { %2462 = vperm.xlu1 %4118, %v5364_v4  }
 0x9cc   : > { %2472 = vperm.xlu1 %4118, %v5376_v21  }
 0x9d0   : > { %2482 = vperm.xlu1 %4118, %v5388_v54  }
 0x9d4   : > { %2492 = vperm.xlu1 %4118, %v5400_v5  }
 0x9d8   : > { %2502 = vperm.xlu1 %4118, %v5412_v59  }
 0x9dc   : > { %2512 = vperm.xlu1 %4118, %v5424_v15  }
 0x9e0   : > { %2522 = vperm.xlu1 %4118, %v5436_v46   ;;  %v6520_v46 = vmov 1  }
 0x9e1   : > { %4121 = vset.pattern.permute.xlu0 %v6520_v46 }
 0x9e2   : > { %3141 = vperm.xlu0 %4121, %v5320_v62  }
 0x9e4   : > { %2532 = vperm.xlu1 %4118, %v5448_v10  }
 0x9e6   : > { %3177 = vperm.xlu0 %4121, %v5371_v38  }
 0x9e8   : > { %2542 = vperm.xlu1 %4118, %v5460_v35   ;;  %v2101_v35 = vpop.xlane.xlu0 %2100 }
 0x9e9   : > { %v2118_v10 = vadd.f32 %v2117_v29, %v2101_v35 }
 0x9ea   : > { %3185 = vperm.xlu0 %4121, %v5383_v37  }
 0x9ec   : > { %4120 = vset.pattern.permute.xlu1 %v6499_v2  ;;  %v5484_v2 = vpop.permute.xlu1 %2190  ;;  %v2187_v61 = vpop.permute.xlu0 %2186 }
 0x9ed   : > { %3137 = vperm.xlu1 %4120, %v5274_v32  }
 0x9ee   : > { %3193 = vperm.xlu0 %4121, %v5395_v28  }
 0x9f0   : > { %v2195_v46 = vpop.permute.xlu0 %2194 }
 0x9f1   : > { %3145 = vperm.xlu1 %4120, %v5281_v49  }
 0x9f2   : > { %3201 = vperm.xlu0 %4121, %v5407_v44  }
 0x9f5   : > { %3149 = vperm.xlu1 %4120, %v5289_v22  }
 0x9f6   : > { %v2104_v60 = vpop.xlane.xlu1 %2103  ;;  %3209 = vperm.xlu0 %4121, %v5419_v55  }
 0x9f7   : > { %v2119_v26 = vadd.f32 %v2118_v10, %v2104_v60 }
 0x9f9   : > { %v2120_v15 = vrot.slane %v2119_v26, 4  ;;  %3153 = vperm.xlu1 %4120, %v5334_v31  }
 0x9fa   : > { %v2199_v35 = vpop.permute.xlu1 %2198  ;;  %3217 = vperm.xlu0 %4121, %v5431_v47  }
 0x9fb   : > { %v2121_v7 = vadd.f32 %v2120_v15, %v2119_v26  ;;  %v2203_v15 = vpop.permute.xlu0 %2202 }
 0x9fd   : > { %v2122_v49 = vrot.slane %v2121_v7, 2  ;;  %3157 = vperm.xlu1 %4120, %v5299_v8  }
 0x9fe   : > { %v2207_v31 = vpop.permute.xlu1 %2206  ;;  %3225 = vperm.xlu0 %4121, %v5443_v9  }
 0x9ff   : > { %v2123_v32 = vadd.f32 %v2122_v49, %v2121_v7  ;;  %v2287_v37 = vpop.permute.xlu0 %2286 }
 0xa01   : > { %v2124_v29 = vrot.slane %v2123_v32, 1  ;;  %3161 = vperm.xlu1 %4120, %v5352_v57  }
 0xa02   : > { %v2283_v49 = vpop.permute.xlu1 %2282  ;;  %3233 = vperm.xlu0 %4121, %v5455_v19  }
 0xa03   : > { %v2125_v10 = vadd.f32 %v2124_v29, %v2123_v32  ;;  %v2275_v28 = vpop.permute.xlu0 %2274 }
 0xa05   : > { %v2126_v60 = vmul.f32 0.00012207031, %v2125_v10  ;;  %3165 = vperm.xlu1 %4120, %v5305_v36  }
 0xa06   : > { %v2279_v32 = vpop.permute.xlu1 %2278  ;;  %3241 = vperm.xlu0 %4121, %v5467_v33  }
 0xa07   : > { %v2127_v38 = vadd.f32 1e-05, %v2126_v60  ;;  %v2267_v29 = vpop.permute.xlu0 %2266 }
 0xa09   : > { %4130 = vrsqrt.f32 %v2127_v38  ;;  %3169 = vperm.xlu1 %4120, %v5359_v3  }
 0xa0a   : > { %v2271_v26 = vpop.permute.xlu1 %2270  ;;  %3249 = vperm.xlu0 %4121, %v5474_v43  }
 0xa0d   : > { %3173 = vperm.xlu1 %4120, %v5315_v34  }
 0xa0e   : > { %3257 = vperm.xlu0 %4121, %v5481_v50   ;;  %v6521_v50 = vmov 2  }
 0xa11   : > { %3181 = vperm.xlu1 %4120, %v5329_v13  }
 0xa12   : > { %4122 = vset.pattern.permute.xlu0 %v6521_v50 }
 0xa15   : > { %3189 = vperm.xlu1 %4120, %v5341_v11  }
 0xa16   : > { %v5505_v44 = vpop.eup %4130 }
 0xa17   : > { %v2144_v3 = vmul.f32 %v5505_v44, %v5240_v56  ;;  %v2143_v55 = vmul.f32 %v5505_v44, %v5218_v52  ;;  %v2142_v34 = vmul.f32 %v5505_v44, %v5204_v14  ;;  %v2141_v11 = vmul.f32 %v5505_v44, %v5208_v16  ;;  %v2263_v14 = vpop.permute.xlu1 %2262 }
 0xa18   : > { %v2140_v56 = vmul.f32 %v5505_v44, %v5196_v27 }
 0xa19   : > { %v2224_v13 = vmul.f32 %v2207_v31, %v2144_v3  ;;  %v2223_v7 = vmul.f32 %v2203_v15, %v2143_v55  ;;  %3197 = vperm.xlu1 %4120, %v5364_v4   ;;  %v2222_v60 = vmul.f32 %v2199_v35, %v2142_v34  ;;  %v2221_v31 = vmul.f32 %v2195_v46, %v2141_v11  ;;  %v2259_v4 = vpop.permute.xlu0 %2258 }
 0xa1a   : > { %v2139_v15 = vmul.f32 %v5505_v44, %v5200_v53  ;;  %v2220_v16 = vmul.f32 %v5484_v2, %v2140_v56  ;;  %v2138_v35 = vmul.f32 %v5505_v44, %v5182_v6  ;;  %v2136_v2 = vmul.f32 %v5505_v44, %v5162_v24 }
 0xa1b   : > { %v2304_v10 = vadd.f32 %v2287_v37, %v2224_v13  ;;  %v2303_v38 = vadd.f32 %v2283_v49, %v2223_v7  ;;  %v2302_v3 = vadd.f32 %v2279_v32, %v2222_v60  ;;  %v2301_v37 = vadd.f32 %v2275_v28, %v2221_v31  ;;  %v2255_v46 = vpop.permute.xlu1 %2254 }
 0xa1c   : > { %v2219_v49 = vmul.f32 %v2187_v61, %v2139_v15  ;;  %v2300_v55 = vadd.f32 %v2271_v26, %v2220_v16  ;;  %v2218_v32 = vmul.f32 %v5323_v63, %v2138_v35  ;;  %v2216_v13 = vmul.f32 %v5307_v42, %v2136_v2  ;;  %v2323_v2 = vld [vmem:[%s6489_s5 + $0x10] sm:$0xff] }
 0xa1d   : > { %v2320_v52 = vmax.f32 %v2304_v10, 0.0  ;;  %3205 = vperm.xlu1 %4120, %v5376_v21   ;;  %v2319_v27 = vmax.f32 %v2303_v38, 0.0  ;;  %v2137_v21 = vmul.f32 %v5505_v44, %v5186_v58  ;;  %v2318_v53 = vmax.f32 %v2302_v3, 0.0  ;;  %v2251_v6 = vpop.permute.xlu0 %2250 }
 0xa1e   : > { %v2317_v34 = vmax.f32 %v2301_v37, 0.0  ;;  %v2299_v28 = vadd.f32 %v2267_v29, %v2219_v49  ;;  %v2135_v58 = vmul.f32 %v5505_v44, %v5166_v45  ;;  %v2316_v26 = vmax.f32 %v2300_v55, 0.0  ;;  %v2322_v55 = vld [vmem:[%s6489_s5 + $0x8] sm:$0xff] }
 0xa1f   : > { %3915 = vmatprep.subr.mxu0 %v2320_v52  ;;  %3995 = vmatprep.subr.mxu1 %v2320_v52  ;;  %v2217_v61 = vmul.f32 %v5309_v0, %v2137_v21  ;;  %v2298_v63 = vadd.f32 %v2263_v14, %v2218_v32  ;;  %v2134_v24 = vmul.f32 %v5505_v44, %v5148_v51  ;;  %v2247_v7 = vpop.permute.xlu1 %2246  ;;  %v2334_v32 = vld [vmem:[%s6489_s5 + $0x68] sm:$0xff] }
 0xa20   : > { %3916 = vmatpush3.msra.mxu0 %v2320_v52  ;;  %4011 = vmatpush3.msra.mxu1 %v2320_v52  ;;  %v2315_v0 = vmax.f32 %v2299_v28, 0.0  ;;  %v2215_v45 = vmul.f32 %v5291_v17, %v2135_v58  ;;  %v2133_v11 = vmul.f32 %v5505_v44, %v5152_v41  ;;  %v2296_v60 = vadd.f32 %v2255_v46, %v2216_v13  ;;  %v2336_v28 = vld [vmem:[%s6489_s5 + $0x78] sm:$0xff]  ;;  %v2337_v58 = vld [vmem:[%s6489_s5 + $0x80] sm:$0xff]  ;;  %v2327_v13 = vld [vmem:[%s6489_s5 + $0x30] sm:$0xff] }
 0xa21   : > { %3917 = vmatprep.subr.mxu0 %v2319_v27  ;;  %3996 = vmatprep.subr.mxu1 %v2319_v27  ;;  %v2297_v29 = vadd.f32 %v2259_v4, %v2217_v61  ;;  %v2243_v10 = vpop.permute.xlu0 %2242  ;;  %v2314_v42 = vmax.f32 %v2298_v63, 0.0  ;;  %v2214_v51 = vmul.f32 %v5283_v1, %v2134_v24  ;;  %v2132_v56 = vmul.f32 %v5505_v44, %v5136_v39  ;;  %v2325_v61 = vld [vmem:[%s6489_s5 + $0x20] sm:$0xff]  ;;  %v2338_v63 = vld [vmem:[%s6489_s5 + $0x88] sm:$0xff]  ;;  %v2328_v24 = vld [vmem:[%s6489_s5 + $0x38] sm:$0xff] }
 0xa22   : > { %3918 = vmatpush3.msra.mxu0 %v2319_v27  ;;  %4012 = vmatpush3.msra.mxu1 %v2319_v27  ;;  %v2295_v52 = vadd.f32 %v2251_v6, %v2215_v45  ;;  %v2213_v41 = vmul.f32 %v5269_v23, %v2133_v11  ;;  %v2131_v38 = vmul.f32 %v5505_v44, %v5140_v18  ;;  %v2312_v1 = vmax.f32 %v2296_v60, 0.0  ;;  %v2335_v6 = vld [vmem:[%s6489_s5 + $0x70] sm:$0xff]  ;;  %v2330_v45 = vld [vmem:[%s6489_s5 + $0x48] sm:$0xff]  ;;  %v2332_v60 = vld [vmem:[%s6489_s5 + $0x58] sm:$0xff] }
 0xa23   : > { %3919 = vmatprep.subr.mxu0 %v2318_v53  ;;  %3997 = vmatprep.subr.mxu1 %v2318_v53  ;;  %v2313_v17 = vmax.f32 %v2297_v29, 0.0  ;;  %v2239_v14 = vpop.permute.xlu1 %2238  ;;  %v2294_v31 = vadd.f32 %v2247_v7, %v2214_v51  ;;  %v2212_v39 = vmul.f32 %v5265_v12, %v2132_v56  ;;  %v2129_v4 = vmul.f32 %v5505_v44, %v5132_v20  ;;  %v2340_v7 = vld [vmem:[%s6489_s5 + $0x98] sm:$0xff]  ;;  %v6522_v29 = vld [vmem:[#allocation2_spill] sm:$0xff]  ;;  %v2342_v11 = vld [vmem:[%s6489_s5 + $0xa8] sm:$0xff] }
 0xa24   : > { %3920 = vmatpush3.msra.mxu0 %v2318_v53  ;;  %4013 = vmatpush3.msra.mxu1 %v2318_v53  ;;  %v2311_v23 = vmax.f32 %v2295_v52, 0.0  ;;  %v2293_v3 = vadd.f32 %v2243_v10, %v2213_v41  ;;  %v2211_v18 = vmul.f32 %v5262_v25, %v2131_v38  ;;  %v2130_v16 = vmul.f32 %v5505_v44, %v5128_v30  ;;  %v2343_v10 = vld [vmem:[%s6489_s5 + $0xb0] sm:$0xff]  ;;  %v2344_v51 = vld [vmem:[%s6489_s5 + $0xb8] sm:$0xff]  ;;  %v2345_v56 = vld [vmem:[%s6489_s5 + $0xc0] sm:$0xff] }
 0xa25   : > { %3921 = vmatprep.subr.mxu0 %v2317_v34  ;;  %3998 = vmatprep.subr.mxu1 %v2317_v34  ;;  %v2235_v15 = vpop.permute.xlu0 %2234  ;;  %v2310_v12 = vmax.f32 %v2294_v31, 0.0  ;;  %v2292_v35 = vadd.f32 %v2239_v14, %v2212_v39  ;;  %v2209_v49 = vmul.f32 %v5293_v48, %v2129_v4  ;;  %v2347_v52 = vld [vmem:[%s6489_s5 + $0xd0] sm:$0xff]  ;;  %v6525_v41 = vld [vmem:[#allocation7_spill] sm:$0xff]  ;;  %v2348_v38 = vld [vmem:[%s6489_s5 + $0xd8] sm:$0xff] }
 0xa26   : > { %3922 = vmatpush3.msra.mxu0 %v2317_v34  ;;  %4014 = vmatpush3.msra.mxu1 %v2317_v34  ;;  %v2309_v20 = vmax.f32 %v2293_v3, 0.0  ;;  %v2291_v37 = vadd.f32 %v2235_v15, %v2211_v18  ;;  %v2210_v25 = vmul.f32 %v5258_v40, %v2130_v16  ;;  %v2324_v34 = vld [vmem:[%s6489_s5 + $0x18] sm:$0xff]  ;;  %v6526_v14 = vld [vmem:[#allocation8_spill] sm:$0xff]  ;;  %v6527_v15 = vld [vmem:[#allocation3_spill] sm:$0xff] }
 0xa27   : > { %3923 = vmatprep.subr.mxu0 %v2316_v26  ;;  %3999 = vmatprep.subr.mxu1 %v2316_v26  ;;  %v2231_v27 = vpop.permute.xlu1 %2230  ;;  %v2308_v44 = vmax.f32 %v2292_v35, 0.0  ;;  %v2351_v31 = vld [vmem:[%s6489_s5 + $0xf0] sm:$0xff]  ;;  %v2352_v39 = vld [vmem:[%s6489_s5 + $0xf8] sm:$0xff] }
 0xa28   : > { %3924 = vmatpush3.msra.mxu0 %v2316_v26  ;;  %4015 = vmatpush3.msra.mxu1 %v2316_v26  ;;  %v2290_v21 = vadd.f32 %v2231_v27, %v2210_v25  ;;  %v2307_v46 = vmax.f32 %v2291_v37, 0.0  ;;  %v2326_v26 = vld [vmem:[%s6489_s5 + $0x28] sm:$0xff]  ;;  %v6528_v4 = vld [vmem:[#allocation4_spill] sm:$0xff] }
 0xa29   : > { %3925 = vmatprep.subr.mxu0 %v2315_v0  ;;  %4000 = vmatprep.subr.mxu1 %v2315_v0  ;;  %v2227_v30 = vpop.permute.xlu0 %2226 }
 0xa2a   : > { %3926 = vmatpush3.msra.mxu0 %v2315_v0  ;;  %4016 = vmatpush3.msra.mxu1 %v2315_v0  ;;  %v2289_v53 = vadd.f32 %v2227_v30, %v2209_v49  ;;  %v2306_v48 = vmax.f32 %v2290_v21, 0.0  ;;  %v2329_v0 = vld [vmem:[%s6489_s5 + $0x40] sm:$0xff] }
 0xa2b   : > { %3927 = vmatprep.subr.mxu0 %v2314_v42  ;;  %4001 = vmatprep.subr.mxu1 %v2314_v42 }
 0xa2c   : > { %3928 = vmatpush3.msra.mxu0 %v2314_v42  ;;  %4017 = vmatpush3.msra.mxu1 %v2314_v42  ;;  %v2305_v40 = vmax.f32 %v2289_v53, 0.0  ;;  %v6523_v42 = vld [vmem:[#allocation5_spill] sm:$0xff] }
 0xa2d   : > { %3929 = vmatprep.subr.mxu0 %v2313_v17  ;;  %4002 = vmatprep.subr.mxu1 %v2313_v17  ;;  %v2393_v25 = vpop.permute.xlu0 %2392 }
 0xa2e   : > { %3930 = vmatpush3.msra.mxu0 %v2313_v17  ;;  %4018 = vmatpush3.msra.mxu1 %v2313_v17  ;;  %v6524_v17 = vld [vmem:[#allocation6_spill] sm:$0xff] }
 0xa2f   : > { %3931 = vmatprep.subr.mxu0 %v2312_v1  ;;  %4003 = vmatprep.subr.mxu1 %v2312_v1 }
 0xa30   : > { %3932 = vmatpush3.msra.mxu0 %v2312_v1  ;;  %4019 = vmatpush3.msra.mxu1 %v2312_v1  ;;  %v2350_v1 = vld [vmem:[%s6489_s5 + $0xe8] sm:$0xff] }
 0xa31   : > { %3933 = vmatprep.subr.mxu0 %v2311_v23  ;;  %4004 = vmatprep.subr.mxu1 %v2311_v23 }
 0xa32   : > { %3934 = vmatpush3.msra.mxu0 %v2311_v23  ;;  %4020 = vmatpush3.msra.mxu1 %v2311_v23  ;;  %v2388_v23 = vpop.permute.xlu1 %2387 }
 0xa33   : > { %3935 = vmatprep.subr.mxu0 %v2310_v12  ;;  %4005 = vmatprep.subr.mxu1 %v2310_v12 }
 0xa34   : > { %3936 = vmatpush3.msra.mxu0 %v2310_v12  ;;  %4021 = vmatpush3.msra.mxu1 %v2310_v12 }
 0xa35   : > { %3937 = vmatprep.subr.mxu0 %v2309_v20  ;;  %4006 = vmatprep.subr.mxu1 %v2309_v20 }
 0xa36   : > { %3938 = vmatpush3.msra.mxu0 %v2309_v20  ;;  %4022 = vmatpush3.msra.mxu1 %v2309_v20  ;;  %v2398_v3 = vpop.permute.xlu1 %2397 }
 0xa37   : > { %3939 = vmatprep.subr.mxu0 %v2308_v44  ;;  %4007 = vmatprep.subr.mxu1 %v2308_v44 }
 0xa38   : > { %3940 = vmatpush3.msra.mxu0 %v2308_v44  ;;  %4023 = vmatpush3.msra.mxu1 %v2308_v44  ;;  %v2408_v44 = vpop.permute.xlu0 %2407 }
 0xa39   : > { %3941 = vmatprep.subr.mxu0 %v2307_v46  ;;  %4008 = vmatprep.subr.mxu1 %v2307_v46 }
 0xa3a   : > { %3942 = vmatpush3.msra.mxu0 %v2307_v46  ;;  %4024 = vmatpush3.msra.mxu1 %v2307_v46  ;;  %v2403_v18 = vpop.permute.xlu1 %2402 }
 0xa3b   : > { %3943 = vmatprep.subr.mxu0 %v2306_v48  ;;  %4009 = vmatprep.subr.mxu1 %v2306_v48 }
 0xa3c   : > { %3944 = vmatpush3.msra.mxu0 %v2306_v48  ;;  %4025 = vmatpush3.msra.mxu1 %v2306_v48  ;;  %v2418_v46 = vpop.permute.xlu0 %2417 }
 0xa3d   : > { %3945 = vmatprep.subr.mxu0 %v2305_v40  ;;  %4010 = vmatprep.subr.mxu1 %v2305_v40 }
 0xa3e   : > { %3946 = vmatpush3.msra.mxu0 %v2305_v40  ;;  %4026 = vmatpush3.msra.mxu1 %v2305_v40  ;;  %v5661_v16 = vpop.permute.xlu1 %2412 }
 0xa3f   : > { %3948 = vmatmul.mubr.f32.vlgmr.msra.gmra.mxu0 %v2322_v55  ;;  %3966 = vmatmul.mubr.f32.vlgmr.msra.gmra.mxu1 %v2334_v32 }
 0xa40   : > { %3950 = vmatprep.mubr.f32.mxu0 %v2323_v2  ;;  %3968 = vmatprep.mubr.f32.mxu1 %v2335_v6  ;;  %v5679_v48 = vpop.permute.xlu0 %2427 }
 0xa41   : > { %3213 = vperm.xlu1 %4120, %v5388_v54   ;;  %v2339_v54 = vld [vmem:[%s6489_s5 + $0x90] sm:$0xff]  ;;  %3297 = vperm.xlu0 %4122, %v6522_v29  }
 0xa42   : > { %v5663_v12 = vpop.permute.xlu1 %2422 }
 0xa43   : > { %3951 = vmatmul.mubr.f32.gmra.mxu0 %v2324_v34  ;;  %3969 = vmatmul.mubr.f32.gmra.mxu1 %v2336_v28 }
 0xa44   : > { %3953 = vmatprep.mubr.f32.mxu0 %v2325_v61  ;;  %3971 = vmatprep.mubr.f32.mxu1 %v2337_v58  ;;  %v5683_v55 = vpop.permute.xlu0 %2437 }
 0xa45   : > { %3221 = vperm.xlu1 %4120, %v5400_v5   ;;  %v2341_v5 = vld [vmem:[%s6489_s5 + $0xa0] sm:$0xff]  ;;  %3309 = vperm.xlu0 %4122, %v5289_v22   ;;  %v2346_v22 = vld [vmem:[%s6489_s5 + $0xc8] sm:$0xff] }
 0xa46   : > { %v5665_v35 = vpop.permute.xlu1 %2432 }
 0xa47   : > { %3954 = vmatmul.mubr.f32.gmra.mxu0 %v2326_v26  ;;  %3972 = vmatmul.mubr.f32.gmra.mxu1 %v2338_v63 }
 0xa48   : > { %3956 = vmatprep.mubr.f32.mxu0 %v2327_v13  ;;  %3974 = vmatprep.mubr.f32.mxu1 %v2339_v54  ;;  %v2448_v2 = vpop.permute.xlu0 %2447 }
 0xa49   : > { %3229 = vperm.xlu1 %4120, %v5412_v59   ;;  %v2331_v59 = vld [vmem:[%s6489_s5 + $0x50] sm:$0xff]  ;;  %3317 = vperm.xlu0 %4122, %v5299_v8   ;;  %v2349_v8 = vld [vmem:[%s6489_s5 + $0xe0] sm:$0xff] }
 0xa4b   : > { %3957 = vmatmul.mubr.f32.gmra.mxu0 %v2328_v24  ;;  %3975 = vmatmul.mubr.f32.gmra.mxu1 %v2340_v7 }
 0xa4c   : > { %3959 = vmatprep.mubr.f32.mxu0 %v2329_v0  ;;  %3977 = vmatprep.mubr.f32.mxu1 %v2341_v5  ;;  %v2458_v61 = vpop.permute.xlu0 %2457 }
 0xa4d   : > { %3237 = vperm.xlu1 %4120, %v6523_v42  }
 0xa4f   : > { %3960 = vmatmul.mubr.f32.gmra.mxu0 %v2330_v45  ;;  %3978 = vmatmul.mubr.f32.gmra.mxu1 %v2342_v11 }
 0xa50   : > { %3962 = vmatprep.mubr.f32.mxu0 %v2331_v59  ;;  %3980 = vmatprep.mubr.f32.mxu1 %v2343_v10  ;;  %v2468_v59 = vpop.permute.xlu0 %2467 }
 0xa51   : > { %3245 = vperm.xlu1 %4120, %v6524_v17  }
 0xa53   : > { %3963 = vmatmul.mubr.f32.gmra.mxu0 %v2332_v60  ;;  %3981 = vmatmul.mubr.f32.gmra.mxu1 %v2344_v51 }
 0xa54   : > { %3983 = vmatprep.mubr.f32.mxu1 %v2345_v56 }
 0xa55   : > { %3253 = vperm.xlu1 %4120, %v6525_v41  }
 0xa57   : > { %3984 = vmatmul.mubr.f32.gmra.mxu1 %v2346_v22 }
 0xa58   : > { %3986 = vmatprep.mubr.f32.mxu1 %v2347_v52 }
 0xa59   : > { %3261 = vperm.xlu1 %4120, %v6526_v14  }
 0xa5b   : > { %3987 = vmatmul.mubr.f32.gmra.mxu1 %v2348_v38 }
 0xa5c   : > { %3989 = vmatprep.mubr.f32.mxu1 %v2349_v8 }
 0xa5d   : > { %4123 = vset.pattern.permute.xlu1 %v6521_v50 }
 0xa5e   : > { %3301 = vperm.xlu1 %4123, %v5320_v62   ;;  %v5667_v62 = vpop.permute.xlu1 %2442 }
 0xa5f   : > { %3990 = vmatmul.mubr.f32.gmra.mxu1 %v2350_v1 }
 0xa60   : > { %3992 = vmatprep.mubr.f32.mxu1 %v2351_v31 }
 0xa62   : > { %3305 = vperm.xlu1 %4123, %v6527_v15   ;;  %v2453_v27 = vpop.permute.xlu1 %2452 }
 0xa63   : > { %3993 = vmatmul.mubr.f32.gmra.mxu1 %v2352_v39  ;;  %v2478_v39 = vpop.permute.xlu0 %2477 }
 0xa66   : > { %3313 = vperm.xlu1 %4123, %v6528_v4   ;;  %v2463_v20 = vpop.permute.xlu1 %2462 }
 0xa6a   : > { %v5669_v37 = vpop.permute.xlu1 %2472 }
 0xa6e   : > { %v5671_v49 = vpop.permute.xlu1 %2482 }
 0xa72   : > { %v5673_v30 = vpop.permute.xlu1 %2492 }
 0xa76   : > { %v5675_v21 = vpop.permute.xlu1 %2502 }
 0xa7a   : > { %v5677_v53 = vpop.permute.xlu1 %2512 }
 0xa7e   : > { %v5681_v40 = vpop.permute.xlu1 %2522 }
 0xa82   : > { %v5685_v32 = vpop.permute.xlu1 %2532 }
 0xa86   : > { %v5687_v28 = vpop.permute.xlu1 %2542 }
 0xa8a   : > { %v5701_v11 = vpop.permute.xlu1 %3137 }
 0xa8b   : > { %6529 = vst [vmem:[#allocation2_spill] sm:$0xff] %v5701_v11 }
 0xa8e   : > { %v5719_v31 = vpop.permute.xlu1 %3145 }
 0xa8f   : > { %6530 = vst [vmem:[#allocation5_spill] sm:$0xff] %v5719_v31 }
 0xaff   : > { %v3949_v6 = vpop.f32.mrf.mxu0  ;;  %v3967_v34 = vpop.f32.mrf.mxu1 }
 0xb00   : > { %v5689_v58 = vadd.f32 %v3949_v6, %v2393_v25  ;;  %v5691_v26 = vadd.f32 %v3967_v34, %v2453_v27  ;;  %v5729_v25 = vpop.permute.xlu1 %3149 }
 0xb01   : > { %v2611_v63 = vpop.f32.mrf.mxu0  ;;  %v2671_v13 = vpop.f32.mrf.mxu1  ;;  %6531 = vst [vmem:[#allocation6_spill] sm:$0xff] %v5729_v25 }
 0xb02   : > { %v5693_v54 = vadd.f32 %v2611_v63, %v2388_v23  ;;  %v5695_v24 = vadd.f32 %v2671_v13, %v2448_v2  ;;  %v2773_v7 = vsel %vm709_vm0, %v5689_v58, 0.0  ;;  %v2809_v0 = vsel %vm709_vm0, %v5691_v26, 0.0 }
 0xb03   : > { %v3970_v5 = vpop.f32.mrf.mxu1  ;;  %2774 = vadd.xlane.f32.xlu1 %v2773_v7  ;;  %v3952_v50 = vpop.f32.mrf.mxu0  ;;  %2810 = vadd.xlane.f32.xlu0 %v2809_v0 }
 0xb04   : > { %v5703_v10 = vadd.f32 %v3952_v50, %v2403_v18  ;;  %v2806_v60 = vsel %vm709_vm0, %v5695_v24, 0.0  ;;  %v2770_v51 = vsel %vm709_vm0, %v5693_v54, 0.0  ;;  %v5711_v52 = vadd.f32 %v3970_v5, %v2463_v20  ;;  %v5749_v50 = vpop.permute.xlu1 %3153 }
 0xb05   : > { %v2621_v29 = vpop.f32.mrf.mxu0  ;;  %v2681_v45 = vpop.f32.mrf.mxu1  ;;  %6532 = vst [vmem:[#allocation7_spill] sm:$0xff] %v5749_v50 }
 0xb06   : > { %v5705_v42 = vadd.f32 %v2681_v45, %v2458_v61  ;;  %v2779_v8 = vsel %vm709_vm0, %v5703_v10, 0.0  ;;  %v5721_v15 = vadd.f32 %v2621_v29, %v2398_v3  ;;  %v2815_v18 = vsel %vm709_vm0, %v5711_v52, 0.0 }
 0xb07   : > { %v3973_v56 = vpop.f32.mrf.mxu1  ;;  %2807 = vadd.xlane.f32.xlu1 %v2806_v60  ;;  %v3955_v17 = vpop.f32.mrf.mxu0  ;;  %2771 = vadd.xlane.f32.xlu0 %v2770_v51 }
 0xb08   : > { %v2812_v38 = vsel %vm709_vm0, %v5705_v42, 0.0  ;;  %v5732_v2 = vadd.f32 %v3955_v17, %v5661_v16  ;;  %v2776_v34 = vsel %vm709_vm0, %v5721_v15, 0.0  ;;  %v5741_v13 = vadd.f32 %v3973_v56, %v5669_v37  ;;  %v5763_v17 = vpop.permute.xlu1 %3157 }
 0xb09   : > { %v2631_v22 = vpop.f32.mrf.mxu0  ;;  %v2691_v14 = vpop.f32.mrf.mxu1  ;;  %6533 = vst [vmem:[#allocation8_spill] sm:$0xff] %v5763_v17 }
 0xb0a   : > { %v5713_v41 = vadd.f32 %v2631_v22, %v2408_v44  ;;  %v5723_v4 = vadd.f32 %v2691_v14, %v2468_v59  ;;  %v2488_v44 = vpop.permute.xlu0 %2487  ;;  %v2821_v60 = vsel %vm709_vm0, %v5741_v13, 0.0 }
 0xb0b   : > { %2813 = vadd.xlane.f32.xlu1 %v2812_v38  ;;  %v3958_v1 = vpop.f32.mrf.mxu0  ;;  %2780 = vadd.xlane.f32.xlu0 %v2779_v8  ;;  %v3976_v27 = vpop.f32.mrf.mxu1 }
 0xb0c   : > { %v2782_v23 = vsel %vm709_vm0, %v5713_v41, 0.0  ;;  %v2818_v6 = vsel %vm709_vm0, %v5723_v4, 0.0  ;;  %v5754_v45 = vadd.f32 %v3958_v1, %v5663_v12  ;;  %v5766_v22 = vadd.f32 %v3976_v27, %v5671_v49 }
 0xb0d   : > { %v2641_v20 = vpop.f32.mrf.mxu0  ;;  %v2701_v61 = vpop.f32.mrf.mxu1 }
 0xb0e   : > { %v5734_v3 = vadd.f32 %v2641_v20, %v2418_v46  ;;  %v5743_v7 = vadd.f32 %v2701_v61, %v2478_v39  ;;  %v2785_v46 = vsel %vm709_vm0, %v5732_v2, 0.0  ;;  %v5751_v29 = vpop.permute.xlu0 %2497  ;;  %v2791_v38 = vsel %vm709_vm0, %v5754_v45, 0.0 }
 0xb0f   : > { %2783 = vadd.xlane.f32.xlu1 %v2782_v23  ;;  %2816 = vadd.xlane.f32.xlu0 %v2815_v18  ;;  %v3961_v63 = vpop.f32.mrf.mxu0  ;;  %v3979_v0 = vpop.f32.mrf.mxu1  ;;  %v2827_v23 = vsel %vm709_vm0, %v5766_v22, 0.0 }
 0xb10   : > { %v2788_v16 = vsel %vm709_vm0, %v5734_v3, 0.0  ;;  %v2824_v59 = vsel %vm709_vm0, %v5743_v7, 0.0  ;;  %v5775_v1 = vadd.f32 %v3961_v63, %v5665_v35  ;;  %v5784_v18 = vpop.permute.xlu1 %3161  ;;  %v5787_v20 = vadd.f32 %v3979_v0, %v5673_v30 }
 0xb11   : > { %v2651_v5 = vpop.f32.mrf.mxu0  ;;  %v2711_v51 = vpop.f32.mrf.mxu1  ;;  %6534 = vst [vmem:[#allocation3_spill] sm:$0xff] %v5784_v18 }
 0xb12   : > { %v5757_v37 = vadd.f32 %v2651_v5, %v5679_v48  ;;  %v5768_v12 = vadd.f32 %v2711_v51, %v2488_v44  ;;  %v2508_v8 = vpop.permute.xlu0 %2507 }
 0xb13   : > { %2819 = vadd.xlane.f32.xlu1 %v2818_v6  ;;  %2777 = vadd.xlane.f32.xlu0 %v2776_v34  ;;  %v3964_v56 = vpop.f32.mrf.mxu0  ;;  %v2833_v34 = vsel %vm709_vm0, %v5787_v20, 0.0  ;;  %v3982_v63 = vpop.f32.mrf.mxu1 }
 0xb14   : > { %v2794_v48 = vsel %vm709_vm0, %v5757_v37, 0.0  ;;  %v2830_v49 = vsel %vm709_vm0, %v5768_v12, 0.0  ;;  %v5793_v44 = vpop.permute.xlu1 %3165  ;;  %v5796_v6 = vadd.f32 %v3964_v56, %v5667_v62  ;;  %v5801_v30 = vadd.f32 %v3982_v63, %v5675_v21 }
 0xb15   : > { %v2661_v14 = vpop.f32.mrf.mxu0  ;;  %6535 = vst [vmem:[#allocation4_spill] sm:$0xff] %v5793_v44 }
 0xb16   : > { %v5778_v39 = vadd.f32 %v2661_v14, %v5683_v55  ;;  %v2518_v27 = vpop.permute.xlu0 %2517  ;;  %v2797_v55 = vsel %vm709_vm0, %v5775_v1, 0.0  ;;  %v2839_v62 = vsel %vm709_vm0, %v5801_v30, 0.0 }
 0xb17   : > { %2789 = vadd.xlane.f32.xlu1 %v2788_v16  ;;  %2786 = vadd.xlane.f32.xlu0 %v2785_v46  ;;  %v2803_v16 = vsel %vm709_vm0, %v5796_v6, 0.0 }
 0xb18   : > { %v2800_v35 = vsel %vm709_vm0, %v5778_v39, 0.0  ;;  %v5805_v46 = vpop.permute.xlu1 %3169 }
 0xb19   : > { %6536 = vst [vmem:[#allocation9_spill] sm:$0xff] %v5805_v46 }
 0xb1a   : > { %v2528_v61 = vpop.permute.xlu0 %2527 }
 0xb1b   : > { %2825 = vadd.xlane.f32.xlu1 %v2824_v59  ;;  %2822 = vadd.xlane.f32.xlu0 %v2821_v60 }
 0xb1c   : > { %v5811_v59 = vpop.permute.xlu1 %3173 }
 0xb1d   : > { %6537 = vst [vmem:[#allocation10_spill] sm:$0xff] %v5811_v59 }
 0xb1e   : > { %v2538_v0 = vpop.permute.xlu0 %2537 }
 0xb1f   : > { %2795 = vadd.xlane.f32.xlu1 %v2794_v48  ;;  %2792 = vadd.xlane.f32.xlu0 %v2791_v38  ;;  %v2721_v48 = vpop.f32.mrf.mxu1 }
 0xb20   : > { %v5816_v21 = vpop.permute.xlu1 %3181 }
 0xb21   : > { %6539 = vst [vmem:[#allocation12_spill] sm:$0xff] %v5816_v21 }
 0xb22   : > { %v5809_v5 = vpop.permute.xlu0 %3141 }
 0xb23   : > { %2831 = vadd.xlane.f32.xlu1 %v2830_v49  ;;  %2828 = vadd.xlane.f32.xlu0 %v2827_v23  ;;  %v3985_v49 = vpop.f32.mrf.mxu1 }
 0xb24   : > { %v5820_v56 = vpop.permute.xlu1 %3189 }
 0xb25   : > { %6541 = vst [vmem:[#allocation14_spill] sm:$0xff] %v5820_v56  ;;  %v2731_v23 = vpop.f32.mrf.mxu1 }
 0xb26   : > { %v5814_v60 = vpop.permute.xlu0 %3177 }
 0xb27   : > { %2801 = vadd.xlane.f32.xlu1 %v2800_v35  ;;  %2798 = vadd.xlane.f32.xlu0 %v2797_v55  ;;  %6538 = vst [vmem:[#allocation11_spill] sm:$0xff] %v5814_v60  ;;  %v3988_v55 = vpop.f32.mrf.mxu1 }
 0xb28   : > { %v5824_v14 = vpop.permute.xlu1 %3197 }
 0xb29   : > { %6543 = vst [vmem:[#allocation16_spill] sm:$0xff] %v5824_v14 }
 0xb2a   : > { %v5818_v51 = vpop.permute.xlu0 %3185 }
 0xb2b   : > { %2834 = vadd.xlane.f32.xlu0 %v2833_v34  ;;  %6540 = vst [vmem:[#allocation13_spill] sm:$0xff] %v5818_v51 }
 0xb2e   : > { %v5822_v38 = vpop.permute.xlu0 %3193 }
 0xb2f   : > { %2804 = vadd.xlane.f32.xlu0 %v2803_v16  ;;  %6542 = vst [vmem:[#allocation15_spill] sm:$0xff] %v5822_v38  ;;  %v2741_v16 = vpop.f32.mrf.mxu1 }
 0xb31   : > { %v3991_v38 = vpop.f32.mrf.mxu1 }
 0xb32   : > { %v5827_v35 = vpop.permute.xlu0 %3201 }
 0xb33   : > { %2840 = vadd.xlane.f32.xlu0 %v2839_v62  ;;  %6544 = vst [vmem:[#allocation17_spill] sm:$0xff] %v5827_v35  ;;  %v5836_v62 = vadd.f32 %v2721_v48, %v5751_v29 }
 0xb35   : > { %v2836_v35 = vsel %vm709_vm0, %v5836_v62, 0.0 }
 0xb36   : > { %v5831_v34 = vpop.permute.xlu0 %3209 }
 0xb37   : > { %6546 = vst [vmem:[#allocation19_spill] sm:$0xff] %v5831_v34  ;;  %v5848_v34 = vadd.f32 %v2741_v16, %v2518_v27  ;;  %v5866_v16 = vadd.f32 %v3988_v55, %v5681_v40 }
 0xb38   : > { %3321 = vperm.xlu1 %4123, %v5352_v57   ;;  %v5829_v57 = vpop.permute.xlu1 %3205 }
 0xb39   : > { %6545 = vst [vmem:[#allocation18_spill] sm:$0xff] %v5829_v57  ;;  %v2751_v57 = vpop.f32.mrf.mxu1  ;;  %v2851_v40 = vsel %vm709_vm0, %v5866_v16, 0.0 }
 0xb3a   : > { %v5838_v56 = vpop.permute.xlu0 %3217 }
 0xb3b   : > { %6548 = vst [vmem:[#allocation21_spill] sm:$0xff] %v5838_v56 }
 0xb3c   : > { %v5833_v63 = vpop.permute.xlu1 %3213 }
 0xb3d   : > { %6547 = vst [vmem:[#allocation20_spill] sm:$0xff] %v5833_v63  ;;  %v3994_v63 = vpop.f32.mrf.mxu1 }
 0xb3e   : > { %v5846_v51 = vpop.permute.xlu0 %3225 }
 0xb3f   : > { %6550 = vst [vmem:[#allocation23_spill] sm:$0xff] %v5846_v51 }
 0xb40   : > { %v5840_v14 = vpop.permute.xlu1 %3221 }
 0xb41   : > { %6549 = vst [vmem:[#allocation22_spill] sm:$0xff] %v5840_v14  ;;  %v5855_v14 = vadd.f32 %v3985_v49, %v5677_v53  ;;  %v5875_v49 = vadd.f32 %v3991_v38, %v5685_v32 }
 0xb42   : > { %v5863_v27 = vpop.permute.xlu0 %3233 }
 0xb43   : > { %6553 = vst [vmem:[#allocation26_spill] sm:$0xff] %v5863_v27  ;;  %v4141_v27 = vld [vmem:[%s6494_s10 + $0x90] sm:$0xff] }
 0xb44   : > { %v5852_v48 = vpop.permute.xlu1 %3229 }
 0xb45   : > { %6551 = vst [vmem:[#allocation24_spill] sm:$0xff] %v5852_v48 }
 0xb48   : > { %v5861_v51 = vpop.permute.xlu1 %3237 }
 0xb49   : > { %3325 = vperm.xlu0 %4122, %v5305_v36   ;;  %v5842_v36 = vadd.f32 %v2731_v23, %v2508_v8  ;;  %v5857_v8 = vadd.f32 %v2751_v57, %v2528_v61  ;;  %v2848_v23 = vsel %vm709_vm0, %v5848_v34, 0.0  ;;  %6552 = vst [vmem:[#allocation25_spill] sm:$0xff] %v5861_v51  ;;  %v2845_v61 = vsel %vm709_vm0, %v5855_v14, 0.0 }
 0xb4b   : > { %v2842_v29 = vsel %vm709_vm0, %v5842_v36, 0.0  ;;  %v2854_v53 = vsel %vm709_vm0, %v5857_v8, 0.0 }
 0xb4c   : > { %v5881_v55 = vpop.permute.xlu1 %3245 }
 0xb4d   : > { %6554 = vst [vmem:[#allocation27_spill] sm:$0xff] %v5881_v55 }
 0xb50   : > { %v5890_v32 = vpop.permute.xlu1 %3253 }
 0xb51   : > { %6556 = vst [vmem:[#allocation29_spill] sm:$0xff] %v5890_v32 }
 0xb5c   : > { %2837 = vadd.xlane.f32.xlu1 %v2836_v35  ;;  %v2761_v35 = vpop.f32.mrf.mxu1 }
 0xb5d   : > { %v5868_v48 = vadd.f32 %v2761_v35, %v2538_v0  ;;  %v5883_v0 = vpop.permute.xlu0 %3241 }
 0xb5e   : > { %6555 = vst [vmem:[#allocation28_spill] sm:$0xff] %v5883_v0  ;;  %v4140_v0 = vld [vmem:[%s6494_s10 + $0x58] sm:$0xff] }
 0xb5f   : > { %v2860_v57 = vsel %vm709_vm0, %v5868_v48, 0.0 }
 0xb60   : > { %2843 = vadd.xlane.f32.xlu1 %v2842_v29  ;;  %v5886_v29 = vadd.f32 %v3994_v63, %v5687_v28  ;;  %v4134_v63 = vld [vmem:[%s6494_s10 + $0x40] sm:$0xff] }
 0xb61   : > { %v5892_v38 = vpop.permute.xlu0 %3249 }
 0xb62   : > { %6557 = vst [vmem:[#allocation30_spill] sm:$0xff] %v5892_v38  ;;  %v2863_v35 = vsel %vm709_vm0, %v5886_v29, 0.0 }
 0xb64   : > { %2849 = vadd.xlane.f32.xlu1 %v2848_v23  ;;  %v2857_v23 = vsel %vm709_vm0, %v5875_v49, 0.0 }
 0xb68   : > { %2855 = vadd.xlane.f32.xlu1 %v2854_v53  ;;  %2846 = vadd.xlane.f32.xlu0 %v2845_v61  ;;  %v5896_v53 = vpop.permute.xlu1 %3261  ;;  %v5898_v61 = vpop.permute.xlu0 %3257 }
 0xb69   : > { %6558 = vst [vmem:[#allocation31_spill] sm:$0xff] %v5896_v53  ;;  %6559 = vst [vmem:[#allocation32_spill] sm:$0xff] %v5898_v61  ;;  %v4136_v53 = vld [vmem:[%s6494_s10 + $0x60] sm:$0xff] }
 0xb6c   : > { %2861 = vadd.xlane.f32.xlu1 %v2860_v57  ;;  %2852 = vadd.xlane.f32.xlu0 %v2851_v40  ;;  %v5900_v57 = vpop.permute.xlu0 %3297  ;;  %v5902_v28 = vpop.permute.xlu1 %3301  ;;  %v4135_v40 = vld [vmem:[%s6494_s10 + $0x50] sm:$0xff] }
 0xb6d   : > { %6560 = vst [vmem:[#allocation33_spill] sm:$0xff] %v5900_v57  ;;  %6561 = vst [vmem:[#allocation34_spill] sm:$0xff] %v5902_v28 }
 0xb70   : > { %2858 = vadd.xlane.f32.xlu0 %v2857_v23  ;;  %v5910_v23 = vpop.permute.xlu0 %3309 }
 0xb71   : > { %6562 = vst [vmem:[#allocation35_spill] sm:$0xff] %v5910_v23 }
 0xb74   : > { %2864 = vadd.xlane.f32.xlu0 %v2863_v35  ;;  %v5912_v35 = vpop.permute.xlu1 %3305  ;;  %v5917_v32 = vpop.permute.xlu0 %3317 }
 0xb75   : > { %6563 = vst [vmem:[#allocation36_spill] sm:$0xff] %v5912_v35  ;;  %6564 = vst [vmem:[#allocation37_spill] sm:$0xff] %v5917_v32 }
 0xb78   : > { %v5919_v61 = vpop.permute.xlu1 %3313 }
 0xb79   : > { %6565 = vst [vmem:[#allocation38_spill] sm:$0xff] %v5919_v61 }
 0xb7d   : > { %3329 = vperm.xlu1 %4123, %v4134_v63   ;;  %v4137_v63 = vld [vmem:[%s6494_s10 + $0x70] sm:$0xff] }
 0xb81   : > { %3337 = vperm.xlu1 %4123, %v4135_v40   ;;  %v4138_v40 = vld [vmem:[%s6494_s10 + $0x48] sm:$0xff] }
 0xb85   : > { %3345 = vperm.xlu1 %4123, %v4136_v53   ;;  %v4139_v53 = vld [vmem:[%s6494_s10 + $0x80] sm:$0xff] }
 0xb89   : > { %3353 = vperm.xlu1 %4123, %v4137_v63  }
 0xb8a   : > { %3333 = vperm.xlu0 %4122, %v4138_v40   ;;  %v4142_v40 = vld [vmem:[%s6494_s10 + $0x68] sm:$0xff] }
 0xb8c   : > { %v5927_v38 = vpop.xlane.xlu0 %2810  ;;  %v2775_v55 = vpop.xlane.xlu1 %2774 }
 0xb8d   : > { %3361 = vperm.xlu1 %4123, %v4139_v53  }
 0xb8e   : > { %3341 = vperm.xlu0 %4122, %v4140_v0   ;;  %v4143_v0 = vld [vmem:[%s6494_s10 + $0x78] sm:$0xff] }
 0xb90   : > { %v2772_v51 = vpop.xlane.xlu0 %2771  ;;  %v2808_v63 = vpop.xlane.xlu1 %2807 }
 0xb91   : > { %3369 = vperm.xlu1 %4123, %v4141_v27   ;;  %v4144_v27 = vld [vmem:[%s6494_s10 + $0x88] sm:$0xff]  ;;  %v2866_v32 = vadd.f32 %v2775_v55, %v2772_v51 }
 0xb92   : > { %3349 = vperm.xlu0 %4122, %v4142_v40  }
 0xb94   : > { %v2781_v56 = vpop.xlane.xlu0 %2780  ;;  %v2814_v21 = vpop.xlane.xlu1 %2813 }
 0xb95   : > { %3377 = vperm.xlu1 %4123, %v5431_v47   ;;  %v4145_v47 = vld [vmem:[%s6494_s10 + $0x98] sm:$0xff] }
 0xb96   : > { %3357 = vperm.xlu0 %4122, %v4143_v0  }
 0xb98   : > { %v2817_v53 = vpop.xlane.xlu0 %2816  ;;  %v2784_v60 = vpop.xlane.xlu1 %2783 }
 0xb99   : > { %3385 = vperm.xlu1 %4123, %v5443_v9   ;;  %v4146_v9 = vld [vmem:[%s6494_s10 + $0xa8] sm:$0xff] }
 0xb9a   : > { %3365 = vperm.xlu0 %4122, %v4144_v27  }
 0xb9c   : > { %v2778_v59 = vpop.xlane.xlu0 %2777  ;;  %v2820_v40 = vpop.xlane.xlu1 %2819 }
 0xb9d   : > { %3393 = vperm.xlu1 %4123, %v5455_v19   ;;  %v2867_v0 = vadd.f32 %v2866_v32, %v2778_v59  ;;  %v4147_v19 = vld [vmem:[%s6494_s10 + $0xb8] sm:$0xff] }
 0xb9e   : > { %3373 = vperm.xlu0 %4122, %v4145_v47  }
 0xb9f   : > { %v2868_v44 = vadd.f32 %v2867_v0, %v2781_v56  ;;  %v4149_v56 = vld [vmem:[%s6494_s10 + $0xd8] sm:$0xff] }
 0xba0   : > { %v2787_v46 = vpop.xlane.xlu0 %2786  ;;  %v2790_v27 = vpop.xlane.xlu1 %2789 }
 0xba1   : > { %3401 = vperm.xlu1 %4123, %v5467_v33   ;;  %v2869_v51 = vadd.f32 %v2868_v44, %v2784_v60  ;;  %v4148_v33 = vld [vmem:[%s6494_s10 + $0xc8] sm:$0xff] }
 0xba2   : > { %3381 = vperm.xlu0 %4122, %v4146_v9   ;;  %v4150_v44 = vld [vmem:[%s6494_s10 + $0xe8] sm:$0xff] }
 0xba3   : > { %v2870_v32 = vadd.f32 %v2869_v51, %v2787_v46 }
 0xba4   : > { %v2823_v61 = vpop.xlane.xlu0 %2822  ;;  %v2826_v55 = vpop.xlane.xlu1 %2825 }
 0xba5   : > { %3409 = vperm.xlu1 %4123, %v5474_v43   ;;  %v2871_v0 = vadd.f32 %v2870_v32, %v2790_v27 }
 0xba6   : > { %3389 = vperm.xlu0 %4122, %v4147_v19  }
 0xba8   : > { %v2793_v59 = vpop.xlane.xlu0 %2792  ;;  %v2796_v43 = vpop.xlane.xlu1 %2795 }
 0xba9   : > { %v2872_v23 = vadd.f32 %v2871_v0, %v2793_v59 }
 0xbaa   : > { %3397 = vperm.xlu0 %4122, %v4148_v33  }
 0xbab   : > { %v2873_v18 = vadd.f32 %v2872_v23, %v2796_v43 }
 0xbac   : > { %v2829_v47 = vpop.xlane.xlu0 %2828  ;;  %v2832_v60 = vpop.xlane.xlu1 %2831 }
 0xbae   : > { %3405 = vperm.xlu0 %4122, %v4149_v56  }
 0xbb0   : > { %v2799_v9 = vpop.xlane.xlu0 %2798  ;;  %v2802_v46 = vpop.xlane.xlu1 %2801 }
 0xbb1   : > { %v2874_v33 = vadd.f32 %v2873_v18, %v2799_v9 }
 0xbb2   : > { %3413 = vperm.xlu0 %4122, %v4150_v44  }
 0xbb3   : > { %v2875_v17 = vadd.f32 %v2874_v33, %v2802_v46 }
 0xbb4   : > { %v2835_v19 = vpop.xlane.xlu0 %2834  ;;  %v5971_v28 = vpop.permute.xlu1 %3321 }
 0xbb8   : > { %v2805_v51 = vpop.xlane.xlu0 %2804 }
 0xbb9   : > { %v2876_v35 = vadd.f32 %v2875_v17, %v2805_v51 }
 0xbbb   : > { %v2877_v57 = vadd.f32 %v2876_v35, %v2808_v63 }
 0xbbc   : > { %v2841_v18 = vpop.xlane.xlu0 %2840 }
 0xbbd   : > { %v2878_v56 = vadd.f32 %v2877_v57, %v5927_v38 }
 0xbbf   : > { %v2879_v50 = vadd.f32 %v2878_v56, %v2814_v21 }
 0xbc1   : > { %v2880_v27 = vadd.f32 %v2879_v50, %v2817_v53 }
 0xbc3   : > { %v2881_v32 = vadd.f32 %v2880_v27, %v2820_v40 }
 0xbc4   : > { %v5973_v33 = vpop.permute.xlu0 %3325 }
 0xbc5   : > { %v2882_v59 = vadd.f32 %v2881_v32, %v2823_v61 }
 0xbc7   : > { %v2883_v0 = vadd.f32 %v2882_v59, %v2826_v55 }
 0xbc9   : > { %v2884_v25 = vadd.f32 %v2883_v0, %v2829_v47 }
 0xbcb   : > { %v2885_v44 = vadd.f32 %v2884_v25, %v2832_v60 }
 0xbcd   : > { %v2886_v11 = vadd.f32 %v2885_v44, %v2835_v19 }
 0xbe5   : > { %v2838_v31 = vpop.xlane.xlu1 %2837 }
 0xbe6   : > { %v2887_v23 = vadd.f32 %v2886_v11, %v2838_v31 }
 0xbe8   : > { %v2888_v9 = vadd.f32 %v2887_v23, %v2841_v18 }
 0xbe9   : > { %v2844_v43 = vpop.xlane.xlu1 %2843 }
 0xbea   : > { %v2889_v35 = vadd.f32 %v2888_v9, %v2844_v43 }
 0xbed   : > { %v2850_v17 = vpop.xlane.xlu1 %2849 }
 0xbf1   : > { %v2847_v38 = vpop.xlane.xlu0 %2846  ;;  %v2856_v57 = vpop.xlane.xlu1 %2855 }
 0xbf2   : > { %v2890_v21 = vadd.f32 %v2889_v35, %v2847_v38 }
 0xbf4   : > { %v2891_v50 = vadd.f32 %v2890_v21, %v2850_v17 }
 0xbf5   : > { %v2853_v61 = vpop.xlane.xlu0 %2852  ;;  %v2862_v25 = vpop.xlane.xlu1 %2861 }
 0xbf6   : > { %v2892_v63 = vadd.f32 %v2891_v50, %v2853_v61 }
 0xbf8   : > { %v2893_v53 = vadd.f32 %v2892_v63, %v2856_v57 }
 0xbf9   : > { %v2859_v40 = vpop.xlane.xlu0 %2858 }
 0xbfa   : > { %v2894_v55 = vadd.f32 %v2893_v53, %v2859_v40 }
 0xbfc   : > { %v2895_v47 = vadd.f32 %v2894_v55, %v2862_v25 }
 0xbfd   : > { %v2865_v60 = vpop.xlane.xlu0 %2864 }
 0xbfe   : > { %v2896_v11 = vadd.f32 %v2895_v47, %v2865_v60 }
 0xc00   : > { %v2897_v31 = vrot.slane %v2896_v11, 4 }
 0xc02   : > { %v2898_v19 = vadd.f32 %v2897_v31, %v2896_v11 }
 0xc04   : > { %v2899_v46 = vrot.slane %v2898_v19, 2 }
 0xc06   : > { %v2900_v51 = vadd.f32 %v2899_v46, %v2898_v19 }
 0xc08   : > { %v2901_v56 = vrot.slane %v2900_v51, 1 }
 0xc0a   : > { %v2902_v27 = vadd.f32 %v2901_v56, %v2900_v51 }
 0xc0c   : > { %v5975_v32 = vmul.f32 6.1035156e-05, %v2902_v27 }
 0xc0e   : > { %v5979_v59 = vsub.f32 %v5693_v54, %v5975_v32  ;;  %v5983_v0 = vsub.f32 %v5689_v58, %v5975_v32  ;;  %v5987_v44 = vsub.f32 %v5721_v15, %v5975_v32  ;;  %v5991_v23 = vsub.f32 %v5703_v10, %v5975_v32 }
 0xc0f   : > { %v5999_v54 = vsub.f32 %v5713_v41, %v5975_v32  ;;  %v6003_v58 = vsub.f32 %v5732_v2, %v5975_v32  ;;  %v6013_v41 = vsub.f32 %v5734_v3, %v5975_v32  ;;  %v6017_v2 = vsub.f32 %v5754_v45, %v5975_v32 }
 0xc10   : > { %v2937_v18 = vmul.f32 %v5983_v0, %v5983_v0  ;;  %v2936_v43 = vmul.f32 %v5979_v59, %v5979_v59  ;;  %v2939_v10 = vmul.f32 %v5991_v23, %v5991_v23  ;;  %v2938_v17 = vmul.f32 %v5987_v44, %v5987_v44 }
 0xc11   : > { %v2941_v21 = vmul.f32 %v6003_v58, %v6003_v58  ;;  %v2940_v50 = vmul.f32 %v5999_v54, %v5999_v54  ;;  %v6027_v3 = vsub.f32 %v5757_v37, %v5975_v32  ;;  %v6031_v45 = vsub.f32 %v5775_v1, %v5975_v32 }
 0xc12   : > { %v2971_v15 = vsel %vm709_vm0, %v2937_v18, 0.0  ;;  %v2968_v9 = vsel %vm709_vm0, %v2936_v43, 0.0  ;;  %v2977_v35 = vsel %vm709_vm0, %v2939_v10, 0.0  ;;  %v2974_v38 = vsel %vm709_vm0, %v2938_v17, 0.0 }
 0xc13   : > { %2972 = vadd.xlane.f32.xlu0 %v2971_v15  ;;  %2969 = vadd.xlane.f32.xlu1 %v2968_v9  ;;  %v2983_v57 = vsel %vm709_vm0, %v2941_v21, 0.0  ;;  %v2980_v61 = vsel %vm709_vm0, %v2940_v50, 0.0  ;;  %v2943_v63 = vmul.f32 %v6017_v2, %v6017_v2  ;;  %v2942_v53 = vmul.f32 %v6013_v41, %v6013_v41 }
 0xc14   : > { %v6041_v37 = vsub.f32 %v5778_v39, %v5975_v32  ;;  %v6045_v1 = vsub.f32 %v5796_v6, %v5975_v32  ;;  %v2945_v25 = vmul.f32 %v6031_v45, %v6031_v45  ;;  %v2944_v47 = vmul.f32 %v6027_v3, %v6027_v3 }
 0xc15   : > { %v2989_v40 = vsel %vm709_vm0, %v2943_v63, 0.0  ;;  %v2986_v55 = vsel %vm709_vm0, %v2942_v53, 0.0  ;;  %v6055_v39 = vsub.f32 %v5695_v24, %v5975_v32  ;;  %v6059_v6 = vsub.f32 %v5691_v26, %v5975_v32 }
 0xc16   : > { %v2995_v60 = vsel %vm709_vm0, %v2945_v25, 0.0  ;;  %v2992_v11 = vsel %vm709_vm0, %v2944_v47, 0.0  ;;  %v2947_v31 = vmul.f32 %v6045_v1, %v6045_v1  ;;  %v2946_v19 = vmul.f32 %v6041_v37, %v6041_v37 }
 0xc17   : > { %2978 = vadd.xlane.f32.xlu0 %v2977_v35  ;;  %2975 = vadd.xlane.f32.xlu1 %v2974_v38  ;;  %v6069_v24 = vsub.f32 %v5705_v42, %v5975_v32  ;;  %v6073_v26 = vsub.f32 %v5711_v52, %v5975_v32  ;;  %v2949_v56 = vmul.f32 %v6059_v6, %v6059_v6 }
 0xc18   : > { %v3001_v46 = vsel %vm709_vm0, %v2947_v31, 0.0  ;;  %v2998_v51 = vsel %vm709_vm0, %v2946_v19, 0.0  ;;  %v2948_v27 = vmul.f32 %v6055_v39, %v6055_v39  ;;  %v6083_v42 = vsub.f32 %v5723_v4, %v5975_v32 }
 0xc19   : > { %v6087_v52 = vsub.f32 %v5741_v13, %v5975_v32  ;;  %v3007_v18 = vsel %vm709_vm0, %v2949_v56, 0.0  ;;  %v2951_v15 = vmul.f32 %v6073_v26, %v6073_v26  ;;  %v2950_v9 = vmul.f32 %v6069_v24, %v6069_v24 }
 0xc1a   : > { %v3004_v43 = vsel %vm709_vm0, %v2948_v27, 0.0  ;;  %v6097_v4 = vsub.f32 %v5743_v7, %v5975_v32  ;;  %v6101_v13 = vsub.f32 %v5766_v22, %v5975_v32  ;;  %v2952_v38 = vmul.f32 %v6083_v42, %v6083_v42 }
 0xc1b   : > { %2984 = vadd.xlane.f32.xlu0 %v2983_v57  ;;  %2981 = vadd.xlane.f32.xlu1 %v2980_v61  ;;  %v3013_v10 = vsel %vm709_vm0, %v2951_v15, 0.0  ;;  %v3010_v17 = vsel %vm709_vm0, %v2950_v9, 0.0  ;;  %v2953_v35 = vmul.f32 %v6087_v52, %v6087_v52  ;;  %v6111_v7 = vsub.f32 %v5768_v12, %v5975_v32 }
 0xc1c   : > { %v6115_v22 = vsub.f32 %v5787_v20, %v5975_v32  ;;  %v3016_v50 = vsel %vm709_vm0, %v2952_v38, 0.0  ;;  %v2955_v57 = vmul.f32 %v6101_v13, %v6101_v13  ;;  %v2954_v61 = vmul.f32 %v6097_v4, %v6097_v4 }
 0xc1d   : > { %v3019_v21 = vsel %vm709_vm0, %v2953_v35, 0.0  ;;  %v6125_v12 = vsub.f32 %v5836_v62, %v5975_v32  ;;  %v6129_v20 = vsub.f32 %v5801_v30, %v5975_v32  ;;  %v6139_v62 = vsub.f32 %v5842_v36, %v5975_v32 }
 0xc1e   : > { %v3025_v63 = vsel %vm709_vm0, %v2955_v57, 0.0  ;;  %v3022_v53 = vsel %vm709_vm0, %v2954_v61, 0.0  ;;  %v6143_v30 = vsub.f32 %v5855_v14, %v5975_v32  ;;  %v6153_v36 = vsub.f32 %v5848_v34, %v5975_v32  ;;  %v6203_v57 = vpop.permute.xlu0 %3333  ;;  %v4151_v61 = vld [vmem:[%s6494_s10 + $0xf0] sm:$0xff] }
 0xc1f   : > { %2990 = vadd.xlane.f32.xlu0 %v2989_v40  ;;  %2987 = vadd.xlane.f32.xlu1 %v2986_v55  ;;  %v2957_v40 = vmul.f32 %v6115_v22, %v6115_v22  ;;  %v2956_v55 = vmul.f32 %v6111_v7, %v6111_v7  ;;  %v6157_v14 = vsub.f32 %v5866_v16, %v5975_v32 }
 0xc20   : > { %6566 = vst [vmem:[#allocation39_spill] sm:$0xff] %v6143_v30  ;;  %6567 = vst [vmem:[#allocation40_spill] sm:$0xff] %v6153_v36  ;;  %v6167_v34 = vsub.f32 %v5857_v8, %v5975_v32  ;;  %v6171_v16 = vsub.f32 %v5875_v49, %v5975_v32  ;;  %v6181_v8 = vsub.f32 %v5868_v48, %v5975_v32 }
 0xc21   : > { %v3031_v25 = vsel %vm709_vm0, %v2957_v40, 0.0  ;;  %v3028_v47 = vsel %vm709_vm0, %v2956_v55, 0.0  ;;  %6568 = vst [vmem:[#allocation41_spill] sm:$0xff] %v6157_v14  ;;  %v6185_v49 = vsub.f32 %v5886_v29, %v5975_v32  ;;  %v4152_v40 = vld [vmem:[%s6494_s10 + $0xf8] sm:$0xff] }
 0xc22   : > { %6569 = vst [vmem:[#allocation42_spill] sm:$0xff] %v6167_v34  ;;  %6570 = vst [vmem:[#allocation43_spill] sm:$0xff] %v6171_v16  ;;  %v2966_v32 = vmul.f32 %v6181_v8, %v6181_v8 }
 0xc23   : > { %2996 = vadd.xlane.f32.xlu0 %v2995_v60  ;;  %2993 = vadd.xlane.f32.xlu1 %v2992_v11  ;;  %v2959_v60 = vmul.f32 %v6129_v20, %v6129_v20  ;;  %v2958_v11 = vmul.f32 %v6125_v12, %v6125_v12  ;;  %6571 = vst [vmem:[#allocation44_spill] sm:$0xff] %v6181_v8  ;;  %6572 = vst [vmem:[#allocation45_spill] sm:$0xff] %v6185_v49 }
 0xc24   : > { %v2967_v29 = vmul.f32 %v6185_v49, %v6185_v49 }
 0xc25   : > { %v3037_v31 = vsel %vm709_vm0, %v2959_v60, 0.0  ;;  %v3034_v19 = vsel %vm709_vm0, %v2958_v11, 0.0 }
 0xc26   : > { %v3061_v38 = vsel %vm709_vm0, %v2967_v29, 0.0 }
 0xc27   : > { %3002 = vadd.xlane.f32.xlu0 %v3001_v46  ;;  %2999 = vadd.xlane.f32.xlu1 %v2998_v51  ;;  %v2961_v46 = vmul.f32 %v6143_v30, %v6143_v30  ;;  %v2960_v51 = vmul.f32 %v6139_v62, %v6139_v62 }
 0xc29   : > { %v3043_v56 = vsel %vm709_vm0, %v2961_v46, 0.0  ;;  %v3040_v27 = vsel %vm709_vm0, %v2960_v51, 0.0 }
 0xc2b   : > { %3008 = vadd.xlane.f32.xlu0 %v3007_v18  ;;  %3005 = vadd.xlane.f32.xlu1 %v3004_v43  ;;  %v2963_v18 = vmul.f32 %v6157_v14, %v6157_v14  ;;  %v2962_v43 = vmul.f32 %v6153_v36, %v6153_v36 }
 0xc2d   : > { %v3049_v15 = vsel %vm709_vm0, %v2963_v18, 0.0  ;;  %v3046_v9 = vsel %vm709_vm0, %v2962_v43, 0.0 }
 0xc2f   : > { %3014 = vadd.xlane.f32.xlu0 %v3013_v10  ;;  %3011 = vadd.xlane.f32.xlu1 %v3010_v17  ;;  %v2965_v10 = vmul.f32 %v6171_v16, %v6171_v16  ;;  %v2964_v17 = vmul.f32 %v6167_v34, %v6167_v34 }
 0xc31   : > { %v3055_v35 = vsel %vm709_vm0, %v2965_v10, 0.0  ;;  %v3052_v48 = vsel %vm709_vm0, %v2964_v17, 0.0 }
 0xc33   : > { %3020 = vadd.xlane.f32.xlu0 %v3019_v21  ;;  %3017 = vadd.xlane.f32.xlu1 %v3016_v50  ;;  %v3058_v21 = vsel %vm709_vm0, %v2966_v32, 0.0  ;;  %v6201_v50 = vpop.permute.xlu1 %3329 }
 0xc37   : > { %3026 = vadd.xlane.f32.xlu0 %v3025_v63  ;;  %3023 = vadd.xlane.f32.xlu1 %v3022_v53  ;;  %v6208_v63 = vpop.permute.xlu1 %3337  ;;  %v6210_v53 = vpop.permute.xlu0 %3341 }
 0xc3b   : > { %3032 = vadd.xlane.f32.xlu0 %v3031_v25  ;;  %3029 = vadd.xlane.f32.xlu1 %v3028_v47  ;;  %v6215_v55 = vpop.permute.xlu1 %3345  ;;  %v6217_v25 = vpop.permute.xlu0 %3349 }
 0xc3f   : > { %3038 = vadd.xlane.f32.xlu0 %v3037_v31  ;;  %3035 = vadd.xlane.f32.xlu1 %v3034_v19  ;;  %v6219_v47 = vpop.permute.xlu1 %3353  ;;  %v6221_v60 = vpop.permute.xlu0 %3357 }
 0xc43   : > { %3044 = vadd.xlane.f32.xlu0 %v3043_v56  ;;  %3041 = vadd.xlane.f32.xlu1 %v3040_v27  ;;  %v6223_v11 = vpop.permute.xlu1 %3361  ;;  %v6225_v31 = vpop.permute.xlu0 %3365 }
 0xc47   : > { %3050 = vadd.xlane.f32.xlu0 %v3049_v15  ;;  %3047 = vadd.xlane.f32.xlu1 %v3046_v9  ;;  %v6227_v19 = vpop.permute.xlu1 %3369  ;;  %v6229_v46 = vpop.permute.xlu0 %3373 }
 0xc4b   : > { %3056 = vadd.xlane.f32.xlu0 %v3055_v35  ;;  %3053 = vadd.xlane.f32.xlu1 %v3052_v48  ;;  %v6231_v51 = vpop.permute.xlu1 %3377  ;;  %v6233_v56 = vpop.permute.xlu0 %3381 }
 0xc4c   : > { %6573 = vst [vmem:[#allocation46_spill] sm:$0xff] %v6233_v56 }
 0xc4f   : > { %3062 = vadd.xlane.f32.xlu0 %v3061_v38  ;;  %3059 = vadd.xlane.f32.xlu1 %v3058_v21  ;;  %v6235_v27 = vpop.permute.xlu1 %3385  ;;  %v6237_v18 = vpop.permute.xlu0 %3389 }
 0xc50   : > { %6574 = vst [vmem:[#allocation47_spill] sm:$0xff] %v6235_v27  ;;  %6575 = vst [vmem:[#allocation48_spill] sm:$0xff] %v6237_v18 }
 0xc53   : > { %v6239_v43 = vpop.permute.xlu1 %3393  ;;  %v6241_v15 = vpop.permute.xlu0 %3397 }
 0xc54   : > { %6576 = vst [vmem:[#allocation49_spill] sm:$0xff] %v6239_v43  ;;  %6577 = vst [vmem:[#allocation50_spill] sm:$0xff] %v6241_v15 }
 0xc57   : > { %v6243_v9 = vpop.permute.xlu1 %3401  ;;  %v6245_v10 = vpop.permute.xlu0 %3405 }
 0xc58   : > { %6578 = vst [vmem:[#allocation51_spill] sm:$0xff] %v6243_v9  ;;  %6579 = vst [vmem:[#allocation52_spill] sm:$0xff] %v6245_v10 }
 0xc5b   : > { %v6247_v17 = vpop.permute.xlu1 %3409  ;;  %v6249_v35 = vpop.permute.xlu0 %3413 }
 0xc5c   : > { %6580 = vst [vmem:[#allocation53_spill] sm:$0xff] %v6247_v17  ;;  %6581 = vst [vmem:[#allocation54_spill] sm:$0xff] %v6249_v35 }
 0xc60   : > { %3417 = vperm.xlu1 %4123, %v4151_v61  }
 0xc65   : > { %3421 = vperm.xlu0 %4122, %v4152_v40  }
 0xc9c   : > { %v2973_v48 = vpop.xlane.xlu0 %2972  ;;  %v2970_v29 = vpop.xlane.xlu1 %2969 }
 0xc9d   : > { %v3064_v32 = vadd.f32 %v2973_v48, %v2970_v29 }
 0xca0   : > { %v2979_v38 = vpop.xlane.xlu0 %2978  ;;  %v2976_v21 = vpop.xlane.xlu1 %2975 }
 0xca1   : > { %v3065_v61 = vadd.f32 %v3064_v32, %v2976_v21 }
 0xca3   : > { %v3066_v40 = vadd.f32 %v3065_v61, %v2979_v38 }
 0xca4   : > { %v2985_v49 = vpop.xlane.xlu0 %2984  ;;  %v2982_v8 = vpop.xlane.xlu1 %2981 }
 0xca5   : > { %v3067_v16 = vadd.f32 %v3066_v40, %v2982_v8 }
 0xca7   : > { %v3068_v43 = vadd.f32 %v3067_v16, %v2985_v49 }
 0xca8   : > { %v2991_v15 = vpop.xlane.xlu0 %2990  ;;  %v2988_v18 = vpop.xlane.xlu1 %2987 }
 0xca9   : > { %v3069_v9 = vadd.f32 %v3068_v43, %v2988_v18 }
 0xcab   : > { %v3070_v34 = vadd.f32 %v3069_v9, %v2991_v15 }
 0xcac   : > { %v2997_v10 = vpop.xlane.xlu0 %2996  ;;  %v2994_v14 = vpop.xlane.xlu1 %2993 }
 0xcad   : > { %v3071_v17 = vadd.f32 %v3070_v34, %v2994_v14 }
 0xcaf   : > { %v3072_v27 = vadd.f32 %v3071_v17, %v2997_v10 }
 0xcb0   : > { %v3003_v35 = vpop.xlane.xlu0 %3002  ;;  %v3000_v56 = vpop.xlane.xlu1 %2999 }
 0xcb1   : > { %v3073_v36 = vadd.f32 %v3072_v27, %v3000_v56 }
 0xcb3   : > { %v3074_v48 = vadd.f32 %v3073_v36, %v3003_v35 }
 0xcb4   : > { %v3009_v29 = vpop.xlane.xlu0 %3008  ;;  %v3006_v30 = vpop.xlane.xlu1 %3005 }
 0xcb5   : > { %v3075_v32 = vadd.f32 %v3074_v48, %v3006_v30 }
 0xcb7   : > { %v3076_v38 = vadd.f32 %v3075_v32, %v3009_v29 }
 0xcb8   : > { %v3015_v21 = vpop.xlane.xlu0 %3014  ;;  %v3012_v61 = vpop.xlane.xlu1 %3011 }
 0xcb9   : > { %v3077_v8 = vadd.f32 %v3076_v38, %v3012_v61 }
 0xcbb   : > { %v3078_v16 = vadd.f32 %v3077_v8, %v3015_v21 }
 0xcbc   : > { %v3021_v49 = vpop.xlane.xlu0 %3020  ;;  %v3018_v40 = vpop.xlane.xlu1 %3017 }
 0xcbd   : > { %v3079_v18 = vadd.f32 %v3078_v16, %v3018_v40 }
 0xcbf   : > { %v3080_v43 = vadd.f32 %v3079_v18, %v3021_v49 }
 0xcc0   : > { %v3027_v15 = vpop.xlane.xlu0 %3026  ;;  %v3024_v9 = vpop.xlane.xlu1 %3023 }
 0xcc1   : > { %v3081_v14 = vadd.f32 %v3080_v43, %v3024_v9 }
 0xcc3   : > { %v3082_v34 = vadd.f32 %v3081_v14, %v3027_v15 }
 0xcc4   : > { %v3033_v10 = vpop.xlane.xlu0 %3032  ;;  %v3030_v17 = vpop.xlane.xlu1 %3029 }
 0xcc5   : > { %v3083_v56 = vadd.f32 %v3082_v34, %v3030_v17 }
 0xcc7   : > { %v3084_v36 = vadd.f32 %v3083_v56, %v3033_v10 }
 0xcc8   : > { %v3039_v27 = vpop.xlane.xlu0 %3038  ;;  %v3036_v35 = vpop.xlane.xlu1 %3035 }
 0xcc9   : > { %v3085_v30 = vadd.f32 %v3084_v36, %v3036_v35 }
 0xccb   : > { %v3086_v48 = vadd.f32 %v3085_v30, %v3039_v27 }
 0xccc   : > { %v3045_v29 = vpop.xlane.xlu0 %3044  ;;  %v3042_v32 = vpop.xlane.xlu1 %3041 }
 0xccd   : > { %v3087_v38 = vadd.f32 %v3086_v48, %v3042_v32 }
 0xccf   : > { %v3088_v21 = vadd.f32 %v3087_v38, %v3045_v29 }
 0xcd0   : > { %v3051_v61 = vpop.xlane.xlu0 %3050  ;;  %v3048_v8 = vpop.xlane.xlu1 %3047 }
 0xcd1   : > { %v3089_v16 = vadd.f32 %v3088_v21, %v3048_v8 }
 0xcd3   : > { %v3090_v49 = vadd.f32 %v3089_v16, %v3051_v61 }
 0xcd4   : > { %v3057_v40 = vpop.xlane.xlu0 %3056  ;;  %v3054_v18 = vpop.xlane.xlu1 %3053 }
 0xcd5   : > { %v3091_v43 = vadd.f32 %v3090_v49, %v3054_v18 }
 0xcd7   : > { %v3092_v15 = vadd.f32 %v3091_v43, %v3057_v40  ;;  %v6582_v40 = vld [vmem:[#allocation2_spill] sm:$0xff]  ;;  %v6583_v43 = vld [vmem:[#allocation5_spill] sm:$0xff] }
 0xcd8   : > { %v3060_v9 = vpop.xlane.xlu1 %3059  ;;  %v3063_v34 = vpop.xlane.xlu0 %3062 }
 0xcd9   : > { %v3093_v14 = vadd.f32 %v3092_v15, %v3060_v9  ;;  %v6584_v9 = vld [vmem:[#allocation34_spill] sm:$0xff] }
 0xcdb   : > { %v3094_v10 = vadd.f32 %v3093_v14, %v3063_v34  ;;  %v6585_v14 = vld [vmem:[#allocation6_spill] sm:$0xff]  ;;  %v6586_v34 = vld [vmem:[#allocation7_spill] sm:$0xff] }
 0xcdd   : > { %v3095_v17 = vrot.slane %v3094_v10, 4 }
 0xcdf   : > { %v3096_v56 = vadd.f32 %v3095_v17, %v3094_v10 }
 0xce1   : > { %v3097_v36 = vrot.slane %v3096_v56, 2 }
 0xce3   : > { %v3098_v27 = vadd.f32 %v3097_v36, %v3096_v56  ;;  %v6588_v56 = vld [vmem:[#allocation36_spill] sm:$0xff] }
 0xce5   : > { %v3099_v35 = vrot.slane %v3098_v27, 1 }
 0xce7   : > { %v3100_v30 = vadd.f32 %v3099_v35, %v3098_v27 }
 0xce9   : > { %v3101_v48 = vmul.f32 6.1035156e-05, %v3100_v30  ;;  %v6589_v30 = vld [vmem:[#allocation8_spill] sm:$0xff] }
 0xceb   : > { %v3102_v29 = vadd.f32 1e-05, %v3101_v48 }
 0xced   : > { %4132 = vrsqrt.f32 %v3102_v29 }
 0xcfa   : > { %v6251_v32 = vpop.eup %4132 }
 0xcfb   : > { %v3105_v38 = vmul.f32 %v6251_v32, %v5983_v0  ;;  %v3104_v21 = vmul.f32 %v6251_v32, %v5979_v59  ;;  %v3106_v61 = vmul.f32 %v6251_v32, %v5987_v44  ;;  %v3107_v16 = vmul.f32 %v6251_v32, %v5991_v23  ;;  %v6587_v23 = vld [vmem:[#allocation33_spill] sm:$0xff] }
 0xcfc   : > { %v3108_v49 = vmul.f32 %v6251_v32, %v5999_v54  ;;  %v3109_v59 = vmul.f32 %v6251_v32, %v6003_v58  ;;  %v3110_v44 = vmul.f32 %v6251_v32, %v6013_v41  ;;  %v3111_v35 = vmul.f32 %v6251_v32, %v6017_v2  ;;  %v6590_v41 = vld [vmem:[#allocation3_spill] sm:$0xff] }
 0xcfd   : > { %v3265_v8 = vmul.f32 %v5809_v5, %v3105_v38  ;;  %v3264_v18 = vmul.f32 %v6582_v40, %v3104_v21  ;;  %v3266_v15 = vmul.f32 %v6583_v43, %v3106_v61  ;;  %v3267_v5 = vmul.f32 %v6585_v14, %v3107_v16  ;;  %v6591_v38 = vld [vmem:[#allocation35_spill] sm:$0xff]  ;;  %v6592_v61 = vld [vmem:[#allocation38_spill] sm:$0xff] }
 0xcfe   : > { %v3268_v10 = vmul.f32 %v6586_v34, %v3108_v49  ;;  %v3112_v58 = vmul.f32 %v6251_v32, %v6027_v3  ;;  %v3269_v48 = vmul.f32 %v6589_v30, %v3109_v59  ;;  %v3270_v29 = vmul.f32 %v6590_v41, %v3110_v44  ;;  %v6594_v3 = vld [vmem:[#allocation9_spill] sm:$0xff]  ;;  %v6598_v30 = vld [vmem:[#allocation12_spill] sm:$0xff] }
 0xcff   : > { %v3425_v0 = vadd.f32 %v6584_v9, %v3265_v8  ;;  %v3424_v17 = vadd.f32 %v6587_v23, %v3264_v18  ;;  %v3426_v54 = vadd.f32 %v6588_v56, %v3266_v15  ;;  %v3427_v21 = vadd.f32 %v6591_v38, %v3267_v5  ;;  %v6593_v18 = vld [vmem:[#allocation4_spill] sm:$0xff]  ;;  %v6595_v9 = vld [vmem:[#allocation37_spill] sm:$0xff] }
 0xd00   : > { %v3428_v8 = vadd.f32 %v6592_v61, %v3268_v10  ;;  %v3113_v40 = vmul.f32 %v6251_v32, %v6031_v45  ;;  %v3114_v2 = vmul.f32 %v6251_v32, %v6041_v37  ;;  %v3271_v43 = vmul.f32 %v6593_v18, %v3111_v35  ;;  %v6596_v10 = vld [vmem:[#allocation10_spill] sm:$0xff]  ;;  %v6599_v41 = vld [vmem:[#allocation13_spill] sm:$0xff] }
 0xd01   : > { %v3457_v36 = vmax.f32 %v3425_v0, 0.0  ;;  %v3456_v16 = vmax.f32 %v3424_v17, 0.0  ;;  %v3458_v49 = vmax.f32 %v3426_v54, 0.0  ;;  %v3272_v15 = vmul.f32 %v6594_v3, %v3112_v58  ;;  %v6597_v17 = vld [vmem:[#allocation11_spill] sm:$0xff] }
 0xd02   : > { %v3429_v0 = vadd.f32 %v6595_v9, %v3269_v48  ;;  %v3430_v59 = vadd.f32 %v5971_v28, %v3270_v29  ;;  %v3459_v44 = vmax.f32 %v3427_v21, 0.0  ;;  %v3460_v14 = vmax.f32 %v3428_v8, 0.0  ;;  %v6602_v9 = vld [vmem:[#allocation16_spill] sm:$0xff] }
 0xd03   : > { %v3491_v27 = vsel %vm709_vm0, %v3457_v36, -inf  ;;  %v3488_v5 = vsel %vm709_vm0, %v3456_v16, -inf  ;;  %v3494_v34 = vsel %vm709_vm0, %v3458_v49, -inf  ;;  %v3115_v45 = vmul.f32 %v6251_v32, %v6045_v1  ;;  %v6600_v16 = vld [vmem:[#allocation14_spill] sm:$0xff] }
 0xd04   : > { %3492 = vmax.xlane.f32.xlu0 %v3491_v27  ;;  %3489 = vmax.xlane.f32.xlu1 %v3488_v5  ;;  %v3116_v37 = vmul.f32 %v6251_v32, %v6055_v39  ;;  %v3273_v23 = vmul.f32 %v6596_v10, %v3113_v40  ;;  %v3274_v56 = vmul.f32 %v6597_v17, %v3114_v2  ;;  %v3461_v36 = vmax.f32 %v3429_v0, 0.0  ;;  %v6601_v40 = vld [vmem:[#allocation15_spill] sm:$0xff] }
 0xd05   : > { %v3431_v28 = vadd.f32 %v5973_v33, %v3271_v43  ;;  %v3432_v54 = vadd.f32 %v6201_v50, %v3272_v15  ;;  %v3462_v27 = vmax.f32 %v3430_v59, 0.0  ;;  %v3497_v35 = vsel %vm709_vm0, %v3459_v44, -inf  ;;  %v6603_v59 = vld [vmem:[#allocation17_spill] sm:$0xff] }
 0xd06   : > { %v3500_v58 = vsel %vm709_vm0, %v3460_v14, -inf  ;;  %v3117_v1 = vmul.f32 %v6251_v32, %v6059_v6  ;;  %v3118_v39 = vmul.f32 %v6251_v32, %v6069_v24  ;;  %v3275_v48 = vmul.f32 %v6598_v30, %v3115_v45 }
 0xd07   : > { %v3276_v33 = vmul.f32 %v6599_v41, %v3116_v37  ;;  %v3433_v50 = vadd.f32 %v6203_v57, %v3273_v23  ;;  %v3434_v29 = vadd.f32 %v6208_v63, %v3274_v56  ;;  %v3463_v38 = vmax.f32 %v3431_v28, 0.0  ;;  %v6604_v37 = vld [vmem:[#allocation18_spill] sm:$0xff]  ;;  %v6605_v23 = vld [vmem:[#allocation19_spill] sm:$0xff] }
 0xd08   : > { %3495 = vmax.xlane.f32.xlu0 %v3494_v34  ;;  %3498 = vmax.xlane.f32.xlu1 %v3497_v35  ;;  %v3464_v21 = vmax.f32 %v3432_v54, 0.0  ;;  %v3503_v61 = vsel %vm709_vm0, %v3461_v36, -inf  ;;  %v3506_v8 = vsel %vm709_vm0, %v3462_v27, -inf  ;;  %v3119_v6 = vmul.f32 %v6251_v32, %v6073_v26  ;;  %v6606_v27 = vld [vmem:[#allocation20_spill] sm:$0xff] }
 0xd09   : > { %v3120_v24 = vmul.f32 %v6251_v32, %v6083_v42  ;;  %v3277_v49 = vmul.f32 %v6600_v16, %v3117_v1  ;;  %v3278_v57 = vmul.f32 %v6601_v40, %v3118_v39  ;;  %v3435_v63 = vadd.f32 %v6210_v53, %v3275_v48 }
 0xd0a   : > { %v3436_v2 = vadd.f32 %v6215_v55, %v3276_v33  ;;  %v3465_v18 = vmax.f32 %v3433_v50, 0.0  ;;  %v3466_v43 = vmax.f32 %v3434_v29, 0.0  ;;  %v3509_v3 = vsel %vm709_vm0, %v3463_v38, -inf  ;;  %v6608_v33 = vld [vmem:[#allocation22_spill] sm:$0xff]  ;;  %v6609_v29 = vld [vmem:[#allocation23_spill] sm:$0xff] }
 0xd0b   : > { %v3512_v15 = vsel %vm709_vm0, %v3464_v21, -inf  ;;  %v3121_v26 = vmul.f32 %v6251_v32, %v6087_v52  ;;  %v3122_v42 = vmul.f32 %v6251_v32, %v6097_v4  ;;  %v3279_v0 = vmul.f32 %v6602_v9, %v3119_v6 }
 0xd0c   : > { %3501 = vmax.xlane.f32.xlu0 %v3500_v58  ;;  %3504 = vmax.xlane.f32.xlu1 %v3503_v61  ;;  %v3280_v53 = vmul.f32 %v6603_v59, %v3120_v24  ;;  %v3437_v55 = vadd.f32 %v6217_v25, %v3277_v49  ;;  %v3438_v44 = vadd.f32 %v6219_v47, %v3278_v57  ;;  %v3467_v14 = vmax.f32 %v3435_v63, 0.0  ;;  %v6607_v58 = vld [vmem:[#allocation21_spill] sm:$0xff]  ;;  %v6612_v49 = vld [vmem:[#allocation24_spill] sm:$0xff]  ;;  %v6613_v57 = vld [vmem:[#allocation26_spill] sm:$0xff] }
 0xd0d   : > { %v3468_v5 = vmax.f32 %v3436_v2, 0.0  ;;  %v3515_v34 = vsel %vm709_vm0, %v3465_v18, -inf  ;;  %v3518_v45 = vsel %vm709_vm0, %v3466_v43, -inf  ;;  %v3123_v52 = vmul.f32 %v6251_v32, %v6101_v13  ;;  %v6614_v63 = vld [vmem:[#allocation46_spill] sm:$0xff]  ;;  %v6615_v2 = vld [vmem:[#allocation47_spill] sm:$0xff] }
 0xd0e   : > { %v3124_v4 = vmul.f32 %v6251_v32, %v6111_v7  ;;  %v3281_v10 = vmul.f32 %v6604_v37, %v3121_v26  ;;  %v3282_v25 = vmul.f32 %v6605_v23, %v3122_v42  ;;  %v3439_v47 = vadd.f32 %v6221_v60, %v3279_v0  ;;  %v6616_v42 = vld [vmem:[#allocation41_spill] sm:$0xff]  ;;  %v6617_v0 = vld [vmem:[#allocation42_spill] sm:$0xff] }
 0xd0f   : > { %v3440_v17 = vadd.f32 %v6223_v11, %v3280_v53  ;;  %v3469_v56 = vmax.f32 %v3437_v55, 0.0  ;;  %v3470_v28 = vmax.f32 %v3438_v44, 0.0  ;;  %v3521_v54 = vsel %vm709_vm0, %v3467_v14, -inf  ;;  %v6618_v53 = vld [vmem:[#allocation25_spill] sm:$0xff]  ;;  %v6619_v44 = vld [vmem:[#allocation28_spill] sm:$0xff] }
 0xd10   : > { %3507 = vmax.xlane.f32.xlu0 %v3506_v8  ;;  %3510 = vmax.xlane.f32.xlu1 %v3509_v3  ;;  %v3524_v36 = vsel %vm709_vm0, %v3468_v5, -inf  ;;  %v3125_v13 = vmul.f32 %v6251_v32, %v6115_v22  ;;  %v3126_v7 = vmul.f32 %v6251_v32, %v6125_v12  ;;  %v3283_v35 = vmul.f32 %v6606_v27, %v3123_v52  ;;  %v6620_v5 = vld [vmem:[#allocation48_spill] sm:$0xff] }
 0xd11   : > { %v3284_v60 = vmul.f32 %v6607_v58, %v3124_v4  ;;  %v3441_v11 = vadd.f32 %v6225_v31, %v3281_v10  ;;  %v3442_v1 = vadd.f32 %v6227_v19, %v3282_v25  ;;  %v3471_v39 = vmax.f32 %v3439_v47, 0.0  ;;  %v6622_v25 = vld [vmem:[#allocation43_spill] sm:$0xff] }
 0xd12   : > { %v3472_v30 = vmax.f32 %v3440_v17, 0.0  ;;  %v3527_v48 = vsel %vm709_vm0, %v3469_v56, -inf  ;;  %v3530_v41 = vsel %vm709_vm0, %v3470_v28, -inf  ;;  %v3127_v22 = vmul.f32 %v6251_v32, %v6129_v20  ;;  %v6610_v20 = vld [vmem:[#allocation39_spill] sm:$0xff]  ;;  %v6623_v17 = vld [vmem:[#allocation44_spill] sm:$0xff] }
 0xd13   : > { %v3128_v12 = vmul.f32 %v6251_v32, %v6139_v62  ;;  %v3285_v50 = vmul.f32 %v6608_v33, %v3125_v13  ;;  %v3286_v31 = vmul.f32 %v6609_v29, %v3126_v7  ;;  %v3443_v19 = vadd.f32 %v6229_v46, %v3283_v35  ;;  %v6611_v62 = vld [vmem:[#allocation40_spill] sm:$0xff]  ;;  %v6624_v28 = vld [vmem:[#allocation27_spill] sm:$0xff]  ;;  %v6626_v7 = vld [vmem:[#allocation50_spill] sm:$0xff] }
 0xd14   : > { %3513 = vmax.xlane.f32.xlu0 %v3512_v15  ;;  %3516 = vmax.xlane.f32.xlu1 %v3515_v34  ;;  %v3444_v38 = vadd.f32 %v6231_v51, %v3284_v60  ;;  %v3473_v21 = vmax.f32 %v3441_v11, 0.0  ;;  %v3474_v61 = vmax.f32 %v3442_v1, 0.0  ;;  %v3533_v8 = vsel %vm709_vm0, %v3471_v39, -inf  ;;  %v6627_v35 = vld [vmem:[#allocation51_spill] sm:$0xff] }
 0xd15   : > { %v3536_v6 = vsel %vm709_vm0, %v3472_v30, -inf  ;;  %v3129_v24 = vmul.f32 %v6251_v32, %v6610_v20  ;;  %v3130_v16 = vmul.f32 %v6251_v32, %v6611_v62  ;;  %v3287_v40 = vmul.f32 %v6612_v49, %v3127_v22  ;;  %v6628_v30 = vld [vmem:[#allocation32_spill] sm:$0xff] }
 0xd16   : > { %v3288_v46 = vmul.f32 %v6613_v57, %v3128_v12  ;;  %v3445_v51 = vadd.f32 %v6614_v63, %v3285_v50  ;;  %v3446_v18 = vadd.f32 %v6615_v2, %v3286_v31  ;;  %v3475_v43 = vmax.f32 %v3443_v19, 0.0  ;;  %v6630_v12 = vld [vmem:[#allocation45_spill] sm:$0xff]  ;;  %v6631_v50 = vld [vmem:[#allocation52_spill] sm:$0xff] }
 0xd17   : > { %v3476_v3 = vmax.f32 %v3444_v38, 0.0  ;;  %v3539_v15 = vsel %vm709_vm0, %v3473_v21, -inf  ;;  %v3542_v26 = vsel %vm709_vm0, %v3474_v61, -inf  ;;  %v3131_v9 = vmul.f32 %v6251_v32, %v6616_v42  ;;  %v6632_v31 = vld [vmem:[#allocation53_spill] sm:$0xff] }
 0xd18   : > { %3519 = vmax.xlane.f32.xlu0 %v3518_v45  ;;  %3522 = vmax.xlane.f32.xlu1 %v3521_v54  ;;  %v3132_v59 = vmul.f32 %v6251_v32, %v6617_v0  ;;  %v3289_v55 = vmul.f32 %v6618_v53, %v3129_v24  ;;  %v3290_v14 = vmul.f32 %v6619_v44, %v3130_v16  ;;  %v6621_v45 = vld [vmem:[#allocation49_spill] sm:$0xff]  ;;  %v3477_v4 = vmax.f32 %v3445_v51, 0.0  ;;  %v6633_v24 = vld [vmem:[#allocation31_spill] sm:$0xff]  ;;  %v6634_v16 = vld [vmem:[#allocation54_spill] sm:$0xff]  ;;  %v3422_v51 = vpop.permute.xlu0 %3421 }
 0xd19   : > { %v3447_v34 = vadd.f32 %v6620_v5, %v3287_v40  ;;  %v3448_v52 = vadd.f32 %v6621_v45, %v3288_v46  ;;  %v3478_v37 = vmax.f32 %v3446_v18, 0.0  ;;  %v3545_v10 = vsel %vm709_vm0, %v3475_v43, -inf }
 0xd1a   : > { %v3548_v23 = vsel %vm709_vm0, %v3476_v3, -inf  ;;  %v3133_v47 = vmul.f32 %v6251_v32, %v6622_v25  ;;  %v3134_v56 = vmul.f32 %v6251_v32, %v6623_v17  ;;  %v3291_v54 = vmul.f32 %v6624_v28, %v3131_v9 }
 0xd1b   : > { %v3449_v27 = vadd.f32 %v6626_v7, %v3289_v55  ;;  %v3450_v58 = vadd.f32 %v6627_v35, %v3290_v14  ;;  %v3479_v60 = vmax.f32 %v3447_v34, 0.0  ;;  %v3480_v11 = vmax.f32 %v3448_v52, 0.0 }
 0xd1c   : > { %3525 = vmax.xlane.f32.xlu0 %v3524_v36  ;;  %3528 = vmax.xlane.f32.xlu1 %v3527_v48  ;;  %v6625_v36 = vld [vmem:[#allocation30_spill] sm:$0xff]  ;;  %v3551_v1 = vsel %vm709_vm0, %v3477_v4, -inf  ;;  %v3554_v39 = vsel %vm709_vm0, %v3478_v37, -inf  ;;  %v3294_v48 = vmul.f32 %v6628_v30, %v3134_v56  ;;  %v3135_v33 = vmul.f32 %v6251_v32, %v6630_v12 }
 0xd1d   : > { %v3292_v13 = vmul.f32 %v6625_v36, %v3132_v59  ;;  %v3451_v29 = vadd.f32 %v6631_v50, %v3291_v54  ;;  %v3481_v38 = vmax.f32 %v3449_v27, 0.0  ;;  %v3482_v21 = vmax.f32 %v3450_v58, 0.0 }
 0xd1e   : > { %v3557_v61 = vsel %vm709_vm0, %v3479_v60, -inf  ;;  %v3295_v62 = vmul.f32 %v6633_v24, %v3135_v33 }
 0xd1f   : > { %v3452_v19 = vadd.f32 %v6632_v31, %v3292_v13  ;;  %v3483_v40 = vmax.f32 %v3451_v29, 0.0  ;;  %v3563_v57 = vsel %vm709_vm0, %v3481_v38, -inf  ;;  %v3566_v46 = vsel %vm709_vm0, %v3482_v21, -inf }
 0xd20   : > { %3531 = vmax.xlane.f32.xlu0 %v3530_v41  ;;  %3534 = vmax.xlane.f32.xlu1 %v3533_v8  ;;  %v6629_v41 = vld [vmem:[#allocation29_spill] sm:$0xff]  ;;  %v3560_v8 = vsel %vm709_vm0, %v3480_v11, -inf  ;;  %v3455_v2 = vadd.f32 %v3422_v51, %v3295_v62 }
 0xd21   : > { %v3293_v22 = vmul.f32 %v6629_v41, %v3133_v47  ;;  %v3484_v32 = vmax.f32 %v3452_v19, 0.0  ;;  %v3569_v43 = vsel %vm709_vm0, %v3483_v40, -inf }
 0xd23   : > { %v3453_v49 = vadd.f32 %v6634_v16, %v3293_v22  ;;  %v3572_v3 = vsel %vm709_vm0, %v3484_v32, -inf }
 0xd24   : > { %3537 = vmax.xlane.f32.xlu0 %v3536_v6  ;;  %3540 = vmax.xlane.f32.xlu1 %v3539_v15  ;;  %v3418_v6 = vpop.permute.xlu1 %3417  ;;  %v3487_v15 = vmax.f32 %v3455_v2, 0.0 }
 0xd25   : > { %v3454_v20 = vadd.f32 %v3418_v6, %v3294_v48  ;;  %v3485_v18 = vmax.f32 %v3453_v49, 0.0 }
 0xd26   : > { %v3581_v9 = vsel %vm709_vm0, %v3487_v15, -inf }
 0xd27   : > { %v3486_v63 = vmax.f32 %v3454_v20, 0.0 }
 0xd28   : > { %3543 = vmax.xlane.f32.xlu0 %v3542_v26  ;;  %3546 = vmax.xlane.f32.xlu1 %v3545_v10  ;;  %v3575_v26 = vsel %vm709_vm0, %v3485_v18, -inf }
 0xd29   : > { %v3578_v42 = vsel %vm709_vm0, %v3486_v63, -inf }
 0xd2c   : > { %3549 = vmax.xlane.f32.xlu0 %v3548_v23  ;;  %3552 = vmax.xlane.f32.xlu1 %v3551_v1 }
 0xd30   : > { %3555 = vmax.xlane.f32.xlu0 %v3554_v39  ;;  %3558 = vmax.xlane.f32.xlu1 %v3557_v61 }
 0xd34   : > { %3561 = vmax.xlane.f32.xlu0 %v3560_v8  ;;  %3564 = vmax.xlane.f32.xlu1 %v3563_v57 }
 0xd38   : > { %3567 = vmax.xlane.f32.xlu0 %v3566_v46  ;;  %3570 = vmax.xlane.f32.xlu1 %v3569_v43 }
 0xd3c   : > { %3573 = vmax.xlane.f32.xlu0 %v3572_v3  ;;  %3576 = vmax.xlane.f32.xlu1 %v3575_v26 }
 0xd40   : > { %3579 = vmax.xlane.f32.xlu0 %v3578_v42  ;;  %3582 = vmax.xlane.f32.xlu1 %v3581_v9 }
 0xd8d   : > { %v3493_v0 = vpop.xlane.xlu0 %3492  ;;  %v3490_v59 = vpop.xlane.xlu1 %3489 }
 0xd8e   : > { %3586 = vst.msk [vmem:[%s6415_s29 + $0x8] sm:$0xff] %vm3584_vm1, %v3493_v0  ;;  %3585 = vst.msk [vmem:[%s6415_s29] sm:$0xff] %vm3584_vm1, %v3490_v59 }
 0xd91   : > { %v3496_v53 = vpop.xlane.xlu0 %3495  ;;  %v3499_v55 = vpop.xlane.xlu1 %3498 }
 0xd92   : > { %3587 = vst.msk [vmem:[%s6415_s29 + $0x10] sm:$0xff] %vm3584_vm1, %v3496_v53  ;;  %3588 = vst.msk [vmem:[%s6415_s29 + $0x18] sm:$0xff] %vm3584_vm1, %v3499_v55 }
 0xd95   : > { %v3502_v44 = vpop.xlane.xlu0 %3501  ;;  %v3505_v14 = vpop.xlane.xlu1 %3504 }
 0xd96   : > { %3589 = vst.msk [vmem:[%s6415_s29 + $0x20] sm:$0xff] %vm3584_vm1, %v3502_v44  ;;  %3590 = vst.msk [vmem:[%s6415_s29 + $0x28] sm:$0xff] %vm3584_vm1, %v3505_v14 }
 0xd99   : > { %v3508_v5 = vpop.xlane.xlu0 %3507  ;;  %v3511_v34 = vpop.xlane.xlu1 %3510 }
 0xd9a   : > { %3591 = vst.msk [vmem:[%s6415_s29 + $0x30] sm:$0xff] %vm3584_vm1, %v3508_v5  ;;  %3592 = vst.msk [vmem:[%s6415_s29 + $0x38] sm:$0xff] %vm3584_vm1, %v3511_v34 }
 0xd9d   : > { %v3514_v45 = vpop.xlane.xlu0 %3513  ;;  %v3517_v52 = vpop.xlane.xlu1 %3516 }
 0xd9e   : > { %3593 = vst.msk [vmem:[%s6415_s29 + $0x40] sm:$0xff] %vm3584_vm1, %v3514_v45  ;;  %3594 = vst.msk [vmem:[%s6415_s29 + $0x48] sm:$0xff] %vm3584_vm1, %v3517_v52 }
 0xda1   : > { %v3520_v4 = vpop.xlane.xlu0 %3519  ;;  %v3523_v37 = vpop.xlane.xlu1 %3522 }
 0xda2   : > { %3595 = vst.msk [vmem:[%s6415_s29 + $0x50] sm:$0xff] %vm3584_vm1, %v3520_v4  ;;  %3596 = vst.msk [vmem:[%s6415_s29 + $0x58] sm:$0xff] %vm3584_vm1, %v3523_v37 }
 0xda5   : > { %v3526_v10 = vpop.xlane.xlu0 %3525  ;;  %v3529_v23 = vpop.xlane.xlu1 %3528 }
 0xda6   : > { %3597 = vst.msk [vmem:[%s6415_s29 + $0x60] sm:$0xff] %vm3584_vm1, %v3526_v10  ;;  %3598 = vst.msk [vmem:[%s6415_s29 + $0x68] sm:$0xff] %vm3584_vm1, %v3529_v23 }
 0xda9   : > { %v3532_v25 = vpop.xlane.xlu0 %3531  ;;  %v3535_v47 = vpop.xlane.xlu1 %3534 }
 0xdaa   : > { %3599 = vst.msk [vmem:[%s6415_s29 + $0x70] sm:$0xff] %vm3584_vm1, %v3532_v25  ;;  %3600 = vst.msk [vmem:[%s6415_s29 + $0x78] sm:$0xff] %vm3584_vm1, %v3535_v47 }
 0xdad   : > { %v3538_v17 = vpop.xlane.xlu0 %3537  ;;  %v3541_v56 = vpop.xlane.xlu1 %3540 }
 0xdae   : > { %3601 = vst.msk [vmem:[%s6415_s29 + $0x80] sm:$0xff] %vm3584_vm1, %v3538_v17  ;;  %3602 = vst.msk [vmem:[%s6415_s29 + $0x88] sm:$0xff] %vm3584_vm1, %v3541_v56 }
 0xdb1   : > { %v3544_v28 = vpop.xlane.xlu0 %3543  ;;  %v3547_v54 = vpop.xlane.xlu1 %3546 }
 0xdb2   : > { %3603 = vst.msk [vmem:[%s6415_s29 + $0x90] sm:$0xff] %vm3584_vm1, %v3544_v28  ;;  %3604 = vst.msk [vmem:[%s6415_s29 + $0x98] sm:$0xff] %vm3584_vm1, %v3547_v54 }
 0xdb5   : > { %v3550_v36 = vpop.xlane.xlu0 %3549  ;;  %v3553_v13 = vpop.xlane.xlu1 %3552 }
 0xdb6   : > { %3605 = vst.msk [vmem:[%s6415_s29 + $0xa0] sm:$0xff] %vm3584_vm1, %v3550_v36  ;;  %3606 = vst.msk [vmem:[%s6415_s29 + $0xa8] sm:$0xff] %vm3584_vm1, %v3553_v13 }
 0xdb9   : > { %v3556_v7 = vpop.xlane.xlu0 %3555  ;;  %v3559_v27 = vpop.xlane.xlu1 %3558 }
 0xdba   : > { %3607 = vst.msk [vmem:[%s6415_s29 + $0xb0] sm:$0xff] %vm3584_vm1, %v3556_v7  ;;  %3608 = vst.msk [vmem:[%s6415_s29 + $0xb8] sm:$0xff] %vm3584_vm1, %v3559_v27 }
 0xdbd   : > { %v3562_v35 = vpop.xlane.xlu0 %3561  ;;  %v3565_v58 = vpop.xlane.xlu1 %3564 }
 0xdbe   : > { %3609 = vst.msk [vmem:[%s6415_s29 + $0xc0] sm:$0xff] %vm3584_vm1, %v3562_v35  ;;  %3610 = vst.msk [vmem:[%s6415_s29 + $0xc8] sm:$0xff] %vm3584_vm1, %v3565_v58 }
 0xdc1   : > { %v3568_v60 = vpop.xlane.xlu0 %3567  ;;  %v3571_v11 = vpop.xlane.xlu1 %3570 }
 0xdc2   : > { %3611 = vst.msk [vmem:[%s6415_s29 + $0xd0] sm:$0xff] %vm3584_vm1, %v3568_v60  ;;  %3612 = vst.msk [vmem:[%s6415_s29 + $0xd8] sm:$0xff] %vm3584_vm1, %v3571_v11 }
 0xdc5   : > { %v3574_v1 = vpop.xlane.xlu0 %3573  ;;  %v3577_v39 = vpop.xlane.xlu1 %3576 }
 0xdc6   : > { %3613 = vst.msk [vmem:[%s6415_s29 + $0xe0] sm:$0xff] %vm3584_vm1, %v3574_v1  ;;  %3614 = vst.msk [vmem:[%s6415_s29 + $0xe8] sm:$0xff] %vm3584_vm1, %v3577_v39 }
 0xdc9   : > { %v3580_v30 = vpop.xlane.xlu0 %3579  ;;  %v3583_v48 = vpop.xlane.xlu1 %3582 }
 0xdca   : > { %3615 = vst.msk [vmem:[%s6415_s29 + $0xf0] sm:$0xff] %vm3584_vm1, %v3580_v30  ;;  %3616 = vst.msk [vmem:[%s6415_s29 + $0xf8] sm:$0xff] %vm3584_vm1, %v3583_v48 }
 0xdcb PF: > { %s21_s17 = sadd.s32 1, %s4159_s17  }
 0xdcc   : > { %p18_p4 = scmp.ge.s32.totalorder %s21_s17, 4  }
 0xdce   :  { %20 = sbr.rel (!%p18_p4) target bundleno = 1 (0x1), region = 94 }

</bundles_post_ra>
